<compile_context>
chip_gen: v7x
topology: tpu7x:2x2x1
jax: 0.10.0
libtpu: 0.0.40
codegen_flags: <defaults>
</compile_context>

<pallas_src>
import functools

import jax
import jax.numpy as jnp
from jax.experimental import pallas as pl
from jax.experimental.pallas import tpu as pltpu


# ----------------------------- static configuration helpers -----------------------------

def _eesp_dilations(k, r_lim):
    """ksize = 3 + 2*i (clamped to 3 if > r_lim), sorted; dilation = (ksize - 1) // 2."""
    ksizes = []
    for i in range(k):
        ks = 3 + 2 * i
        ksizes.append(ks if ks <= r_lim else 3)
    ksizes.sort()
    return tuple((ks - 1) // 2 for ks in ksizes)


# Column layout of the packed per-channel parameter array `colp` (nout, 9 + 9*k):
_C_PROJ_S, _C_PROJ_B, _C_PROJ_A = 0, 1, 2   # proj_1x1 BN scale/bias, PReLU alpha   (rows :n)
_C_CAT_S, _C_CAT_B, _C_CAT_A = 3, 4, 5      # br_after_cat BN + PReLU               (rows :nout_new)
_C_EXP_S, _C_EXP_B = 6, 7                   # conv_1x1_exp BN                       (rows :nout_new)
_C_ACT_A = 8                                # final PReLU(nout)                     (rows :nout)
_C_DW0 = 9                                  # dw weight (branch b, kh, kw) at col 9 + b*9 + kh*3 + kw (rows :n)


# ----------------------------- the fused Pallas kernel -----------------------------

def _downsampler_kernel(x_ref, wproj_ref, wexp_ref, colp_ref, mask_ref, o_ref,
                        out1_sc, mrg_sc, *,
                        nin, nout, k, dil, pad, Wq, Ho, sq_alloc, use_mxu):
    """Whole DownSampler forward for one batch element (grid axis = batch).

    x_ref    : (nin, 4*sq_alloc)   padded + phase-decomposed + flattened input
               (phase p block at lanes [p*sq_alloc, p*sq_alloc + Hq*Wq); `pad` spare
               lanes per phase absorb shifted tap windows)
    wproj_ref: (n, nin)            block-diagonal proj_1x1 weight (groups=k)
    wexp_ref : (nout_new, nout_new) block-diagonal conv_1x1_exp weight (groups=k)
    colp_ref : (nout, 9+9*k)       per-channel params as lane-broadcastable columns
    mask_ref : (1, 4*sq_alloc)     interior mask (re-zeroes the synthetic padding ring)
    o_ref    : (nout, Ho*Wq)       output (valid cols are j % Wq < Wo; stripped outside)
    out1_sc  : (n, 4*sq_alloc)     proj_1x1 output, phase-flat, zero padding ring (VMEM)
    mrg_sc   : (nout_new, Ho*Wq)   hierarchical-merge result (VMEM)
    """
    nout_new = nout - nin
    n = nout_new // k
    s_out = Ho * Wq

    cp = colp_ref[...]                       # tiny (nout, 45): keep as a value, slice freely

    def col(rows, c):                        # per-channel column, broadcast along lanes
        return cp[:rows, c:c + 1]

    def tap(src_ref, rh, rw):                # one stride-2 tap = one wide lane slice
        p = (rh % 2) * 2 + (rw % 2)
        s0 = p * sq_alloc + (rh // 2) * Wq + (rw // 2)
        return src_ref[:, s0:s0 + s_out]

    def pointwise(w_ref, src, c_in, c_out):
        """Grouped 1x1 conv as block-diagonal (c_out, c_in) x (c_in, S)."""
        xv = src[...]
        if use_mxu:                          # production spatial: one MXU dot
            return jnp.dot(w_ref[...], xv, preferred_element_type=jnp.float32)
        wv = w_ref[...]                      # small spatial: c_in full-width VPU FMAs
        acc = jnp.zeros((c_out, xv.shape[1]), jnp.float32)
        for ic in range(c_in):
            acc = acc + wv[:, ic:ic + 1] * xv[ic:ic + 1, :]
        return acc

    # ---- EESP.proj_1x1 (grouped 1x1) + BN + PReLU, in the padded phase domain ----
    y = pointwise(wproj_ref, x_ref, nin, n)                     # (n, 4*sq_alloc)
    y = y * col(n, _C_PROJ_S) + col(n, _C_PROJ_B)
    y = jnp.where(y >= 0.0, y, col(n, _C_PROJ_A) * y)
    out1_sc[...] = y * mask_ref[...]        # one full-slab mul re-zeroes the padding ring

    # ---- branch (1): AvgPool2d(3, stride=2, pad=1, count_include_pad=True) + final PReLU ----
    acc = jnp.zeros((nin, s_out), jnp.float32)
    for kh in range(3):
        for kw in range(3):
            acc = acc + tap(x_ref, kh + (pad - 1), kw + (pad - 1))
    avg = acc * (1.0 / 9.0)
    o_ref[:nin, :] = jnp.where(avg >= 0.0, avg, col(nin, _C_ACT_A) * avg)

    # ---- EESP.spp_dw: k dilated depthwise 3x3 stride-2 branches + hierarchical merge ----
    cum = jnp.zeros((n, s_out), jnp.float32)
    for bidx, d in enumerate(dil):
        br = jnp.zeros((n, s_out), jnp.float32)
        for kh in range(3):
            for kw in range(3):
                w = col(n, _C_DW0 + bidx * 9 + kh * 3 + kw)     # (n, 1) per-channel weight
                br = br + w * tap(out1_sc, kh * d + (pad - d), kw * d + (pad - d))
        cum = cum + br
        mrg_sc[bidx * n:(bidx + 1) * n, :] = cum

    # ---- br_after_cat (BN + PReLU) on the whole merged slab ----
    m = mrg_sc[...]
    m = m * col(nout_new, _C_CAT_S) + col(nout_new, _C_CAT_B)
    m = jnp.where(m >= 0.0, m, col(nout_new, _C_CAT_A) * m)

    # ---- EESP.conv_1x1_exp (grouped 1x1) + BN, concat with avg branch, final PReLU ----
    e = pointwise(wexp_ref, m, nout_new, nout_new)              # (nout_new, s_out)
    e = e * col(nout_new, _C_EXP_S) + col(nout_new, _C_EXP_B)
    ae = cp[nin:nout, _C_ACT_A:_C_ACT_A + 1]
    o_ref[nin:nout, :] = jnp.where(e >= 0.0, e, ae * e)


# ----------------------------- wrapper -----------------------------

def _interior_mask(Hq, Wq, pad, sq_alloc):
    """1.0 on interior pixels of each phase plane, 0.0 on the padding ring / spare lanes."""
    hp = pad // 2
    r = jnp.arange(Hq)[:, None]
    c = jnp.arange(Wq)[None, :]
    m = ((r >= hp) & (r < Hq - hp) & (c >= hp) & (c < Wq - hp)).astype(jnp.float32)
    m = jnp.pad(m.reshape(-1), (0, sq_alloc - Hq * Wq))
    return jnp.tile(m, 4)[None, :]                              # (1, 4*sq_alloc)


@functools.partial(jax.jit, static_argnames=('nin', 'nout', 'k', 'r_lim'))
def downsampler_forward(wproj, wexp, colp, x, *, nin, nout, k=4, r_lim=9):
    """DownSampler.forward(input, input2=None) -- single fused Pallas call."""
    B, C, H, W = x.shape
    assert C == nin
    assert H % 2 == 0 and W % 2 == 0, (
        "Pallas DownSampler kernel requires even H, W (stride-2 phase decomposition).")
    # TODO(synk): the inp_reinf / input2 reinforcement branch is not implemented
    # (forward is supported for input2=None only).
    nout_new = nout - nin
    n = nout_new // k
    assert n * k == nout_new and nin % k == 0 and n % k == 0

    dil = _eesp_dilations(k, r_lim)
    pad = max(dil) + (max(dil) % 2)          # shared pad for all branches; must be even
    assert pad % 2 == 0 and pad >= max(dil) >= 1
    Ho, Wo = H // 2, W // 2
    Hq, Wq = Ho + pad, Wo + pad
    sq_alloc = Hq * Wq + pad                 # `pad` spare lanes absorb shifted tap windows
    stot = 4 * sq_alloc
    s_out = Ho * Wq                          # kernel output row stride (cols >= Wo are spare)

    # The only XLA glue in the forward pass: pad + phase-decompose + flatten the input
    # ONCE, shared by the avg-pool branch and all 4 dilated depthwise branches.
    xp = jnp.pad(x, ((0, 0), (0, 0), (pad, pad), (pad, pad)))
    xph = xp.reshape(B, nin, Hq, 2, Wq, 2).transpose(0, 1, 3, 5, 2, 4)
    xph = xph.reshape(B, nin, 4, Hq * Wq)
    xph = jnp.pad(xph, ((0, 0), (0, 0), (0, 0), (0, pad))).reshape(B, nin, stot)
    mask = _interior_mask(Hq, Wq, pad, sq_alloc)

    use_mxu = (Ho * Wo) >= 256               # MXU block-diag dot at production spatial sizes
    kern = functools.partial(
        _downsampler_kernel, nin=nin, nout=nout, k=k, dil=dil, pad=pad,
        Wq=Wq, Ho=Ho, sq_alloc=sq_alloc, use_mxu=use_mxu)

    out_flat = pl.pallas_call(
        kern,
        out_shape=jax.ShapeDtypeStruct((B, nout, s_out), jnp.float32),
        grid=(B,),
        in_specs=[
            pl.BlockSpec((None, nin, stot), lambda b: (b, 0, 0)),       # input (lane-dense)
            pl.BlockSpec((n, nin), lambda b: (0, 0)),                   # proj_1x1 block-diag
            pl.BlockSpec((nout_new, nout_new), lambda b: (0, 0)),       # conv_1x1_exp block-diag
            pl.BlockSpec((nout, 9 + 9 * k), lambda b: (0, 0)),          # per-channel columns
            pl.BlockSpec((1, stot), lambda b: (0, 0)),                  # interior mask
        ],
        out_specs=pl.BlockSpec((None, nout, s_out), lambda b: (b, 0, 0)),
        scratch_shapes=[
            pltpu.VMEM((n, stot), jnp.float32),                         # out1 (phase-flat)
            pltpu.VMEM((nout_new, s_out), jnp.float32),                 # hierarchical merge
        ],
        compiler_params=pltpu.CompilerParams(
            # batch -> both v7x TensorCores (no-op on v5e/v6e single TC). For B == 1 a
            # spatial row-block axis would be the parallel axis instead.
            dimension_semantics=("parallel",),
            vmem_limit_bytes=64 * 1024 * 1024),
        # TODO(synk): very large production spatial sizes would add a second grid axis
        # tiling the lane (spatial) dimension to bound vreg pressure of the 1x1 matmuls.
    )(xph, wproj, wexp, colp, mask)

    # Strip the (Wq - Wo) spare columns per output row -- pure layout plumbing.
    return out_flat.reshape(B, nout, Ho, Wq)[:, :, :, :Wo]


# ----------------------------- parameter setup -----------------------------

def _fold_bn(gamma, beta, mean, var, eps=1e-5):
    scale = gamma / jnp.sqrt(var + eps)
    bias = beta - mean * scale
    return scale.astype(jnp.float32), bias.astype(jnp.float32)


def _bn_params(key, c):
    k1, k2, k3, k4 = jax.random.split(key, 4)
    gamma = 1.0 + 0.1 * jax.random.normal(k1, (c,))
    beta = 0.1 * jax.random.normal(k2, (c,))
    mean = 0.1 * jax.random.normal(k3, (c,))
    var = 1.0 + 0.1 * jnp.abs(jax.random.normal(k4, (c,)))
    return _fold_bn(gamma, beta, mean, var)


def init_downsampler_params(key, nin, nout, k=4):
    nout_new = nout - nin
    n = nout_new // k
    assert n * k == nout_new, "n and n1 must match (EESP constraint)"
    keys = jax.random.split(key, 6)
    proj_s, proj_b = _bn_params(keys[1], n)
    cat_s, cat_b = _bn_params(keys[3], nout_new)
    exp_s, exp_b = _bn_params(keys[5], nout_new)
    return dict(
        proj_w=(0.2 * jax.random.normal(keys[0], (n, nin // k))).astype(jnp.float32),
        proj_s=proj_s, proj_b=proj_b,
        proj_a=jnp.full((n,), 0.25, jnp.float32),
        dw_w=(0.2 * jax.random.normal(keys[2], (k, n, 3, 3))).astype(jnp.float32),
        cat_s=cat_s, cat_b=cat_b,
        cat_a=jnp.full((nout_new,), 0.25, jnp.float32),
        exp_w=(0.2 * jax.random.normal(keys[4], (nout_new, nout_new // k))).astype(jnp.float32),
        exp_s=exp_s, exp_b=exp_b,
        act_a=jnp.full((nout,), 0.25, jnp.float32),
    )


def pack_params(sp, nin, nout, k):
    """Pre-expand per-channel parameters into lane-broadcastable / block-diagonal arrays."""
    nout_new = nout - nin
    n = nout_new // k
    nin_g, n_g = nin // k, n // k

    pw = jnp.asarray(sp['proj_w'], jnp.float32)                 # (n, nin_g)
    wproj = jnp.zeros((n, nin), jnp.float32)
    for g in range(k):                                          # block-diagonal (groups=k)
        wproj = wproj.at[g * n_g:(g + 1) * n_g,
                         g * nin_g:(g + 1) * nin_g].set(pw[g * n_g:(g + 1) * n_g])

    ew = jnp.asarray(sp['exp_w'], jnp.float32)                  # (nout_new, n)
    wexp = jnp.zeros((nout_new, nout_new), jnp.float32)
    for g in range(k):
        wexp = wexp.at[g * n:(g + 1) * n, g * n:(g + 1) * n].set(ew[g * n:(g + 1) * n])

    colp = jnp.zeros((nout, 9 + 9 * k), jnp.float32)
    colp = colp.at[:n, _C_PROJ_S].set(sp['proj_s'])
    colp = colp.at[:n, _C_PROJ_B].set(sp['proj_b'])
    colp = colp.at[:n, _C_PROJ_A].set(sp['proj_a'])
    colp = colp.at[:nout_new, _C_CAT_S].set(sp['cat_s'])
    colp = colp.at[:nout_new, _C_CAT_B].set(sp['cat_b'])
    colp = colp.at[:nout_new, _C_CAT_A].set(sp['cat_a'])
    colp = colp.at[:nout_new, _C_EXP_S].set(sp['exp_s'])
    colp = colp.at[:nout_new, _C_EXP_B].set(sp['exp_b'])
    colp = colp.at[:nout, _C_ACT_A].set(sp['act_a'])
    dw = jnp.asarray(sp['dw_w'], jnp.float32)                   # (k, n, 3, 3)
    dwcols = dw.transpose(0, 2, 3, 1).reshape(9 * k, n).T       # (n, 9k), col = b*9 + kh*3 + kw
    colp = colp.at[:n, _C_DW0:_C_DW0 + 9 * k].set(dwcols)
    return wproj, wexp, colp


# ----------------------------- pure-JAX reference (correctness check) -----------------------------

def reference_forward(sp, x, nin, nout, k=4, r_lim=9):
    dn = ('NCHW', 'OIHW', 'NCHW')
    hi = jax.lax.Precision.HIGHEST

    def conv1x1_grouped(y, w, groups):
        w4 = w.reshape(w.shape[0], w.shape[1], 1, 1)
        return jax.lax.conv_general_dilated(
            y, w4, window_strides=(1, 1), padding=[(0, 0), (0, 0)],
            dimension_numbers=dn, feature_group_count=groups, precision=hi)

    def dw3x3_s2(y, w, d):
        C = y.shape[1]
        return jax.lax.conv_general_dilated(
            y, w.reshape(C, 1, 3, 3), window_strides=(2, 2),
            padding=[(d, d), (d, d)], rhs_dilation=(d, d),
            dimension_numbers=dn, feature_group_count=C, precision=hi)

    def bn(y, s, b):
        return y * s.reshape(1, -1, 1, 1) + b.reshape(1, -1, 1, 1)

    def prelu(y, a):
        return jnp.where(y >= 0, y, a.reshape(1, -1, 1, 1) * y)

    dil = _eesp_dilations(k, r_lim)
    avg = dw3x3_s2(x, jnp.full((nin, 3, 3), 1.0 / 9.0, jnp.float32), 1)
    o1 = prelu(bn(conv1x1_grouped(x, sp['proj_w'], k), sp['proj_s'], sp['proj_b']),
               sp['proj_a'])
    outs = []
    for i, d in enumerate(dil):
        bi = dw3x3_s2(o1, sp['dw_w'][i], d)
        outs.append(bi if i == 0 else bi + outs[i - 1])
    cat = jnp.concatenate(outs, axis=1)
    z = prelu(bn(cat, sp['cat_s'], sp['cat_b']), sp['cat_a'])
    e = bn(conv1x1_grouped(z, sp['exp_w'], k), sp['exp_s'], sp['exp_b'])
    full = jnp.concatenate([avg, e], axis=1)
    return prelu(full, sp['act_a'])


# ----------------------------- main -----------------------------

if __name__ == "__main__":
    key = jax.random.PRNGKey(0)
    kx, kp = jax.random.split(key)
    B, nin, H, W = 2, 16, 16, 16
    nout, k = 48, 4                          # nout_new = 32, n = 8

    x = jax.random.normal(kx, (B, nin, H, W), dtype=jnp.float32)
    sp = init_downsampler_params(kp, nin, nout, k=k)
    wproj, wexp, colp = pack_params(sp, nin, nout, k)

    out = downsampler_forward(wproj, wexp, colp, x, nin=nin, nout=nout, k=k)
    out = jax.block_until_ready(out)

    assert out.shape == (B, nout, H // 2, W // 2), out.shape
    assert bool(jnp.all(jnp.isfinite(out)))

    ref = jax.block_until_ready(reference_forward(sp, x, nin, nout, k=k))
    max_diff = float(jnp.max(jnp.abs(out - ref)))
    assert max_diff < 2e-3, f"kernel/reference mismatch: max|diff|={max_diff}"

    print("KERNEL_OK")
</pallas_src>

<mosaic_0001>
module attributes {stable_mosaic.version = 11 : i64} {
  func.func @_downsampler_kernel(%arg0: i32, %arg1: memref<1x16x592xf32, #tpu.memory_space<vmem>>, %arg2: memref<8x16xf32, #tpu.memory_space<vmem>>, %arg3: memref<32x32xf32, #tpu.memory_space<vmem>>, %arg4: memref<48x45xf32, #tpu.memory_space<vmem>>, %arg5: memref<1x592xf32, #tpu.memory_space<vmem>>, %arg6: memref<1x48x96xf32, #tpu.memory_space<vmem>>, %arg7: memref<8x592xf32, #tpu.memory_space<vmem>>, %arg8: memref<32x96xf32, #tpu.memory_space<vmem>>) attributes {dimension_semantics = [#tpu.dimension_semantics<parallel>], iteration_bounds = array<i64: 2>, scalar_prefetch = 0 : i64, scratch_operands = 2 : i64, tpu.core_type = #tpu.core_type<tc>, window_params = [{transform_indices = @transform_0, window_bounds = array<i64: 1, 16, 592>}, {pipeline_mode = #tpu.pipeline_mode<synchronous>, transform_indices = @transform_1, window_bounds = array<i64: 8, 16>}, {pipeline_mode = #tpu.pipeline_mode<synchronous>, transform_indices = @transform_2, window_bounds = array<i64: 32, 32>}, {pipeline_mode = #tpu.pipeline_mode<synchronous>, transform_indices = @transform_3, window_bounds = array<i64: 48, 45>}, {pipeline_mode = #tpu.pipeline_mode<synchronous>, transform_indices = @transform_4, window_bounds = array<i64: 1, 592>}, {transform_indices = @transform_5, window_bounds = array<i64: 1, 48, 96>}]} {
    %c0 = arith.constant 0 : index
    %c0_0 = arith.constant 0 : index
    %0 = vector.load %arg4[%c0, %c0_0] : memref<48x45xf32, #tpu.memory_space<vmem>>, vector<48x45xf32>
    %c0_1 = arith.constant 0 : index
    %c0_2 = arith.constant 0 : index
    %c0_3 = arith.constant 0 : index
    %1 = vector.load %arg1[%c0_1, %c0_2, %c0_3] : memref<1x16x592xf32, #tpu.memory_space<vmem>>, vector<1x16x592xf32>
    %2 = vector.shape_cast %1 : vector<1x16x592xf32> to vector<16x592xf32>
    %c0_4 = arith.constant 0 : index
    %c0_5 = arith.constant 0 : index
    %3 = vector.load %arg2[%c0_4, %c0_5] : memref<8x16xf32, #tpu.memory_space<vmem>>, vector<8x16xf32>
    %cst = arith.constant 0.000000e+00 : f32
    %4 = vector.broadcast %cst : f32 to vector<8x592xf32>
    %5 = vector.extract_strided_slice %3 {offsets = [0, 0], sizes = [8, 1], strides = [1, 1]} : vector<8x16xf32> to vector<8x1xf32>
    %6 = vector.extract_strided_slice %2 {offsets = [0, 0], sizes = [1, 592], strides = [1, 1]} : vector<16x592xf32> to vector<1x592xf32>
    %7 = vector.broadcast %5 : vector<8x1xf32> to vector<8x592xf32>
    %8 = vector.broadcast %6 : vector<1x592xf32> to vector<8x592xf32>
    %9 = arith.mulf %7, %8 : vector<8x592xf32>
    %10 = arith.addf %4, %9 : vector<8x592xf32>
    %11 = vector.extract_strided_slice %3 {offsets = [0, 1], sizes = [8, 1], strides = [1, 1]} : vector<8x16xf32> to vector<8x1xf32>
    %12 = vector.extract_strided_slice %2 {offsets = [1, 0], sizes = [1, 592], strides = [1, 1]} : vector<16x592xf32> to vector<1x592xf32>
    %13 = vector.broadcast %11 : vector<8x1xf32> to vector<8x592xf32>
    %14 = vector.broadcast %12 : vector<1x592xf32> to vector<8x592xf32>
    %15 = arith.mulf %13, %14 : vector<8x592xf32>
    %16 = arith.addf %10, %15 : vector<8x592xf32>
    %17 = vector.extract_strided_slice %3 {offsets = [0, 2], sizes = [8, 1], strides = [1, 1]} : vector<8x16xf32> to vector<8x1xf32>
    %18 = vector.extract_strided_slice %2 {offsets = [2, 0], sizes = [1, 592], strides = [1, 1]} : vector<16x592xf32> to vector<1x592xf32>
    %19 = vector.broadcast %17 : vector<8x1xf32> to vector<8x592xf32>
    %20 = vector.broadcast %18 : vector<1x592xf32> to vector<8x592xf32>
    %21 = arith.mulf %19, %20 : vector<8x592xf32>
    %22 = arith.addf %16, %21 : vector<8x592xf32>
    %23 = vector.extract_strided_slice %3 {offsets = [0, 3], sizes = [8, 1], strides = [1, 1]} : vector<8x16xf32> to vector<8x1xf32>
    %24 = vector.extract_strided_slice %2 {offsets = [3, 0], sizes = [1, 592], strides = [1, 1]} : vector<16x592xf32> to vector<1x592xf32>
    %25 = vector.broadcast %23 : vector<8x1xf32> to vector<8x592xf32>
    %26 = vector.broadcast %24 : vector<1x592xf32> to vector<8x592xf32>
    %27 = arith.mulf %25, %26 : vector<8x592xf32>
    %28 = arith.addf %22, %27 : vector<8x592xf32>
    %29 = vector.extract_strided_slice %3 {offsets = [0, 4], sizes = [8, 1], strides = [1, 1]} : vector<8x16xf32> to vector<8x1xf32>
    %30 = vector.extract_strided_slice %2 {offsets = [4, 0], sizes = [1, 592], strides = [1, 1]} : vector<16x592xf32> to vector<1x592xf32>
    %31 = vector.broadcast %29 : vector<8x1xf32> to vector<8x592xf32>
    %32 = vector.broadcast %30 : vector<1x592xf32> to vector<8x592xf32>
    %33 = arith.mulf %31, %32 : vector<8x592xf32>
    %34 = arith.addf %28, %33 : vector<8x592xf32>
    %35 = vector.extract_strided_slice %3 {offsets = [0, 5], sizes = [8, 1], strides = [1, 1]} : vector<8x16xf32> to vector<8x1xf32>
    %36 = vector.extract_strided_slice %2 {offsets = [5, 0], sizes = [1, 592], strides = [1, 1]} : vector<16x592xf32> to vector<1x592xf32>
    %37 = vector.broadcast %35 : vector<8x1xf32> to vector<8x592xf32>
    %38 = vector.broadcast %36 : vector<1x592xf32> to vector<8x592xf32>
    %39 = arith.mulf %37, %38 : vector<8x592xf32>
    %40 = arith.addf %34, %39 : vector<8x592xf32>
    %41 = vector.extract_strided_slice %3 {offsets = [0, 6], sizes = [8, 1], strides = [1, 1]} : vector<8x16xf32> to vector<8x1xf32>
    %42 = vector.extract_strided_slice %2 {offsets = [6, 0], sizes = [1, 592], strides = [1, 1]} : vector<16x592xf32> to vector<1x592xf32>
    %43 = vector.broadcast %41 : vector<8x1xf32> to vector<8x592xf32>
    %44 = vector.broadcast %42 : vector<1x592xf32> to vector<8x592xf32>
    %45 = arith.mulf %43, %44 : vector<8x592xf32>
    %46 = arith.addf %40, %45 : vector<8x592xf32>
    %47 = vector.extract_strided_slice %3 {offsets = [0, 7], sizes = [8, 1], strides = [1, 1]} : vector<8x16xf32> to vector<8x1xf32>
    %48 = vector.extract_strided_slice %2 {offsets = [7, 0], sizes = [1, 592], strides = [1, 1]} : vector<16x592xf32> to vector<1x592xf32>
    %49 = vector.broadcast %47 : vector<8x1xf32> to vector<8x592xf32>
    %50 = vector.broadcast %48 : vector<1x592xf32> to vector<8x592xf32>
    %51 = arith.mulf %49, %50 : vector<8x592xf32>
    %52 = arith.addf %46, %51 : vector<8x592xf32>
    %53 = vector.extract_strided_slice %3 {offsets = [0, 8], sizes = [8, 1], strides = [1, 1]} : vector<8x16xf32> to vector<8x1xf32>
    %54 = vector.extract_strided_slice %2 {offsets = [8, 0], sizes = [1, 592], strides = [1, 1]} : vector<16x592xf32> to vector<1x592xf32>
    %55 = vector.broadcast %53 : vector<8x1xf32> to vector<8x592xf32>
    %56 = vector.broadcast %54 : vector<1x592xf32> to vector<8x592xf32>
    %57 = arith.mulf %55, %56 : vector<8x592xf32>
    %58 = arith.addf %52, %57 : vector<8x592xf32>
    %59 = vector.extract_strided_slice %3 {offsets = [0, 9], sizes = [8, 1], strides = [1, 1]} : vector<8x16xf32> to vector<8x1xf32>
    %60 = vector.extract_strided_slice %2 {offsets = [9, 0], sizes = [1, 592], strides = [1, 1]} : vector<16x592xf32> to vector<1x592xf32>
    %61 = vector.broadcast %59 : vector<8x1xf32> to vector<8x592xf32>
    %62 = vector.broadcast %60 : vector<1x592xf32> to vector<8x592xf32>
    %63 = arith.mulf %61, %62 : vector<8x592xf32>
    %64 = arith.addf %58, %63 : vector<8x592xf32>
    %65 = vector.extract_strided_slice %3 {offsets = [0, 10], sizes = [8, 1], strides = [1, 1]} : vector<8x16xf32> to vector<8x1xf32>
    %66 = vector.extract_strided_slice %2 {offsets = [10, 0], sizes = [1, 592], strides = [1, 1]} : vector<16x592xf32> to vector<1x592xf32>
    %67 = vector.broadcast %65 : vector<8x1xf32> to vector<8x592xf32>
    %68 = vector.broadcast %66 : vector<1x592xf32> to vector<8x592xf32>
    %69 = arith.mulf %67, %68 : vector<8x592xf32>
    %70 = arith.addf %64, %69 : vector<8x592xf32>
    %71 = vector.extract_strided_slice %3 {offsets = [0, 11], sizes = [8, 1], strides = [1, 1]} : vector<8x16xf32> to vector<8x1xf32>
    %72 = vector.extract_strided_slice %2 {offsets = [11, 0], sizes = [1, 592], strides = [1, 1]} : vector<16x592xf32> to vector<1x592xf32>
    %73 = vector.broadcast %71 : vector<8x1xf32> to vector<8x592xf32>
    %74 = vector.broadcast %72 : vector<1x592xf32> to vector<8x592xf32>
    %75 = arith.mulf %73, %74 : vector<8x592xf32>
    %76 = arith.addf %70, %75 : vector<8x592xf32>
    %77 = vector.extract_strided_slice %3 {offsets = [0, 12], sizes = [8, 1], strides = [1, 1]} : vector<8x16xf32> to vector<8x1xf32>
    %78 = vector.extract_strided_slice %2 {offsets = [12, 0], sizes = [1, 592], strides = [1, 1]} : vector<16x592xf32> to vector<1x592xf32>
    %79 = vector.broadcast %77 : vector<8x1xf32> to vector<8x592xf32>
    %80 = vector.broadcast %78 : vector<1x592xf32> to vector<8x592xf32>
    %81 = arith.mulf %79, %80 : vector<8x592xf32>
    %82 = arith.addf %76, %81 : vector<8x592xf32>
    %83 = vector.extract_strided_slice %3 {offsets = [0, 13], sizes = [8, 1], strides = [1, 1]} : vector<8x16xf32> to vector<8x1xf32>
    %84 = vector.extract_strided_slice %2 {offsets = [13, 0], sizes = [1, 592], strides = [1, 1]} : vector<16x592xf32> to vector<1x592xf32>
    %85 = vector.broadcast %83 : vector<8x1xf32> to vector<8x592xf32>
    %86 = vector.broadcast %84 : vector<1x592xf32> to vector<8x592xf32>
    %87 = arith.mulf %85, %86 : vector<8x592xf32>
    %88 = arith.addf %82, %87 : vector<8x592xf32>
    %89 = vector.extract_strided_slice %3 {offsets = [0, 14], sizes = [8, 1], strides = [1, 1]} : vector<8x16xf32> to vector<8x1xf32>
    %90 = vector.extract_strided_slice %2 {offsets = [14, 0], sizes = [1, 592], strides = [1, 1]} : vector<16x592xf32> to vector<1x592xf32>
    %91 = vector.broadcast %89 : vector<8x1xf32> to vector<8x592xf32>
    %92 = vector.broadcast %90 : vector<1x592xf32> to vector<8x592xf32>
    %93 = arith.mulf %91, %92 : vector<8x592xf32>
    %94 = arith.addf %88, %93 : vector<8x592xf32>
    %95 = vector.extract_strided_slice %3 {offsets = [0, 15], sizes = [8, 1], strides = [1, 1]} : vector<8x16xf32> to vector<8x1xf32>
    %96 = vector.extract_strided_slice %2 {offsets = [15, 0], sizes = [1, 592], strides = [1, 1]} : vector<16x592xf32> to vector<1x592xf32>
    %97 = vector.broadcast %95 : vector<8x1xf32> to vector<8x592xf32>
    %98 = vector.broadcast %96 : vector<1x592xf32> to vector<8x592xf32>
    %99 = arith.mulf %97, %98 : vector<8x592xf32>
    %100 = arith.addf %94, %99 : vector<8x592xf32>
    %101 = vector.extract_strided_slice %0 {offsets = [0, 0], sizes = [8, 1], strides = [1, 1]} : vector<48x45xf32> to vector<8x1xf32>
    %102 = vector.broadcast %101 : vector<8x1xf32> to vector<8x592xf32>
    %103 = arith.mulf %100, %102 : vector<8x592xf32>
    %104 = vector.extract_strided_slice %0 {offsets = [0, 1], sizes = [8, 1], strides = [1, 1]} : vector<48x45xf32> to vector<8x1xf32>
    %105 = vector.broadcast %104 : vector<8x1xf32> to vector<8x592xf32>
    %106 = arith.addf %103, %105 : vector<8x592xf32>
    %cst_6 = arith.constant 0.000000e+00 : f32
    %107 = vector.broadcast %cst_6 : f32 to vector<8x592xf32>
    %108 = arith.cmpf oge, %106, %107 : vector<8x592xf32>
    %109 = vector.extract_strided_slice %0 {offsets = [0, 2], sizes = [8, 1], strides = [1, 1]} : vector<48x45xf32> to vector<8x1xf32>
    %110 = vector.broadcast %109 : vector<8x1xf32> to vector<8x592xf32>
    %111 = arith.mulf %110, %106 : vector<8x592xf32>
    %112 = arith.select %108, %106, %111 : vector<8x592xi1>, vector<8x592xf32>
    %c0_7 = arith.constant 0 : index
    %c0_8 = arith.constant 0 : index
    %113 = vector.load %arg5[%c0_7, %c0_8] : memref<1x592xf32, #tpu.memory_space<vmem>>, vector<1x592xf32>
    %114 = vector.broadcast %113 : vector<1x592xf32> to vector<8x592xf32>
    %115 = arith.mulf %112, %114 : vector<8x592xf32>
    %c0_9 = arith.constant 0 : index
    %c0_10 = arith.constant 0 : index
    %116 = vector.load %arg7[%c0_9, %c0_10] : memref<8x592xf32, #tpu.memory_space<vmem>>, vector<8x592xf32>
    tpu.vector_store %arg7[%c0_9, %c0_10], %115 {strides = array<i32>} : memref<8x592xf32, #tpu.memory_space<vmem>>, vector<8x592xf32>,
    %cst_11 = arith.constant 0.000000e+00 : f32
    %117 = vector.broadcast %cst_11 : f32 to vector<16x96xf32>
    %c0_12 = arith.constant 0 : index
    %c0_13 = arith.constant 0 : index
    %c457 = arith.constant 457 : index
    %118 = vector.load %arg1[%c0_12, %c0_13, %c457] : memref<1x16x592xf32, #tpu.memory_space<vmem>>, vector<1x16x96xf32>
    %119 = vector.shape_cast %118 : vector<1x16x96xf32> to vector<16x96xf32>
    %120 = arith.addf %117, %119 : vector<16x96xf32>
    %c0_14 = arith.constant 0 : index
    %c0_15 = arith.constant 0 : index
    %c310 = arith.constant 310 : index
    %121 = vector.load %arg1[%c0_14, %c0_15, %c310] : memref<1x16x592xf32, #tpu.memory_space<vmem>>, vector<1x16x96xf32>
    %122 = vector.shape_cast %121 : vector<1x16x96xf32> to vector<16x96xf32>
    %123 = arith.addf %120, %122 : vector<16x96xf32>
    %c0_16 = arith.constant 0 : index
    %c0_17 = arith.constant 0 : index
    %c458 = arith.constant 458 : index
    %124 = vector.load %arg1[%c0_16, %c0_17, %c458] : memref<1x16x592xf32, #tpu.memory_space<vmem>>, vector<1x16x96xf32>
    %125 = vector.shape_cast %124 : vector<1x16x96xf32> to vector<16x96xf32>
    %126 = arith.addf %123, %125 : vector<16x96xf32>
    %c0_18 = arith.constant 0 : index
    %c0_19 = arith.constant 0 : index
    %c173 = arith.constant 173 : index
    %127 = vector.load %arg1[%c0_18, %c0_19, %c173] : memref<1x16x592xf32, #tpu.memory_space<vmem>>, vector<1x16x96xf32>
    %128 = vector.shape_cast %127 : vector<1x16x96xf32> to vector<16x96xf32>
    %129 = arith.addf %126, %128 : vector<16x96xf32>
    %c0_20 = arith.constant 0 : index
    %c0_21 = arith.constant 0 : index
    %c26 = arith.constant 26 : index
    %130 = vector.load %arg1[%c0_20, %c0_21, %c26] : memref<1x16x592xf32, #tpu.memory_space<vmem>>, vector<1x16x96xf32>
    %131 = vector.shape_cast %130 : vector<1x16x96xf32> to vector<16x96xf32>
    %132 = arith.addf %129, %131 : vector<16x96xf32>
    %c0_22 = arith.constant 0 : index
    %c0_23 = arith.constant 0 : index
    %c174 = arith.constant 174 : index
    %133 = vector.load %arg1[%c0_22, %c0_23, %c174] : memref<1x16x592xf32, #tpu.memory_space<vmem>>, vector<1x16x96xf32>
    %134 = vector.shape_cast %133 : vector<1x16x96xf32> to vector<16x96xf32>
    %135 = arith.addf %132, %134 : vector<16x96xf32>
    %c0_24 = arith.constant 0 : index
    %c0_25 = arith.constant 0 : index
    %c469 = arith.constant 469 : index
    %136 = vector.load %arg1[%c0_24, %c0_25, %c469] : memref<1x16x592xf32, #tpu.memory_space<vmem>>, vector<1x16x96xf32>
    %137 = vector.shape_cast %136 : vector<1x16x96xf32> to vector<16x96xf32>
    %138 = arith.addf %135, %137 : vector<16x96xf32>
    %c0_26 = arith.constant 0 : index
    %c0_27 = arith.constant 0 : index
    %c322 = arith.constant 322 : index
    %139 = vector.load %arg1[%c0_26, %c0_27, %c322] : memref<1x16x592xf32, #tpu.memory_space<vmem>>, vector<1x16x96xf32>
    %140 = vector.shape_cast %139 : vector<1x16x96xf32> to vector<16x96xf32>
    %141 = arith.addf %138, %140 : vector<16x96xf32>
    %c0_28 = arith.constant 0 : index
    %c0_29 = arith.constant 0 : index
    %c470 = arith.constant 470 : index
    %142 = vector.load %arg1[%c0_28, %c0_29, %c470] : memref<1x16x592xf32, #tpu.memory_space<vmem>>, vector<1x16x96xf32>
    %143 = vector.shape_cast %142 : vector<1x16x96xf32> to vector<16x96xf32>
    %144 = arith.addf %141, %143 : vector<16x96xf32>
    %cst_30 = arith.constant 0.111111112 : f32
    %145 = vector.broadcast %cst_30 : f32 to vector<16x96xf32>
    %146 = arith.mulf %144, %145 : vector<16x96xf32>
    %cst_31 = arith.constant 0.000000e+00 : f32
    %147 = vector.broadcast %cst_31 : f32 to vector<16x96xf32>
    %148 = arith.cmpf oge, %146, %147 : vector<16x96xf32>
    %149 = vector.extract_strided_slice %0 {offsets = [0, 8], sizes = [16, 1], strides = [1, 1]} : vector<48x45xf32> to vector<16x1xf32>
    %150 = vector.broadcast %149 : vector<16x1xf32> to vector<16x96xf32>
    %151 = arith.mulf %150, %146 : vector<16x96xf32>
    %152 = arith.select %148, %146, %151 : vector<16x96xi1>, vector<16x96xf32>
    %c0_32 = arith.constant 0 : index
    %c0_33 = arith.constant 0 : index
    %c0_34 = arith.constant 0 : index
    %153 = vector.load %arg6[%c0_32, %c0_33, %c0_34] : memref<1x48x96xf32, #tpu.memory_space<vmem>>, vector<1x16x96xf32>
    %154 = vector.shape_cast %153 : vector<1x16x96xf32> to vector<16x96xf32>
    %155 = vector.shape_cast %152 : vector<16x96xf32> to vector<1x16x96xf32>
    tpu.vector_store %arg6[%c0_32, %c0_33, %c0_34], %155 {strides = array<i32>} : memref<1x48x96xf32, #tpu.memory_space<vmem>>, vector<1x16x96xf32>,
    %cst_35 = arith.constant 0.000000e+00 : f32
    %156 = vector.broadcast %cst_35 : f32 to vector<8x96xf32>
    %cst_36 = arith.constant 0.000000e+00 : f32
    %157 = vector.broadcast %cst_36 : f32 to vector<8x96xf32>
    %158 = vector.extract_strided_slice %0 {offsets = [0, 9], sizes = [8, 1], strides = [1, 1]} : vector<48x45xf32> to vector<8x1xf32>
    %c0_37 = arith.constant 0 : index
    %c457_38 = arith.constant 457 : index
    %159 = vector.load %arg7[%c0_37, %c457_38] : memref<8x592xf32, #tpu.memory_space<vmem>>, vector<8x96xf32>
    %160 = vector.broadcast %158 : vector<8x1xf32> to vector<8x96xf32>
    %161 = arith.mulf %160, %159 : vector<8x96xf32>
    %162 = arith.addf %157, %161 : vector<8x96xf32>
    %163 = vector.extract_strided_slice %0 {offsets = [0, 10], sizes = [8, 1], strides = [1, 1]} : vector<48x45xf32> to vector<8x1xf32>
    %c0_39 = arith.constant 0 : index
    %c310_40 = arith.constant 310 : index
    %164 = vector.load %arg7[%c0_39, %c310_40] : memref<8x592xf32, #tpu.memory_space<vmem>>, vector<8x96xf32>
    %165 = vector.broadcast %163 : vector<8x1xf32> to vector<8x96xf32>
    %166 = arith.mulf %165, %164 : vector<8x96xf32>
    %167 = arith.addf %162, %166 : vector<8x96xf32>
    %168 = vector.extract_strided_slice %0 {offsets = [0, 11], sizes = [8, 1], strides = [1, 1]} : vector<48x45xf32> to vector<8x1xf32>
    %c0_41 = arith.constant 0 : index
    %c458_42 = arith.constant 458 : index
    %169 = vector.load %arg7[%c0_41, %c458_42] : memref<8x592xf32, #tpu.memory_space<vmem>>, vector<8x96xf32>
    %170 = vector.broadcast %168 : vector<8x1xf32> to vector<8x96xf32>
    %171 = arith.mulf %170, %169 : vector<8x96xf32>
    %172 = arith.addf %167, %171 : vector<8x96xf32>
    %173 = vector.extract_strided_slice %0 {offsets = [0, 12], sizes = [8, 1], strides = [1, 1]} : vector<48x45xf32> to vector<8x1xf32>
    %c0_43 = arith.constant 0 : index
    %c173_44 = arith.constant 173 : index
    %174 = vector.load %arg7[%c0_43, %c173_44] : memref<8x592xf32, #tpu.memory_space<vmem>>, vector<8x96xf32>
    %175 = vector.broadcast %173 : vector<8x1xf32> to vector<8x96xf32>
    %176 = arith.mulf %175, %174 : vector<8x96xf32>
    %177 = arith.addf %172, %176 : vector<8x96xf32>
    %178 = vector.extract_strided_slice %0 {offsets = [0, 13], sizes = [8, 1], strides = [1, 1]} : vector<48x45xf32> to vector<8x1xf32>
    %c0_45 = arith.constant 0 : index
    %c26_46 = arith.constant 26 : index
    %179 = vector.load %arg7[%c0_45, %c26_46] : memref<8x592xf32, #tpu.memory_space<vmem>>, vector<8x96xf32>
    %180 = vector.broadcast %178 : vector<8x1xf32> to vector<8x96xf32>
    %181 = arith.mulf %180, %179 : vector<8x96xf32>
    %182 = arith.addf %177, %181 : vector<8x96xf32>
    %183 = vector.extract_strided_slice %0 {offsets = [0, 14], sizes = [8, 1], strides = [1, 1]} : vector<48x45xf32> to vector<8x1xf32>
    %c0_47 = arith.constant 0 : index
    %c174_48 = arith.constant 174 : index
    %184 = vector.load %arg7[%c0_47, %c174_48] : memref<8x592xf32, #tpu.memory_space<vmem>>, vector<8x96xf32>
    %185 = vector.broadcast %183 : vector<8x1xf32> to vector<8x96xf32>
    %186 = arith.mulf %185, %184 : vector<8x96xf32>
    %187 = arith.addf %182, %186 : vector<8x96xf32>
    %188 = vector.extract_strided_slice %0 {offsets = [0, 15], sizes = [8, 1], strides = [1, 1]} : vector<48x45xf32> to vector<8x1xf32>
    %c0_49 = arith.constant 0 : index
    %c469_50 = arith.constant 469 : index
    %189 = vector.load %arg7[%c0_49, %c469_50] : memref<8x592xf32, #tpu.memory_space<vmem>>, vector<8x96xf32>
    %190 = vector.broadcast %188 : vector<8x1xf32> to vector<8x96xf32>
    %191 = arith.mulf %190, %189 : vector<8x96xf32>
    %192 = arith.addf %187, %191 : vector<8x96xf32>
    %193 = vector.extract_strided_slice %0 {offsets = [0, 16], sizes = [8, 1], strides = [1, 1]} : vector<48x45xf32> to vector<8x1xf32>
    %c0_51 = arith.constant 0 : index
    %c322_52 = arith.constant 322 : index
    %194 = vector.load %arg7[%c0_51, %c322_52] : memref<8x592xf32, #tpu.memory_space<vmem>>, vector<8x96xf32>
    %195 = vector.broadcast %193 : vector<8x1xf32> to vector<8x96xf32>
    %196 = arith.mulf %195, %194 : vector<8x96xf32>
    %197 = arith.addf %192, %196 : vector<8x96xf32>
    %198 = vector.extract_strided_slice %0 {offsets = [0, 17], sizes = [8, 1], strides = [1, 1]} : vector<48x45xf32> to vector<8x1xf32>
    %c0_53 = arith.constant 0 : index
    %c470_54 = arith.constant 470 : index
    %199 = vector.load %arg7[%c0_53, %c470_54] : memref<8x592xf32, #tpu.memory_space<vmem>>, vector<8x96xf32>
    %200 = vector.broadcast %198 : vector<8x1xf32> to vector<8x96xf32>
    %201 = arith.mulf %200, %199 : vector<8x96xf32>
    %202 = arith.addf %197, %201 : vector<8x96xf32>
    %203 = arith.addf %156, %202 : vector<8x96xf32>
    %c0_55 = arith.constant 0 : index
    %c0_56 = arith.constant 0 : index
    %204 = vector.load %arg8[%c0_55, %c0_56] : memref<32x96xf32, #tpu.memory_space<vmem>>, vector<8x96xf32>
    tpu.vector_store %arg8[%c0_55, %c0_56], %203 {strides = array<i32>} : memref<32x96xf32, #tpu.memory_space<vmem>>, vector<8x96xf32>,
    %cst_57 = arith.constant 0.000000e+00 : f32
    %205 = vector.broadcast %cst_57 : f32 to vector<8x96xf32>
    %206 = vector.extract_strided_slice %0 {offsets = [0, 18], sizes = [8, 1], strides = [1, 1]} : vector<48x45xf32> to vector<8x1xf32>
    %c0_58 = arith.constant 0 : index
    %c13 = arith.constant 13 : index
    %207 = vector.load %arg7[%c0_58, %c13] : memref<8x592xf32, #tpu.memory_space<vmem>>, vector<8x96xf32>
    %208 = vector.broadcast %206 : vector<8x1xf32> to vector<8x96xf32>
    %209 = arith.mulf %208, %207 : vector<8x96xf32>
    %210 = arith.addf %205, %209 : vector<8x96xf32>
    %211 = vector.extract_strided_slice %0 {offsets = [0, 19], sizes = [8, 1], strides = [1, 1]} : vector<48x45xf32> to vector<8x1xf32>
    %c0_59 = arith.constant 0 : index
    %c14 = arith.constant 14 : index
    %212 = vector.load %arg7[%c0_59, %c14] : memref<8x592xf32, #tpu.memory_space<vmem>>, vector<8x96xf32>
    %213 = vector.broadcast %211 : vector<8x1xf32> to vector<8x96xf32>
    %214 = arith.mulf %213, %212 : vector<8x96xf32>
    %215 = arith.addf %210, %214 : vector<8x96xf32>
    %216 = vector.extract_strided_slice %0 {offsets = [0, 20], sizes = [8, 1], strides = [1, 1]} : vector<48x45xf32> to vector<8x1xf32>
    %c0_60 = arith.constant 0 : index
    %c15 = arith.constant 15 : index
    %217 = vector.load %arg7[%c0_60, %c15] : memref<8x592xf32, #tpu.memory_space<vmem>>, vector<8x96xf32>
    %218 = vector.broadcast %216 : vector<8x1xf32> to vector<8x96xf32>
    %219 = arith.mulf %218, %217 : vector<8x96xf32>
    %220 = arith.addf %215, %219 : vector<8x96xf32>
    %221 = vector.extract_strided_slice %0 {offsets = [0, 21], sizes = [8, 1], strides = [1, 1]} : vector<48x45xf32> to vector<8x1xf32>
    %c0_61 = arith.constant 0 : index
    %c25 = arith.constant 25 : index
    %222 = vector.load %arg7[%c0_61, %c25] : memref<8x592xf32, #tpu.memory_space<vmem>>, vector<8x96xf32>
    %223 = vector.broadcast %221 : vector<8x1xf32> to vector<8x96xf32>
    %224 = arith.mulf %223, %222 : vector<8x96xf32>
    %225 = arith.addf %220, %224 : vector<8x96xf32>
    %226 = vector.extract_strided_slice %0 {offsets = [0, 22], sizes = [8, 1], strides = [1, 1]} : vector<48x45xf32> to vector<8x1xf32>
    %c0_62 = arith.constant 0 : index
    %c26_63 = arith.constant 26 : index
    %227 = vector.load %arg7[%c0_62, %c26_63] : memref<8x592xf32, #tpu.memory_space<vmem>>, vector<8x96xf32>
    %228 = vector.broadcast %226 : vector<8x1xf32> to vector<8x96xf32>
    %229 = arith.mulf %228, %227 : vector<8x96xf32>
    %230 = arith.addf %225, %229 : vector<8x96xf32>
    %231 = vector.extract_strided_slice %0 {offsets = [0, 23], sizes = [8, 1], strides = [1, 1]} : vector<48x45xf32> to vector<8x1xf32>
    %c0_64 = arith.constant 0 : index
    %c27 = arith.constant 27 : index
    %232 = vector.load %arg7[%c0_64, %c27] : memref<8x592xf32, #tpu.memory_space<vmem>>, vector<8x96xf32>
    %233 = vector.broadcast %231 : vector<8x1xf32> to vector<8x96xf32>
    %234 = arith.mulf %233, %232 : vector<8x96xf32>
    %235 = arith.addf %230, %234 : vector<8x96xf32>
    %236 = vector.extract_strided_slice %0 {offsets = [0, 24], sizes = [8, 1], strides = [1, 1]} : vector<48x45xf32> to vector<8x1xf32>
    %c0_65 = arith.constant 0 : index
    %c37 = arith.constant 37 : index
    %237 = vector.load %arg7[%c0_65, %c37] : memref<8x592xf32, #tpu.memory_space<vmem>>, vector<8x96xf32>
    %238 = vector.broadcast %236 : vector<8x1xf32> to vector<8x96xf32>
    %239 = arith.mulf %238, %237 : vector<8x96xf32>
    %240 = arith.addf %235, %239 : vector<8x96xf32>
    %241 = vector.extract_strided_slice %0 {offsets = [0, 25], sizes = [8, 1], strides = [1, 1]} : vector<48x45xf32> to vector<8x1xf32>
    %c0_66 = arith.constant 0 : index
    %c38 = arith.constant 38 : index
    %242 = vector.load %arg7[%c0_66, %c38] : memref<8x592xf32, #tpu.memory_space<vmem>>, vector<8x96xf32>
    %243 = vector.broadcast %241 : vector<8x1xf32> to vector<8x96xf32>
    %244 = arith.mulf %243, %242 : vector<8x96xf32>
    %245 = arith.addf %240, %244 : vector<8x96xf32>
    %246 = vector.extract_strided_slice %0 {offsets = [0, 26], sizes = [8, 1], strides = [1, 1]} : vector<48x45xf32> to vector<8x1xf32>
    %c0_67 = arith.constant 0 : index
    %c39 = arith.constant 39 : index
    %247 = vector.load %arg7[%c0_67, %c39] : memref<8x592xf32, #tpu.memory_space<vmem>>, vector<8x96xf32>
    %248 = vector.broadcast %246 : vector<8x1xf32> to vector<8x96xf32>
    %249 = arith.mulf %248, %247 : vector<8x96xf32>
    %250 = arith.addf %245, %249 : vector<8x96xf32>
    %251 = arith.addf %203, %250 : vector<8x96xf32>
    %c8 = arith.constant 8 : index
    %c0_68 = arith.constant 0 : index
    %252 = vector.load %arg8[%c8, %c0_68] : memref<32x96xf32, #tpu.memory_space<vmem>>, vector<8x96xf32>
    tpu.vector_store %arg8[%c8, %c0_68], %251 {strides = array<i32>} : memref<32x96xf32, #tpu.memory_space<vmem>>, vector<8x96xf32>,
    %cst_69 = arith.constant 0.000000e+00 : f32
    %253 = vector.broadcast %cst_69 : f32 to vector<8x96xf32>
    %254 = vector.extract_strided_slice %0 {offsets = [0, 27], sizes = [8, 1], strides = [1, 1]} : vector<48x45xf32> to vector<8x1xf32>
    %c0_70 = arith.constant 0 : index
    %c444 = arith.constant 444 : index
    %255 = vector.load %arg7[%c0_70, %c444] : memref<8x592xf32, #tpu.memory_space<vmem>>, vector<8x96xf32>
    %256 = vector.broadcast %254 : vector<8x1xf32> to vector<8x96xf32>
    %257 = arith.mulf %256, %255 : vector<8x96xf32>
    %258 = arith.addf %253, %257 : vector<8x96xf32>
    %259 = vector.extract_strided_slice %0 {offsets = [0, 28], sizes = [8, 1], strides = [1, 1]} : vector<48x45xf32> to vector<8x1xf32>
    %c0_71 = arith.constant 0 : index
    %c298 = arith.constant 298 : index
    %260 = vector.load %arg7[%c0_71, %c298] : memref<8x592xf32, #tpu.memory_space<vmem>>, vector<8x96xf32>
    %261 = vector.broadcast %259 : vector<8x1xf32> to vector<8x96xf32>
    %262 = arith.mulf %261, %260 : vector<8x96xf32>
    %263 = arith.addf %258, %262 : vector<8x96xf32>
    %264 = vector.extract_strided_slice %0 {offsets = [0, 29], sizes = [8, 1], strides = [1, 1]} : vector<48x45xf32> to vector<8x1xf32>
    %c0_72 = arith.constant 0 : index
    %c447 = arith.constant 447 : index
    %265 = vector.load %arg7[%c0_72, %c447] : memref<8x592xf32, #tpu.memory_space<vmem>>, vector<8x96xf32>
    %266 = vector.broadcast %264 : vector<8x1xf32> to vector<8x96xf32>
    %267 = arith.mulf %266, %265 : vector<8x96xf32>
    %268 = arith.addf %263, %267 : vector<8x96xf32>
    %269 = vector.extract_strided_slice %0 {offsets = [0, 30], sizes = [8, 1], strides = [1, 1]} : vector<48x45xf32> to vector<8x1xf32>
    %c0_73 = arith.constant 0 : index
    %c172 = arith.constant 172 : index
    %270 = vector.load %arg7[%c0_73, %c172] : memref<8x592xf32, #tpu.memory_space<vmem>>, vector<8x96xf32>
    %271 = vector.broadcast %269 : vector<8x1xf32> to vector<8x96xf32>
    %272 = arith.mulf %271, %270 : vector<8x96xf32>
    %273 = arith.addf %268, %272 : vector<8x96xf32>
    %274 = vector.extract_strided_slice %0 {offsets = [0, 31], sizes = [8, 1], strides = [1, 1]} : vector<48x45xf32> to vector<8x1xf32>
    %c0_74 = arith.constant 0 : index
    %c26_75 = arith.constant 26 : index
    %275 = vector.load %arg7[%c0_74, %c26_75] : memref<8x592xf32, #tpu.memory_space<vmem>>, vector<8x96xf32>
    %276 = vector.broadcast %274 : vector<8x1xf32> to vector<8x96xf32>
    %277 = arith.mulf %276, %275 : vector<8x96xf32>
    %278 = arith.addf %273, %277 : vector<8x96xf32>
    %279 = vector.extract_strided_slice %0 {offsets = [0, 32], sizes = [8, 1], strides = [1, 1]} : vector<48x45xf32> to vector<8x1xf32>
    %c0_76 = arith.constant 0 : index
    %c175 = arith.constant 175 : index
    %280 = vector.load %arg7[%c0_76, %c175] : memref<8x592xf32, #tpu.memory_space<vmem>>, vector<8x96xf32>
    %281 = vector.broadcast %279 : vector<8x1xf32> to vector<8x96xf32>
    %282 = arith.mulf %281, %280 : vector<8x96xf32>
    %283 = arith.addf %278, %282 : vector<8x96xf32>
    %284 = vector.extract_strided_slice %0 {offsets = [0, 33], sizes = [8, 1], strides = [1, 1]} : vector<48x45xf32> to vector<8x1xf32>
    %c0_77 = arith.constant 0 : index
    %c480 = arith.constant 480 : index
    %285 = vector.load %arg7[%c0_77, %c480] : memref<8x592xf32, #tpu.memory_space<vmem>>, vector<8x96xf32>
    %286 = vector.broadcast %284 : vector<8x1xf32> to vector<8x96xf32>
    %287 = arith.mulf %286, %285 : vector<8x96xf32>
    %288 = arith.addf %283, %287 : vector<8x96xf32>
    %289 = vector.extract_strided_slice %0 {offsets = [0, 34], sizes = [8, 1], strides = [1, 1]} : vector<48x45xf32> to vector<8x1xf32>
    %c0_78 = arith.constant 0 : index
    %c334 = arith.constant 334 : index
    %290 = vector.load %arg7[%c0_78, %c334] : memref<8x592xf32, #tpu.memory_space<vmem>>, vector<8x96xf32>
    %291 = vector.broadcast %289 : vector<8x1xf32> to vector<8x96xf32>
    %292 = arith.mulf %291, %290 : vector<8x96xf32>
    %293 = arith.addf %288, %292 : vector<8x96xf32>
    %294 = vector.extract_strided_slice %0 {offsets = [0, 35], sizes = [8, 1], strides = [1, 1]} : vector<48x45xf32> to vector<8x1xf32>
    %c0_79 = arith.constant 0 : index
    %c483 = arith.constant 483 : index
    %295 = vector.load %arg7[%c0_79, %c483] : memref<8x592xf32, #tpu.memory_space<vmem>>, vector<8x96xf32>
    %296 = vector.broadcast %294 : vector<8x1xf32> to vector<8x96xf32>
    %297 = arith.mulf %296, %295 : vector<8x96xf32>
    %298 = arith.addf %293, %297 : vector<8x96xf32>
    %299 = arith.addf %251, %298 : vector<8x96xf32>
    %c16 = arith.constant 16 : index
    %c0_80 = arith.constant 0 : index
    %300 = vector.load %arg8[%c16, %c0_80] : memref<32x96xf32, #tpu.memory_space<vmem>>, vector<8x96xf32>
    tpu.vector_store %arg8[%c16, %c0_80], %299 {strides = array<i32>} : memref<32x96xf32, #tpu.memory_space<vmem>>, vector<8x96xf32>,
    %cst_81 = arith.constant 0.000000e+00 : f32
    %301 = vector.broadcast %cst_81 : f32 to vector<8x96xf32>
    %302 = vector.extract_strided_slice %0 {offsets = [0, 36], sizes = [8, 1], strides = [1, 1]} : vector<48x45xf32> to vector<8x1xf32>
    %c0_82 = arith.constant 0 : index
    %c0_83 = arith.constant 0 : index
    %303 = vector.load %arg7[%c0_82, %c0_83] : memref<8x592xf32, #tpu.memory_space<vmem>>, vector<8x96xf32>
    %304 = vector.broadcast %302 : vector<8x1xf32> to vector<8x96xf32>
    %305 = arith.mulf %304, %303 : vector<8x96xf32>
    %306 = arith.addf %301, %305 : vector<8x96xf32>
    %307 = vector.extract_strided_slice %0 {offsets = [0, 37], sizes = [8, 1], strides = [1, 1]} : vector<48x45xf32> to vector<8x1xf32>
    %c0_84 = arith.constant 0 : index
    %c2 = arith.constant 2 : index
    %308 = vector.load %arg7[%c0_84, %c2] : memref<8x592xf32, #tpu.memory_space<vmem>>, vector<8x96xf32>
    %309 = vector.broadcast %307 : vector<8x1xf32> to vector<8x96xf32>
    %310 = arith.mulf %309, %308 : vector<8x96xf32>
    %311 = arith.addf %306, %310 : vector<8x96xf32>
    %312 = vector.extract_strided_slice %0 {offsets = [0, 38], sizes = [8, 1], strides = [1, 1]} : vector<48x45xf32> to vector<8x1xf32>
    %c0_85 = arith.constant 0 : index
    %c4 = arith.constant 4 : index
    %313 = vector.load %arg7[%c0_85, %c4] : memref<8x592xf32, #tpu.memory_space<vmem>>, vector<8x96xf32>
    %314 = vector.broadcast %312 : vector<8x1xf32> to vector<8x96xf32>
    %315 = arith.mulf %314, %313 : vector<8x96xf32>
    %316 = arith.addf %311, %315 : vector<8x96xf32>
    %317 = vector.extract_strided_slice %0 {offsets = [0, 39], sizes = [8, 1], strides = [1, 1]} : vector<48x45xf32> to vector<8x1xf32>
    %c0_86 = arith.constant 0 : index
    %c24 = arith.constant 24 : index
    %318 = vector.load %arg7[%c0_86, %c24] : memref<8x592xf32, #tpu.memory_space<vmem>>, vector<8x96xf32>
    %319 = vector.broadcast %317 : vector<8x1xf32> to vector<8x96xf32>
    %320 = arith.mulf %319, %318 : vector<8x96xf32>
    %321 = arith.addf %316, %320 : vector<8x96xf32>
    %322 = vector.extract_strided_slice %0 {offsets = [0, 40], sizes = [8, 1], strides = [1, 1]} : vector<48x45xf32> to vector<8x1xf32>
    %c0_87 = arith.constant 0 : index
    %c26_88 = arith.constant 26 : index
    %323 = vector.load %arg7[%c0_87, %c26_88] : memref<8x592xf32, #tpu.memory_space<vmem>>, vector<8x96xf32>
    %324 = vector.broadcast %322 : vector<8x1xf32> to vector<8x96xf32>
    %325 = arith.mulf %324, %323 : vector<8x96xf32>
    %326 = arith.addf %321, %325 : vector<8x96xf32>
    %327 = vector.extract_strided_slice %0 {offsets = [0, 41], sizes = [8, 1], strides = [1, 1]} : vector<48x45xf32> to vector<8x1xf32>
    %c0_89 = arith.constant 0 : index
    %c28 = arith.constant 28 : index
    %328 = vector.load %arg7[%c0_89, %c28] : memref<8x592xf32, #tpu.memory_space<vmem>>, vector<8x96xf32>
    %329 = vector.broadcast %327 : vector<8x1xf32> to vector<8x96xf32>
    %330 = arith.mulf %329, %328 : vector<8x96xf32>
    %331 = arith.addf %326, %330 : vector<8x96xf32>
    %332 = vector.extract_strided_slice %0 {offsets = [0, 42], sizes = [8, 1], strides = [1, 1]} : vector<48x45xf32> to vector<8x1xf32>
    %c0_90 = arith.constant 0 : index
    %c48 = arith.constant 48 : index
    %333 = vector.load %arg7[%c0_90, %c48] : memref<8x592xf32, #tpu.memory_space<vmem>>, vector<8x96xf32>
    %334 = vector.broadcast %332 : vector<8x1xf32> to vector<8x96xf32>
    %335 = arith.mulf %334, %333 : vector<8x96xf32>
    %336 = arith.addf %331, %335 : vector<8x96xf32>
    %337 = vector.extract_strided_slice %0 {offsets = [0, 43], sizes = [8, 1], strides = [1, 1]} : vector<48x45xf32> to vector<8x1xf32>
    %c0_91 = arith.constant 0 : index
    %c50 = arith.constant 50 : index
    %338 = vector.load %arg7[%c0_91, %c50] : memref<8x592xf32, #tpu.memory_space<vmem>>, vector<8x96xf32>
    %339 = vector.broadcast %337 : vector<8x1xf32> to vector<8x96xf32>
    %340 = arith.mulf %339, %338 : vector<8x96xf32>
    %341 = arith.addf %336, %340 : vector<8x96xf32>
    %342 = vector.extract_strided_slice %0 {offsets = [0, 44], sizes = [8, 1], strides = [1, 1]} : vector<48x45xf32> to vector<8x1xf32>
    %c0_92 = arith.constant 0 : index
    %c52 = arith.constant 52 : index
    %343 = vector.load %arg7[%c0_92, %c52] : memref<8x592xf32, #tpu.memory_space<vmem>>, vector<8x96xf32>
    %344 = vector.broadcast %342 : vector<8x1xf32> to vector<8x96xf32>
    %345 = arith.mulf %344, %343 : vector<8x96xf32>
    %346 = arith.addf %341, %345 : vector<8x96xf32>
    %347 = arith.addf %299, %346 : vector<8x96xf32>
    %c24_93 = arith.constant 24 : index
    %c0_94 = arith.constant 0 : index
    %348 = vector.load %arg8[%c24_93, %c0_94] : memref<32x96xf32, #tpu.memory_space<vmem>>, vector<8x96xf32>
    tpu.vector_store %arg8[%c24_93, %c0_94], %347 {strides = array<i32>} : memref<32x96xf32, #tpu.memory_space<vmem>>, vector<8x96xf32>,
    %c0_95 = arith.constant 0 : index
    %c0_96 = arith.constant 0 : index
    %349 = vector.load %arg8[%c0_95, %c0_96] : memref<32x96xf32, #tpu.memory_space<vmem>>, vector<32x96xf32>
    %350 = vector.extract_strided_slice %0 {offsets = [0, 3], sizes = [32, 1], strides = [1, 1]} : vector<48x45xf32> to vector<32x1xf32>
    %351 = vector.broadcast %350 : vector<32x1xf32> to vector<32x96xf32>
    %352 = arith.mulf %349, %351 : vector<32x96xf32>
    %353 = vector.extract_strided_slice %0 {offsets = [0, 4], sizes = [32, 1], strides = [1, 1]} : vector<48x45xf32> to vector<32x1xf32>
    %354 = vector.broadcast %353 : vector<32x1xf32> to vector<32x96xf32>
    %355 = arith.addf %352, %354 : vector<32x96xf32>
    %cst_97 = arith.constant 0.000000e+00 : f32
    %356 = vector.broadcast %cst_97 : f32 to vector<32x96xf32>
    %357 = arith.cmpf oge, %355, %356 : vector<32x96xf32>
    %358 = vector.extract_strided_slice %0 {offsets = [0, 5], sizes = [32, 1], strides = [1, 1]} : vector<48x45xf32> to vector<32x1xf32>
    %359 = vector.broadcast %358 : vector<32x1xf32> to vector<32x96xf32>
    %360 = arith.mulf %359, %355 : vector<32x96xf32>
    %361 = arith.select %357, %355, %360 : vector<32x96xi1>, vector<32x96xf32>
    %c0_98 = arith.constant 0 : index
    %c0_99 = arith.constant 0 : index
    %362 = vector.load %arg3[%c0_98, %c0_99] : memref<32x32xf32, #tpu.memory_space<vmem>>, vector<32x32xf32>
    %cst_100 = arith.constant 0.000000e+00 : f32
    %363 = vector.broadcast %cst_100 : f32 to vector<32x96xf32>
    %364 = vector.extract_strided_slice %362 {offsets = [0, 0], sizes = [32, 1], strides = [1, 1]} : vector<32x32xf32> to vector<32x1xf32>
    %365 = vector.extract_strided_slice %361 {offsets = [0, 0], sizes = [1, 96], strides = [1, 1]} : vector<32x96xf32> to vector<1x96xf32>
    %366 = vector.broadcast %364 : vector<32x1xf32> to vector<32x96xf32>
    %367 = vector.broadcast %365 : vector<1x96xf32> to vector<32x96xf32>
    %368 = arith.mulf %366, %367 : vector<32x96xf32>
    %369 = arith.addf %363, %368 : vector<32x96xf32>
    %370 = vector.extract_strided_slice %362 {offsets = [0, 1], sizes = [32, 1], strides = [1, 1]} : vector<32x32xf32> to vector<32x1xf32>
    %371 = vector.extract_strided_slice %361 {offsets = [1, 0], sizes = [1, 96], strides = [1, 1]} : vector<32x96xf32> to vector<1x96xf32>
    %372 = vector.broadcast %370 : vector<32x1xf32> to vector<32x96xf32>
    %373 = vector.broadcast %371 : vector<1x96xf32> to vector<32x96xf32>
    %374 = arith.mulf %372, %373 : vector<32x96xf32>
    %375 = arith.addf %369, %374 : vector<32x96xf32>
    %376 = vector.extract_strided_slice %362 {offsets = [0, 2], sizes = [32, 1], strides = [1, 1]} : vector<32x32xf32> to vector<32x1xf32>
    %377 = vector.extract_strided_slice %361 {offsets = [2, 0], sizes = [1, 96], strides = [1, 1]} : vector<32x96xf32> to vector<1x96xf32>
    %378 = vector.broadcast %376 : vector<32x1xf32> to vector<32x96xf32>
    %379 = vector.broadcast %377 : vector<1x96xf32> to vector<32x96xf32>
    %380 = arith.mulf %378, %379 : vector<32x96xf32>
    %381 = arith.addf %375, %380 : vector<32x96xf32>
    %382 = vector.extract_strided_slice %362 {offsets = [0, 3], sizes = [32, 1], strides = [1, 1]} : vector<32x32xf32> to vector<32x1xf32>
    %383 = vector.extract_strided_slice %361 {offsets = [3, 0], sizes = [1, 96], strides = [1, 1]} : vector<32x96xf32> to vector<1x96xf32>
    %384 = vector.broadcast %382 : vector<32x1xf32> to vector<32x96xf32>
    %385 = vector.broadcast %383 : vector<1x96xf32> to vector<32x96xf32>
    %386 = arith.mulf %384, %385 : vector<32x96xf32>
    %387 = arith.addf %381, %386 : vector<32x96xf32>
    %388 = vector.extract_strided_slice %362 {offsets = [0, 4], sizes = [32, 1], strides = [1, 1]} : vector<32x32xf32> to vector<32x1xf32>
    %389 = vector.extract_strided_slice %361 {offsets = [4, 0], sizes = [1, 96], strides = [1, 1]} : vector<32x96xf32> to vector<1x96xf32>
    %390 = vector.broadcast %388 : vector<32x1xf32> to vector<32x96xf32>
    %391 = vector.broadcast %389 : vector<1x96xf32> to vector<32x96xf32>
    %392 = arith.mulf %390, %391 : vector<32x96xf32>
    %393 = arith.addf %387, %392 : vector<32x96xf32>
    %394 = vector.extract_strided_slice %362 {offsets = [0, 5], sizes = [32, 1], strides = [1, 1]} : vector<32x32xf32> to vector<32x1xf32>
    %395 = vector.extract_strided_slice %361 {offsets = [5, 0], sizes = [1, 96], strides = [1, 1]} : vector<32x96xf32> to vector<1x96xf32>
    %396 = vector.broadcast %394 : vector<32x1xf32> to vector<32x96xf32>
    %397 = vector.broadcast %395 : vector<1x96xf32> to vector<32x96xf32>
    %398 = arith.mulf %396, %397 : vector<32x96xf32>
    %399 = arith.addf %393, %398 : vector<32x96xf32>
    %400 = vector.extract_strided_slice %362 {offsets = [0, 6], sizes = [32, 1], strides = [1, 1]} : vector<32x32xf32> to vector<32x1xf32>
    %401 = vector.extract_strided_slice %361 {offsets = [6, 0], sizes = [1, 96], strides = [1, 1]} : vector<32x96xf32> to vector<1x96xf32>
    %402 = vector.broadcast %400 : vector<32x1xf32> to vector<32x96xf32>
    %403 = vector.broadcast %401 : vector<1x96xf32> to vector<32x96xf32>
    %404 = arith.mulf %402, %403 : vector<32x96xf32>
    %405 = arith.addf %399, %404 : vector<32x96xf32>
    %406 = vector.extract_strided_slice %362 {offsets = [0, 7], sizes = [32, 1], strides = [1, 1]} : vector<32x32xf32> to vector<32x1xf32>
    %407 = vector.extract_strided_slice %361 {offsets = [7, 0], sizes = [1, 96], strides = [1, 1]} : vector<32x96xf32> to vector<1x96xf32>
    %408 = vector.broadcast %406 : vector<32x1xf32> to vector<32x96xf32>
    %409 = vector.broadcast %407 : vector<1x96xf32> to vector<32x96xf32>
    %410 = arith.mulf %408, %409 : vector<32x96xf32>
    %411 = arith.addf %405, %410 : vector<32x96xf32>
    %412 = vector.extract_strided_slice %362 {offsets = [0, 8], sizes = [32, 1], strides = [1, 1]} : vector<32x32xf32> to vector<32x1xf32>
    %413 = vector.extract_strided_slice %361 {offsets = [8, 0], sizes = [1, 96], strides = [1, 1]} : vector<32x96xf32> to vector<1x96xf32>
    %414 = vector.broadcast %412 : vector<32x1xf32> to vector<32x96xf32>
    %415 = vector.broadcast %413 : vector<1x96xf32> to vector<32x96xf32>
    %416 = arith.mulf %414, %415 : vector<32x96xf32>
    %417 = arith.addf %411, %416 : vector<32x96xf32>
    %418 = vector.extract_strided_slice %362 {offsets = [0, 9], sizes = [32, 1], strides = [1, 1]} : vector<32x32xf32> to vector<32x1xf32>
    %419 = vector.extract_strided_slice %361 {offsets = [9, 0], sizes = [1, 96], strides = [1, 1]} : vector<32x96xf32> to vector<1x96xf32>
    %420 = vector.broadcast %418 : vector<32x1xf32> to vector<32x96xf32>
    %421 = vector.broadcast %419 : vector<1x96xf32> to vector<32x96xf32>
    %422 = arith.mulf %420, %421 : vector<32x96xf32>
    %423 = arith.addf %417, %422 : vector<32x96xf32>
    %424 = vector.extract_strided_slice %362 {offsets = [0, 10], sizes = [32, 1], strides = [1, 1]} : vector<32x32xf32> to vector<32x1xf32>
    %425 = vector.extract_strided_slice %361 {offsets = [10, 0], sizes = [1, 96], strides = [1, 1]} : vector<32x96xf32> to vector<1x96xf32>
    %426 = vector.broadcast %424 : vector<32x1xf32> to vector<32x96xf32>
    %427 = vector.broadcast %425 : vector<1x96xf32> to vector<32x96xf32>
    %428 = arith.mulf %426, %427 : vector<32x96xf32>
    %429 = arith.addf %423, %428 : vector<32x96xf32>
    %430 = vector.extract_strided_slice %362 {offsets = [0, 11], sizes = [32, 1], strides = [1, 1]} : vector<32x32xf32> to vector<32x1xf32>
    %431 = vector.extract_strided_slice %361 {offsets = [11, 0], sizes = [1, 96], strides = [1, 1]} : vector<32x96xf32> to vector<1x96xf32>
    %432 = vector.broadcast %430 : vector<32x1xf32> to vector<32x96xf32>
    %433 = vector.broadcast %431 : vector<1x96xf32> to vector<32x96xf32>
    %434 = arith.mulf %432, %433 : vector<32x96xf32>
    %435 = arith.addf %429, %434 : vector<32x96xf32>
    %436 = vector.extract_strided_slice %362 {offsets = [0, 12], sizes = [32, 1], strides = [1, 1]} : vector<32x32xf32> to vector<32x1xf32>
    %437 = vector.extract_strided_slice %361 {offsets = [12, 0], sizes = [1, 96], strides = [1, 1]} : vector<32x96xf32> to vector<1x96xf32>
    %438 = vector.broadcast %436 : vector<32x1xf32> to vector<32x96xf32>
    %439 = vector.broadcast %437 : vector<1x96xf32> to vector<32x96xf32>
    %440 = arith.mulf %438, %439 : vector<32x96xf32>
    %441 = arith.addf %435, %440 : vector<32x96xf32>
    %442 = vector.extract_strided_slice %362 {offsets = [0, 13], sizes = [32, 1], strides = [1, 1]} : vector<32x32xf32> to vector<32x1xf32>
    %443 = vector.extract_strided_slice %361 {offsets = [13, 0], sizes = [1, 96], strides = [1, 1]} : vector<32x96xf32> to vector<1x96xf32>
    %444 = vector.broadcast %442 : vector<32x1xf32> to vector<32x96xf32>
    %445 = vector.broadcast %443 : vector<1x96xf32> to vector<32x96xf32>
    %446 = arith.mulf %444, %445 : vector<32x96xf32>
    %447 = arith.addf %441, %446 : vector<32x96xf32>
    %448 = vector.extract_strided_slice %362 {offsets = [0, 14], sizes = [32, 1], strides = [1, 1]} : vector<32x32xf32> to vector<32x1xf32>
    %449 = vector.extract_strided_slice %361 {offsets = [14, 0], sizes = [1, 96], strides = [1, 1]} : vector<32x96xf32> to vector<1x96xf32>
    %450 = vector.broadcast %448 : vector<32x1xf32> to vector<32x96xf32>
    %451 = vector.broadcast %449 : vector<1x96xf32> to vector<32x96xf32>
    %452 = arith.mulf %450, %451 : vector<32x96xf32>
    %453 = arith.addf %447, %452 : vector<32x96xf32>
    %454 = vector.extract_strided_slice %362 {offsets = [0, 15], sizes = [32, 1], strides = [1, 1]} : vector<32x32xf32> to vector<32x1xf32>
    %455 = vector.extract_strided_slice %361 {offsets = [15, 0], sizes = [1, 96], strides = [1, 1]} : vector<32x96xf32> to vector<1x96xf32>
    %456 = vector.broadcast %454 : vector<32x1xf32> to vector<32x96xf32>
    %457 = vector.broadcast %455 : vector<1x96xf32> to vector<32x96xf32>
    %458 = arith.mulf %456, %457 : vector<32x96xf32>
    %459 = arith.addf %453, %458 : vector<32x96xf32>
    %460 = vector.extract_strided_slice %362 {offsets = [0, 16], sizes = [32, 1], strides = [1, 1]} : vector<32x32xf32> to vector<32x1xf32>
    %461 = vector.extract_strided_slice %361 {offsets = [16, 0], sizes = [1, 96], strides = [1, 1]} : vector<32x96xf32> to vector<1x96xf32>
    %462 = vector.broadcast %460 : vector<32x1xf32> to vector<32x96xf32>
    %463 = vector.broadcast %461 : vector<1x96xf32> to vector<32x96xf32>
    %464 = arith.mulf %462, %463 : vector<32x96xf32>
    %465 = arith.addf %459, %464 : vector<32x96xf32>
    %466 = vector.extract_strided_slice %362 {offsets = [0, 17], sizes = [32, 1], strides = [1, 1]} : vector<32x32xf32> to vector<32x1xf32>
    %467 = vector.extract_strided_slice %361 {offsets = [17, 0], sizes = [1, 96], strides = [1, 1]} : vector<32x96xf32> to vector<1x96xf32>
    %468 = vector.broadcast %466 : vector<32x1xf32> to vector<32x96xf32>
    %469 = vector.broadcast %467 : vector<1x96xf32> to vector<32x96xf32>
    %470 = arith.mulf %468, %469 : vector<32x96xf32>
    %471 = arith.addf %465, %470 : vector<32x96xf32>
    %472 = vector.extract_strided_slice %362 {offsets = [0, 18], sizes = [32, 1], strides = [1, 1]} : vector<32x32xf32> to vector<32x1xf32>
    %473 = vector.extract_strided_slice %361 {offsets = [18, 0], sizes = [1, 96], strides = [1, 1]} : vector<32x96xf32> to vector<1x96xf32>
    %474 = vector.broadcast %472 : vector<32x1xf32> to vector<32x96xf32>
    %475 = vector.broadcast %473 : vector<1x96xf32> to vector<32x96xf32>
    %476 = arith.mulf %474, %475 : vector<32x96xf32>
    %477 = arith.addf %471, %476 : vector<32x96xf32>
    %478 = vector.extract_strided_slice %362 {offsets = [0, 19], sizes = [32, 1], strides = [1, 1]} : vector<32x32xf32> to vector<32x1xf32>
    %479 = vector.extract_strided_slice %361 {offsets = [19, 0], sizes = [1, 96], strides = [1, 1]} : vector<32x96xf32> to vector<1x96xf32>
    %480 = vector.broadcast %478 : vector<32x1xf32> to vector<32x96xf32>
    %481 = vector.broadcast %479 : vector<1x96xf32> to vector<32x96xf32>
    %482 = arith.mulf %480, %481 : vector<32x96xf32>
    %483 = arith.addf %477, %482 : vector<32x96xf32>
    %484 = vector.extract_strided_slice %362 {offsets = [0, 20], sizes = [32, 1], strides = [1, 1]} : vector<32x32xf32> to vector<32x1xf32>
    %485 = vector.extract_strided_slice %361 {offsets = [20, 0], sizes = [1, 96], strides = [1, 1]} : vector<32x96xf32> to vector<1x96xf32>
    %486 = vector.broadcast %484 : vector<32x1xf32> to vector<32x96xf32>
    %487 = vector.broadcast %485 : vector<1x96xf32> to vector<32x96xf32>
    %488 = arith.mulf %486, %487 : vector<32x96xf32>
    %489 = arith.addf %483, %488 : vector<32x96xf32>
    %490 = vector.extract_strided_slice %362 {offsets = [0, 21], sizes = [32, 1], strides = [1, 1]} : vector<32x32xf32> to vector<32x1xf32>
    %491 = vector.extract_strided_slice %361 {offsets = [21, 0], sizes = [1, 96], strides = [1, 1]} : vector<32x96xf32> to vector<1x96xf32>
    %492 = vector.broadcast %490 : vector<32x1xf32> to vector<32x96xf32>
    %493 = vector.broadcast %491 : vector<1x96xf32> to vector<32x96xf32>
    %494 = arith.mulf %492, %493 : vector<32x96xf32>
    %495 = arith.addf %489, %494 : vector<32x96xf32>
    %496 = vector.extract_strided_slice %362 {offsets = [0, 22], sizes = [32, 1], strides = [1, 1]} : vector<32x32xf32> to vector<32x1xf32>
    %497 = vector.extract_strided_slice %361 {offsets = [22, 0], sizes = [1, 96], strides = [1, 1]} : vector<32x96xf32> to vector<1x96xf32>
    %498 = vector.broadcast %496 : vector<32x1xf32> to vector<32x96xf32>
    %499 = vector.broadcast %497 : vector<1x96xf32> to vector<32x96xf32>
    %500 = arith.mulf %498, %499 : vector<32x96xf32>
    %501 = arith.addf %495, %500 : vector<32x96xf32>
    %502 = vector.extract_strided_slice %362 {offsets = [0, 23], sizes = [32, 1], strides = [1, 1]} : vector<32x32xf32> to vector<32x1xf32>
    %503 = vector.extract_strided_slice %361 {offsets = [23, 0], sizes = [1, 96], strides = [1, 1]} : vector<32x96xf32> to vector<1x96xf32>
    %504 = vector.broadcast %502 : vector<32x1xf32> to vector<32x96xf32>
    %505 = vector.broadcast %503 : vector<1x96xf32> to vector<32x96xf32>
    %506 = arith.mulf %504, %505 : vector<32x96xf32>
    %507 = arith.addf %501, %506 : vector<32x96xf32>
    %508 = vector.extract_strided_slice %362 {offsets = [0, 24], sizes = [32, 1], strides = [1, 1]} : vector<32x32xf32> to vector<32x1xf32>
    %509 = vector.extract_strided_slice %361 {offsets = [24, 0], sizes = [1, 96], strides = [1, 1]} : vector<32x96xf32> to vector<1x96xf32>
    %510 = vector.broadcast %508 : vector<32x1xf32> to vector<32x96xf32>
    %511 = vector.broadcast %509 : vector<1x96xf32> to vector<32x96xf32>
    %512 = arith.mulf %510, %511 : vector<32x96xf32>
    %513 = arith.addf %507, %512 : vector<32x96xf32>
    %514 = vector.extract_strided_slice %362 {offsets = [0, 25], sizes = [32, 1], strides = [1, 1]} : vector<32x32xf32> to vector<32x1xf32>
    %515 = vector.extract_strided_slice %361 {offsets = [25, 0], sizes = [1, 96], strides = [1, 1]} : vector<32x96xf32> to vector<1x96xf32>
    %516 = vector.broadcast %514 : vector<32x1xf32> to vector<32x96xf32>
    %517 = vector.broadcast %515 : vector<1x96xf32> to vector<32x96xf32>
    %518 = arith.mulf %516, %517 : vector<32x96xf32>
    %519 = arith.addf %513, %518 : vector<32x96xf32>
    %520 = vector.extract_strided_slice %362 {offsets = [0, 26], sizes = [32, 1], strides = [1, 1]} : vector<32x32xf32> to vector<32x1xf32>
    %521 = vector.extract_strided_slice %361 {offsets = [26, 0], sizes = [1, 96], strides = [1, 1]} : vector<32x96xf32> to vector<1x96xf32>
    %522 = vector.broadcast %520 : vector<32x1xf32> to vector<32x96xf32>
    %523 = vector.broadcast %521 : vector<1x96xf32> to vector<32x96xf32>
    %524 = arith.mulf %522, %523 : vector<32x96xf32>
    %525 = arith.addf %519, %524 : vector<32x96xf32>
    %526 = vector.extract_strided_slice %362 {offsets = [0, 27], sizes = [32, 1], strides = [1, 1]} : vector<32x32xf32> to vector<32x1xf32>
    %527 = vector.extract_strided_slice %361 {offsets = [27, 0], sizes = [1, 96], strides = [1, 1]} : vector<32x96xf32> to vector<1x96xf32>
    %528 = vector.broadcast %526 : vector<32x1xf32> to vector<32x96xf32>
    %529 = vector.broadcast %527 : vector<1x96xf32> to vector<32x96xf32>
    %530 = arith.mulf %528, %529 : vector<32x96xf32>
    %531 = arith.addf %525, %530 : vector<32x96xf32>
    %532 = vector.extract_strided_slice %362 {offsets = [0, 28], sizes = [32, 1], strides = [1, 1]} : vector<32x32xf32> to vector<32x1xf32>
    %533 = vector.extract_strided_slice %361 {offsets = [28, 0], sizes = [1, 96], strides = [1, 1]} : vector<32x96xf32> to vector<1x96xf32>
    %534 = vector.broadcast %532 : vector<32x1xf32> to vector<32x96xf32>
    %535 = vector.broadcast %533 : vector<1x96xf32> to vector<32x96xf32>
    %536 = arith.mulf %534, %535 : vector<32x96xf32>
    %537 = arith.addf %531, %536 : vector<32x96xf32>
    %538 = vector.extract_strided_slice %362 {offsets = [0, 29], sizes = [32, 1], strides = [1, 1]} : vector<32x32xf32> to vector<32x1xf32>
    %539 = vector.extract_strided_slice %361 {offsets = [29, 0], sizes = [1, 96], strides = [1, 1]} : vector<32x96xf32> to vector<1x96xf32>
    %540 = vector.broadcast %538 : vector<32x1xf32> to vector<32x96xf32>
    %541 = vector.broadcast %539 : vector<1x96xf32> to vector<32x96xf32>
    %542 = arith.mulf %540, %541 : vector<32x96xf32>
    %543 = arith.addf %537, %542 : vector<32x96xf32>
    %544 = vector.extract_strided_slice %362 {offsets = [0, 30], sizes = [32, 1], strides = [1, 1]} : vector<32x32xf32> to vector<32x1xf32>
    %545 = vector.extract_strided_slice %361 {offsets = [30, 0], sizes = [1, 96], strides = [1, 1]} : vector<32x96xf32> to vector<1x96xf32>
    %546 = vector.broadcast %544 : vector<32x1xf32> to vector<32x96xf32>
    %547 = vector.broadcast %545 : vector<1x96xf32> to vector<32x96xf32>
    %548 = arith.mulf %546, %547 : vector<32x96xf32>
    %549 = arith.addf %543, %548 : vector<32x96xf32>
    %550 = vector.extract_strided_slice %362 {offsets = [0, 31], sizes = [32, 1], strides = [1, 1]} : vector<32x32xf32> to vector<32x1xf32>
    %551 = vector.extract_strided_slice %361 {offsets = [31, 0], sizes = [1, 96], strides = [1, 1]} : vector<32x96xf32> to vector<1x96xf32>
    %552 = vector.broadcast %550 : vector<32x1xf32> to vector<32x96xf32>
    %553 = vector.broadcast %551 : vector<1x96xf32> to vector<32x96xf32>
    %554 = arith.mulf %552, %553 : vector<32x96xf32>
    %555 = arith.addf %549, %554 : vector<32x96xf32>
    %556 = vector.extract_strided_slice %0 {offsets = [0, 6], sizes = [32, 1], strides = [1, 1]} : vector<48x45xf32> to vector<32x1xf32>
    %557 = vector.broadcast %556 : vector<32x1xf32> to vector<32x96xf32>
    %558 = arith.mulf %555, %557 : vector<32x96xf32>
    %559 = vector.extract_strided_slice %0 {offsets = [0, 7], sizes = [32, 1], strides = [1, 1]} : vector<48x45xf32> to vector<32x1xf32>
    %560 = vector.broadcast %559 : vector<32x1xf32> to vector<32x96xf32>
    %561 = arith.addf %558, %560 : vector<32x96xf32>
    %562 = vector.extract_strided_slice %0 {offsets = [16, 8], sizes = [32, 1], strides = [1, 1]} : vector<48x45xf32> to vector<32x1xf32>
    %cst_101 = arith.constant 0.000000e+00 : f32
    %563 = vector.broadcast %cst_101 : f32 to vector<32x96xf32>
    %564 = arith.cmpf oge, %561, %563 : vector<32x96xf32>
    %565 = vector.broadcast %562 : vector<32x1xf32> to vector<32x96xf32>
    %566 = arith.mulf %565, %561 : vector<32x96xf32>
    %567 = arith.select %564, %561, %566 : vector<32x96xi1>, vector<32x96xf32>
    %c0_102 = arith.constant 0 : index
    %c16_103 = arith.constant 16 : index
    %c0_104 = arith.constant 0 : index
    %568 = vector.load %arg6[%c0_102, %c16_103, %c0_104] : memref<1x48x96xf32, #tpu.memory_space<vmem>>, vector<1x32x96xf32>
    %569 = vector.shape_cast %568 : vector<1x32x96xf32> to vector<32x96xf32>
    %570 = vector.shape_cast %567 : vector<32x96xf32> to vector<1x32x96xf32>
    tpu.vector_store %arg6[%c0_102, %c16_103, %c0_104], %570 {strides = array<i32>} : memref<1x48x96xf32, #tpu.memory_space<vmem>>, vector<1x32x96xf32>,
    return
  }
  func.func @transform_0(%arg0: i32) -> (i32, i32, i32) {
    %c0_i32 = arith.constant 0 : i32
    %c0_i32_0 = arith.constant 0 : i32
    %c0_i32_1 = arith.constant 0 : i32
    return %arg0, %c0_i32, %c0_i32_0 : i32, i32, i32
  }
  func.func @transform_1(%arg0: i32) -> (i32, i32) {
    %c0_i32 = arith.constant 0 : i32
    %c0_i32_0 = arith.constant 0 : i32
    %c0_i32_1 = arith.constant 0 : i32
    return %c0_i32, %c0_i32_0 : i32, i32
  }
  func.func @transform_2(%arg0: i32) -> (i32, i32) {
    %c0_i32 = arith.constant 0 : i32
    %c0_i32_0 = arith.constant 0 : i32
    %c0_i32_1 = arith.constant 0 : i32
    return %c0_i32, %c0_i32_0 : i32, i32
  }
  func.func @transform_3(%arg0: i32) -> (i32, i32) {
    %c0_i32 = arith.constant 0 : i32
    %c0_i32_0 = arith.constant 0 : i32
    %c0_i32_1 = arith.constant 0 : i32
    return %c0_i32, %c0_i32_0 : i32, i32
  }
  func.func @transform_4(%arg0: i32) -> (i32, i32) {
    %c0_i32 = arith.constant 0 : i32
    %c0_i32_0 = arith.constant 0 : i32
    %c0_i32_1 = arith.constant 0 : i32
    return %c0_i32, %c0_i32_0 : i32, i32
  }
  func.func @transform_5(%arg0: i32) -> (i32, i32, i32) {
    %c0_i32 = arith.constant 0 : i32
    %c0_i32_0 = arith.constant 0 : i32
    %c0_i32_1 = arith.constant 0 : i32
    return %arg0, %c0_i32, %c0_i32_0 : i32, i32, i32
  }
}

</mosaic_0001>

<bundles_post_ra>
// kernel: tile.8
= control target key start
LH: loop header
LB: loop body
LE: loop exit
PB: predicated region body
PF: predicated region fallthrough
CT: control target
= control target key end

     0   :  { %s34_s0 = inlined_call_operand.vmem [shape: f32[148], index: 0, kind: input, shape index: {}]   ;;  %s35_s1 = inlined_call_operand.vmem [shape: f32[4,148], index: 1, kind: output, shape index: {}]  }
   0x1   :  { %v4_v0 = vld [vmem:[%s34_s0] ss:$0 sm:$0xff]  ;;  %v10_v1 = vld [vmem:[%s34_s0 + $0x1] ss:$0 sm:$0xff] }
   0x2   :  { %5 = vst [vmem:[%s35_s1] sm:$0xf] %v4_v0  ;;  %11 = vst [vmem:[%s35_s1 + $0x4] sm:$0xf] %v10_v1 }

// kernel: tile.9
= control target key start
LH: loop header
LB: loop body
LE: loop exit
PB: predicated region body
PF: predicated region fallthrough
CT: control target
= control target key end

     0   :  { %s186_s0 = inlined_call_operand.vmem [shape: f32[4,148], index: 0, kind: input, shape index: {}]   ;;  %s187_s1 = inlined_call_operand.hbm [shape: f32[1,592], index: 1, kind: output, shape index: {}]  }
   0x1   :  { %v9_v0 = vld [vmem:[%s186_s0] sm:$0xf]  ;;  %v123_v1 = vld [vmem:[%s186_s0 + $0x4] sm:$0xf] }
   0x2   :  { %10 = vst [vmem:[#allocation3] sm:$0xf] %v9_v0  ;;  %8 = vst [vmem:[#allocation3 + $0x8] sm:$0xf] %v123_v1 }
   0x3   :  { %2 = vsyncpa [#allocation1], 0  ;;  %vm22_vm0 = vcmask 556032   ;;  %vm43_vm1 = vcmask 719872   ;;  %s152_s0 = smov 60   ;;  %vm13_vm2 = vcmask 162816  }
   0x4   :  { %vm64_vm3 = vcmask 883712   ;;  %s153_s10 = smov 40   ;;  %s154_s11 = smov 20   ;;  %vm36_vm4 = vcmask 1048032   ;;  %vm26_vm5 = vcmask 490496   ;;  %vm29_vm6 = vcmask 654816  }
   0x5   :  { %vm57_vm7 = vcmask 1047872   ;;  %vm47_vm8 = vcmask 326656   ;;  %vm50_vm9 = vcmask 490816   ;;  %vm71_vm10 = vcmask 326816   ;;  %s155_s12 = smov [#allocation0]  }
   0x6   :  { %vm78_vm11 = vcmask 1047712   ;;  %s114_s13 = sshll.u32 %s155_s12, 4  ;;  %s115_s13 = int_to_ptr.vmem [resolvable:$true] %s114_s13 }
   0x7   :  { %s128_s14 = scalar_lea.vmem %s115_s13, 80  ;;  %s132_s15 = scalar_lea.vmem %s115_s13, 96 }
   0x8   :  { %p129_p0 = scmp.ne.s32.totalorder %s115_s13, %s128_s14  ;;  %p133_p1 = scmp.lt.s32.totalorder %s115_s13, %s115_s13 }
   0x9   :  { %v33_v2 = vld [vmem:[#allocation3 + $0x3] sm:$0x1]   ;;  %v21_v4 = vld [vmem:[#allocation3 + $0xb] sm:$0x1]   ;;  %v40_v6 = vld [vmem:[#allocation3 + $0x2] sm:$0x1]   ;;  %p134_p2 = scmp.lt.s32.totalorder %s132_s15, %s128_s14 }
   0xa   :  { %v19_v3 = vld [vmem:[#allocation3 + $0x3] sm:$0x1]   ;;  %34 = vrot.lane.b32.xlu0 %v33_v2, %s152_s0  ;;  %v42_v7 = vld [vmem:[#allocation3 + $0xa] sm:$0x1]   ;;  %v54_v8 = vld [vmem:[#allocation3 + $0x2] sm:$0x1]  }
   0xb   :  { %v23_v5 = vsel %vm22_vm0, %v21_v4, %v19_v3  ;;  %v61_v9 = vld [vmem:[#allocation3 + $0x1] sm:$0x1]   ;;  %v44_v10 = vsel %vm43_vm1, %v42_v7, %v40_v6  ;;  %v63_v11 = vld [vmem:[#allocation3 + $0x9] sm:$0x1]   ;;  %v12_v12 = vld [vmem:[#allocation3 + $0x8] sm:$0x1]   ;;  %p135_p3 = por %p134_p2, %p133_p1 }
   0xc   :  { %24 = vrot.lane.b32.xlu1 %v23_v5, %s152_s0  ;;  %v16_v13 = vld [vmem:[#allocation3] sm:$0x1]   ;;  %15 = vst.msk [vmem:[#allocation2 + $0x8] sm:$0x1] %vm13_vm2, %v12_v12   ;;  %v65_v14 = vsel %vm64_vm3, %v63_v11, %v61_v9  ;;  %v75_v15 = vld [vmem:[#allocation3 + $0x1] sm:$0x1]  }
   0xd   :  { %17 = vst [vmem:[#allocation2] sm:$0x1] %v16_v13   ;;  %p136_p4 = pnand %p135_p3, %p129_p0 }
   0xe   :  { %55 = vrot.lane.b32.xlu0 %v54_v8, %s153_s10 }
  0x10   :  { %45 = vrot.lane.b32.xlu1 %v44_v10, %s153_s10 }
  0x12   :  { %66 = vrot.lane.b32.xlu0 %v65_v14, %s154_s11 }
  0x14   :  { %76 = vrot.lane.b32.xlu1 %v75_v15, %s154_s11  ;;  %v84_v16 = vld [vmem:[#allocation2] sm:$0x1] }
  0x15   :  { %86 = vst [vmem:[#allocation0] sm:$0x1] %v84_v16 }
  0x7c   :  { %v35_v17 = vpop.permute.xlu0 %34  }
  0x7d   :  { %38 = vst.msk [vmem:[#allocation2 + $0x18] sm:$0x1] %vm36_vm4, %v35_v17  }
  0x7e   :  { %v25_v18 = vpop.permute.xlu1 %24  }
  0x7f   :  { %28 = vst.msk [vmem:[#allocation2 + $0x20] sm:$0x1] %vm26_vm5, %v25_v18  }
  0x80   :  { %31 = vst.msk [vmem:[#allocation2 + $0x20] sm:$0x1] %vm29_vm6, %v25_v18   ;;  %v56_v19 = vpop.permute.xlu0 %55  }
  0x81   :  { %59 = vst.msk [vmem:[#allocation2 + $0x10] sm:$0x1] %vm57_vm7, %v56_v19  }
  0x82   :  { %v46_v20 = vpop.permute.xlu1 %45  }
  0x83   :  { %49 = vst.msk [vmem:[#allocation2 + $0x18] sm:$0x1] %vm47_vm8, %v46_v20  }
  0x84   :  { %52 = vst.msk [vmem:[#allocation2 + $0x18] sm:$0x1] %vm50_vm9, %v46_v20   ;;  %v67_v21 = vpop.permute.xlu0 %66  }
  0x85   :  { %70 = vst.msk [vmem:[#allocation2 + $0x10] sm:$0x1] %vm13_vm2, %v67_v21  }
  0x86   :  { %v77_v22 = vpop.permute.xlu1 %76   ;;  %73 = vst.msk [vmem:[#allocation2 + $0x10] sm:$0x1] %vm71_vm10, %v67_v21  }
  0x87   :  { %v105_v23 = vld [vmem:[#allocation2 + $0x20] sm:$0x1]  ;;  %80 = vst.msk [vmem:[#allocation2 + $0x8] sm:$0x1] %vm78_vm11, %v77_v22  }
  0x88   :  { %109 = vst [vmem:[#allocation0 + $0x4] sm:$0x1] %v105_v23 }
  0x8b   :  { %v99_v24 = vld [vmem:[#allocation2 + $0x18] sm:$0x1] }
  0x8c   :  { %103 = vst [vmem:[#allocation0 + $0x3] sm:$0x1] %v99_v24 }
  0x8d   :  { %v93_v25 = vld [vmem:[#allocation2 + $0x10] sm:$0x1] }
  0x8e   :  { %v88_v26 = vld [vmem:[#allocation2 + $0x8] sm:$0x1]  ;;  %97 = vst [vmem:[#allocation0 + $0x2] sm:$0x1] %v93_v25 }
  0x8f   :  { %91 = vst [vmem:[#allocation0 + $0x1] sm:$0x1] %v88_v26 }
  0x90   :  { %139 = shalt.err (!%p136_p4)
}
  0x91   :  { %s140_s18 = scalar_lea.hbm %s187_s1, 80 }
  0x92   :  { %p141_p5 = scmp.ne.s32.totalorder %s187_s1, %s140_s18  ;;  %p144_p6 = scmp.lt.u32.totalorder %s140_s18, %s187_s1 }
  0x94   :  { %p146_p7 = pnand %p144_p6, %p141_p5 }
  0x96   :  { %149 = shalt.err (!%p146_p7)
}
  0x97   :  { %117 = dma.vmem_to_hbm [thread:$0]  %s115_s13, 80, %s187_s1, [#allocation1]  }
  0x98   :  { %150 = dma.done.wait [#allocation1], 80  }
  0x99   :  { %151 = vsyncadd [#allocation1], 4294967216 }
  0x9a   :  { %119 = vsyncpa [#allocation1], 1 }

// kernel: downsampler_forward.1
= control target key start
LH: loop header
LB: loop body
LE: loop exit
PB: predicated region body
PF: predicated region fallthrough
CT: control target
= control target key end

     0   :  { %10 = vsyncpa [#allocation5], 0  ;;  %s5357_s0 = inlined_call_operand.hbm [shape: f32[2,16,592], index: 0, kind: input, shape index: {}]   ;;  %s5358_s1 = inlined_call_operand.hbm [shape: f32[8,16], index: 1, kind: input, shape index: {}]   ;;  %s5359_s2 = inlined_call_operand.hbm [shape: f32[32,32], index: 2, kind: input, shape index: {}]   ;;  %s5360_s3 = inlined_call_operand.hbm [shape: f32[48,45], index: 3, kind: input, shape index: {}]   ;;  %s5361_s4 = inlined_call_operand.hbm [shape: f32[1,592], index: 4, kind: input, shape index: {}]   ;;  %s5362_s5 = inlined_call_operand.hbm [shape: f32[2,48,96], index: 5, kind: output, shape index: {}]  }
   0x1   :  { %12 = vsyncpa [#allocation5 + $0x1], 0 }
   0x2   :  { %13 = vsyncpa [#allocation8], 0 }
   0x3   :  { %14 = vsyncpa [#allocation11], 0 }
   0x4   :  { %15 = vsyncpa [#allocation6], 0 }
   0x5   :  { %17 = vsyncpa [#allocation6 + $0x1], 0  ;;  %s3556_s18 = smov 0   ;;  %s3558_s19 = smov 0  }
   0x6   :  { %s3560_s20 = smov 0   ;;  %s3562_s21 = smov 0  }
   0x7 LB: > { %s3577_s22 = sadd.s32 4294967295, %s3438_s21   ;;  %s2895_s23 = sadd.s32 4294967294, %s3438_s21   ;;  %s3438_s21 = sphi %s3562_s21, %s5577_s21   ;;  %s3434_s20 = sphi %s3560_s20, %s5576_s20   ;;  %s3430_s19 = sphi %s3558_s19, %s5575_s19   ;;  %s3426_s18 = sphi %s3556_s18, %s5574_s18  }
   0x8   : > { %p43_p0 = scmp.ne.s32.totalorder %s3430_s19, %s3426_s18  ;;  %p5363_p1 = scmp.eq.s32.totalorder %s3577_s22, 0 }
   0x9   : > { %p157_p3 = scmp.eq.s32.totalorder %s2895_s23, 1  ;;  %p2896_p5 = scmp.ge.s32.totalorder %s3438_s21, 1 }
   0xa   : > { %p3586_p4 = por %p5363_p1, %p43_p0  ;;  %p164_p7 = scmp.lt.s32.totalorder %s3438_s21, 3 }
   0xb   : > { %p3591_p6 = por %p157_p3, %p43_p0  ;;  %s3440_s27 = smov [#allocation7]  }
   0xc   : > { %s5441_s24 = scalar_select %p3586_p4, 1, 0 }
   0xd   : > { %s5442_s25 = scalar_select %p3591_p6, 1, 0 }
   0xe   : > { %p3596_p8 = pnand %p2896_p5, %p164_p7  ;;  %s177_s28 = sshll.u32 %s3440_s27, 4  ;;  %s178_s28 = int_to_ptr.vmem [resolvable:$true] %s177_s28 }
   0xf   : > { %s3441_s30 = smov [#allocation10]   ;;  %s3442_s7 = smov [#allocation9]  }
  0x10   : > { %s5443_s26 = scalar_select %p3596_p8, 1, 0 }
  0x11   : > { %p2936_p10 = pneg %p3596_p8  ;;  %s200_s6 = sshll.u32 %s3441_s30, 4  ;;  %s3609_s6 = int_to_ptr.vmem [resolvable:$true] %s200_s6 }
  0x12   : > { %s3611_s8 = sshll.u32 %s3442_s7, 4  ;;  %s3222_s11 = scalar_lea.hbm %s5358_s1, 128  ;;  %s188_s8 = int_to_ptr.vmem [resolvable:$true] %s3611_s8 }
  0x13   : > { %p3605_p11 = pnand %p2936_p10, %p5363_p1  ;;  %p3223_p12 = scmp.ne.s32.totalorder %s5358_s1, %s3222_s11 }
  0x14   : > { %p3229_p5 = scmp.lt.u32.totalorder %s3222_s11, %s5358_s1 }
  0x15   : > { %p3621_p13 = pneg %p3605_p11 }
  0x17   : > { %p3225_p0 = pnand %p3621_p13, %p3223_p12 }
  0x19   : > { %p3226_p3 = pneg %p3225_p0 }
  0x1b   : > { %p3231_p7 = pnand %p3229_p5, %p3226_p3 }
  0x1d   : > { %3234 = shalt.err (!%p3231_p7)
}
  0x1e   : > { %s3235_s17 = scalar_lea.vmem %s178_s28, 128  ;;  %p3243_p2 = scmp.lt.s32.totalorder %s178_s28, %s178_s28 }
  0x1f   : > { %p3236_p10 = scmp.ne.s32.totalorder %s178_s28, %s3235_s17  ;;  %p3244_p6 = scmp.lt.s32.totalorder %s3235_s17, %s3235_s17 }
  0x21   : > { %p3238_p9 = pnand %p3236_p10, %p3621_p13  ;;  %p3245_p4 = por %p3244_p6, %p3243_p2 }
  0x23   : > { %p3239_p1 = pneg %p3238_p9 }
  0x25   : > { %p3246_p8 = pnand %p3245_p4, %p3239_p1 }
  0x27   : > { %3249 = shalt.err (!%p3246_p8)
}
  0x28   : > { %2939 = dma.hbm_to_vmem [thread:$0]  (!%p3605_p11), %s5358_s1, 128, %s178_s28, [#allocation8]  }
  0x29   : > { %s3250_s9 = scalar_lea.hbm %s5360_s3, 768 }
  0x2a   : > { %p3251_p9 = scmp.ne.s32.totalorder %s5360_s3, %s3250_s9  ;;  %p3257_p1 = scmp.lt.u32.totalorder %s3250_s9, %s5360_s3 }
  0x2c   : > { %p3253_p12 = pnand %p3251_p9, %p3621_p13 }
  0x2e   : > { %p3254_p2 = pneg %p3253_p12 }
  0x30   : > { %p3259_p4 = pnand %p3257_p1, %p3254_p2 }
  0x32   : > { %3262 = shalt.err (!%p3259_p4)
}
  0x33   : > { %s3263_s28 = scalar_lea.vmem %s3609_s6, 768  ;;  %p3271_p3 = scmp.lt.s32.totalorder %s3609_s6, %s3609_s6 }
  0x34   : > { %p3264_p6 = scmp.ne.s32.totalorder %s3609_s6, %s3263_s28  ;;  %p3272_p5 = scmp.lt.s32.totalorder %s3263_s28, %s3263_s28 }
  0x36   : > { %p3266_p8 = pnand %p3264_p6, %p3621_p13  ;;  %p3273_p7 = por %p3272_p5, %p3271_p3 }
  0x38   : > { %p3267_p0 = pneg %p3266_p8 }
  0x3a   : > { %p3274_p10 = pnand %p3273_p7, %p3267_p0 }
  0x3c   : > { %3277 = shalt.err (!%p3274_p10)
}
  0x3d   : > { %s3443_s15 = smov 128   ;;  %s3444_s16 = smov 8  }
  0x3e   : > { %2945 = dma.hbm_to_vmem [thread:$0]  (!%p3605_p11), %s5360_s3, 768, %s3609_s6, [#allocation11], %s3443_s15, %s3443_s15, %s3444_s16  }
  0x3f   : > { %s3278_s7 = scalar_lea.hbm %s5359_s2, 512 }
  0x40   : > { %p3279_p9 = scmp.ne.s32.totalorder %s5359_s2, %s3278_s7  ;;  %p3285_p1 = scmp.lt.u32.totalorder %s3278_s7, %s5359_s2 }
  0x42   : > { %p3281_p12 = pnand %p3279_p9, %p3621_p13 }
  0x44   : > { %p3282_p2 = pneg %p3281_p12 }
  0x46   : > { %p3287_p4 = pnand %p3285_p1, %p3282_p2 }
  0x48   : > { %3290 = shalt.err (!%p3287_p4)
}
  0x49   : > { %s3291_s13 = scalar_lea.vmem %s188_s8, 512  ;;  %p3299_p3 = scmp.lt.s32.totalorder %s188_s8, %s188_s8 }
  0x4a   : > { %p3292_p6 = scmp.ne.s32.totalorder %s188_s8, %s3291_s13  ;;  %p3300_p5 = scmp.lt.s32.totalorder %s3291_s13, %s3291_s13 }
  0x4c   : > { %p3294_p8 = pnand %p3292_p6, %p3621_p13  ;;  %p3301_p7 = por %p3300_p5, %p3299_p3 }
  0x4e   : > { %p3295_p0 = pneg %p3294_p8 }
  0x50   : > { %p3302_p10 = pnand %p3301_p7, %p3295_p0 }
  0x52   : > { %3305 = shalt.err (!%p3302_p10)
}
  0x53   : > { %2942 = dma.hbm_to_vmem [thread:$0]  (!%p3605_p11), %s5359_s2, 512, %s188_s8, [#allocation8], %s3443_s15, %s3443_s15, %s3444_s16  }
  0x54   : > { %s3445_s17 = smov [#allocation12]   ;;  %s3306_s7 = scalar_lea.hbm %s5361_s4, 80 }
  0x55   : > { %s214_s23 = sshll.u32 %s3445_s17, 4  ;;  %p3307_p9 = scmp.ne.s32.totalorder %s5361_s4, %s3306_s7  ;;  %s215_s23 = int_to_ptr.vmem [resolvable:$true] %s214_s23 }
  0x56   : > { %p3313_p1 = scmp.lt.u32.totalorder %s3306_s7, %s5361_s4 }
  0x57   : > { %p3309_p12 = pnand %p3307_p9, %p3621_p13 }
  0x59   : > { %p3310_p2 = pneg %p3309_p12 }
  0x5b   : > { %p3315_p4 = pnand %p3313_p1, %p3310_p2 }
  0x5d   : > { %3318 = shalt.err (!%p3315_p4)
}
  0x5e   : > { %s3319_s8 = scalar_lea.vmem %s215_s23, 80  ;;  %s3326_s15 = scalar_lea.vmem %s215_s23, 96 }
  0x5f   : > { %p3320_p6 = scmp.ne.s32.totalorder %s215_s23, %s3319_s8  ;;  %p3327_p3 = scmp.lt.s32.totalorder %s215_s23, %s215_s23 }
  0x60   : > { %p3328_p5 = scmp.lt.s32.totalorder %s3326_s15, %s3319_s8 }
  0x61   : > { %p3322_p8 = pnand %p3320_p6, %p3621_p13 }
  0x62   : > { %p3329_p7 = por %p3328_p5, %p3327_p3 }
  0x63   : > { %p3323_p0 = pneg %p3322_p8 }
  0x65   : > { %p3330_p10 = pnand %p3329_p7, %p3323_p0 }
  0x67   : > { %3333 = shalt.err (!%p3330_p10)
}
  0x68   : > { %2948 = dma.hbm_to_vmem [thread:$0]  (!%p3605_p11), %s5361_s4, 80, %s215_s23, [#allocation11]  }
  0x69   : > { %s3698_s14 = sadd.s32 1, %s3438_s21   ;;  %s30_s6 = sadd.s32 1, %s3434_s20 }
  0x6a   : > { %s27_s29 = ssub.s32 %s3438_s21, %s3698_s14  ;;  %p37_p13 = scmp.ne.s32.totalorder %s3434_s20, %s3430_s19 }
  0x6b   : > { %p28_p9 = scmp.eq.s32.totalorder %s27_s29, 0  ;;  %p38_p12 = scmp.eq.s32.totalorder %s3438_s21, 0 }
  0x6c   : > { %p5446_p2 = scmp.eq.s32.totalorder %s3577_s22, 1  ;;  %p2961_p4 = scmp.lt.s32.totalorder %s3438_s21, 2 }
  0x6d   : > { %s3714_s17 = scalar_select %p28_p9, %s3434_s20, %s30_s6  }
  0x6e   : > { %p3708_p1 = por %p5446_p2, %p37_p13  ;;  %p39_p6 = por %p38_p12, %p37_p13 }
  0x6f   : > { %s225_s27 = sand.u32 1, %s3434_s20   ;;  %s2912_s23 = smul.u32 1280, %s3438_s21 }
  0x70   : > { %s2911_s30 = smul.u32 80, %s225_s27  ;;  %p3718_p11 = pnand %p2961_p4, %p39_p6 }
  0x71   : > { %s3725_s11 = scalar_lea.hbm %s5357_s0, %s2912_s23  ;;  %s3729_s15 = scalar_lea.sflag [#allocation5], %s225_s27 }
  0x72   : > { %s229_s12 = scalar_lea.vmem [#allocation4], %s2911_s30  ;;  %s3334_s16 = scalar_lea.hbm %s3725_s11, 1280 }
  0x73   : > { %s236_s8 = sshll.u32 %s229_s12, 4  ;;  %p3335_p8 = scmp.ne.s32.totalorder %s3725_s11, %s3334_s16  ;;  %s3727_s8 = int_to_ptr.vmem [resolvable:$true] %s236_s8 }
  0x74   : > { %p3336_p0 = pneg %p3718_p11  ;;  %s3339_s29 = scalar_lea.hbm %s5357_s0, 2560 }
  0x75   : > { %p3340_p7 = scmp.lt.u32.totalorder %s3725_s11, %s5357_s0  ;;  %p3341_p10 = scmp.lt.u32.totalorder %s3339_s29, %s3334_s16 }
  0x76   : > { %p3337_p3 = pnand %p3336_p0, %p3335_p8  ;;  %p3343_p9 = scmp.lt.u32.totalorder %s3334_s16, %s3725_s11 }
  0x77   : > { %p3342_p13 = por %p3341_p10, %p3340_p7 }
  0x78   : > { %p3338_p5 = pneg %p3337_p3 }
  0x79   : > { %p3344_p12 = por %p3343_p9, %p3342_p13 }
  0x7b   : > { %p3345_p2 = pnand %p3344_p12, %p3338_p5 }
  0x7d   : > { %3348 = shalt.err (!%p3345_p2)
}
  0x7e   : > { %s3349_s27 = scalar_lea.vmem %s3727_s8, 1280  ;;  %s3446_s30 = smov [#allocation4]  }
  0x7f   : > { %p3350_p4 = scmp.ne.s32.totalorder %s3727_s8, %s3349_s27  ;;  %s3354_s10 = sshll.u32 %s3446_s30, 4  ;;  %s3355_s10 = int_to_ptr.vmem [resolvable:$false] %s3354_s10 }
  0x80   : > { %s3356_s12 = scalar_lea.vmem %s3355_s10, 2560  ;;  %p3357_p3 = scmp.lt.s32.totalorder %s3727_s8, %s3355_s10 }
  0x81   : > { %p3352_p6 = pnand %p3350_p4, %p3336_p0  ;;  %p3358_p7 = scmp.lt.s32.totalorder %s3356_s12, %s3349_s27 }
  0x83   : > { %p3353_p8 = pneg %p3352_p6  ;;  %p3359_p10 = por %p3358_p7, %p3357_p3 }
  0x85   : > { %p3360_p13 = pnand %p3359_p10, %p3353_p8 }
  0x87   : > { %3363 = shalt.err (!%p3360_p13)
}
  0x88   : > { %s3447_s16 = smov 640   ;;  %s3448_s13 = smov 40  }
  0x89   : > { %2952 = dma.hbm_to_vmem [thread:$0]  (!%p3718_p11), %s3725_s11, 1280, %s3727_s8, %s3729_s15, %s3447_s16, %s3447_s16, %s3448_s13  }
  0x8a   : > { %p5449_p0 = scmp.ne.s32.totalorder %s5443_s26, 0 }
  0x8c   : > { %248 = sbr.rel (%p5449_p0) target bundleno = 2349 (0x92d), region = 40 }
  0x93   : > { %s3760_s6 = sand.u32 1, %s3430_s19   ;;  %p5450_p5 = scmp.ne.s32.totalorder %s5441_s24, 0 }
  0x94   : > { %s2913_s29 = smul.u32 80, %s3760_s6  ;;  %s251_s23 = scalar_lea.sflag [#allocation5], %s3760_s6 }
  0x96   : > { %s3764_s9 = scalar_lea.vmem [#allocation4], %s2913_s29 }
  0x97   : > { %3409 = dma.done.wait (%p5450_p5), %s251_s23, 1280  }
  0x98   : > { %3411 = vsyncadd (%p5450_p5), %s251_s23, 4294966016  ;;  %p5451_p11 = scmp.eq.s32.totalorder %s3577_s22, 0 }
  0x9a   : > { %3413 = dma.done.wait (%p5451_p11), [#allocation8], 640   ;;  %p5452_p9 = pmov %p5451_p11 }
  0x9c   : > { %3415 = vsyncadd (%p5452_p9), [#allocation8], 4294966656  ;;  %p5453_p12 = pmov %p5452_p9 }
  0x9d   : > { %p5454_p2 = pmov %p5452_p9 }
  0x9e   : > { %3417 = dma.done.wait (%p5453_p12), [#allocation11], 848  }
  0x9f   : > { %3419 = vsyncadd (%p5454_p2), [#allocation11], 4294966448  ;;  %v5384_v0 = vmov 2   ;;  %v5392_v1 = vmov 0   ;;  %v313_v2 = vld [vmem:[#allocation7] sm:$0xff]  ;;  %v5394_v3 = vmov 3   ;;  %v319_v29 = vlaneseq }
  0xa0   : > { %3084 = vset.pattern.permute.xlu1 %v5384_v0  ;;  %3083 = vset.pattern.permute.xlu0 %v5392_v1  ;;  %v5388_v4 = vmov 5   ;;  %v5390_v5 = vmov 4   ;;  %v5380_v6 = vmov 11   ;;  %v5382_v7 = vmov 6   ;;  %v3788_v11 = vld [vmem:[#allocation10] sm:$0xff]  ;;  %s3462_s24 = smov 19  }
  0xa1   : > { %384 = vperm.xlu1 %3084, %v313_v2   ;;  %316 = vperm.xlu0 %3083, %v313_v2   ;;  %v5396_v8 = vmov 14   ;;  %v5378_v9 = vmov 7   ;;  %v5386_v10 = vmov 1   ;;  %5455 = vst [vmem:[#allocation18_spill] sm:$0xff] %v3788_v11  ;;  %v5374_v12 = vmov 9   ;;  %v3795_v15 = vld [vmem:[%s3764_s9 + $0x18] sm:$0xff] }
  0xa2   : > { %v5376_v13 = vmov 8   ;;  %v5372_v14 = vmov 10   ;;  %v5370_v16 = vmov 12   ;;  %v3801_v17 = vld [vmem:[%s3764_s9 + $0x40] sm:$0xff]  ;;  %v5368_v19 = vmov 13   ;;  %s3465_s26 = smov 127  }
  0xa3   : > { %v3806_v18 = vld [vmem:[%s3764_s9 + $0x20] sm:$0xff]  ;;  %v3812_v20 = vld [vmem:[%s3764_s9 + $0x48] sm:$0xff]  ;;  %v5366_v21 = vmov 15   ;;  %v3818_v22 = vld [vmem:[%s3764_s9 + $0x10] sm:$0xff]  ;;  %s3467_s7 = smov 28   ;;  %s3468_s11 = smov 47  }
  0xa4   : > { %v3825_v23 = vld [vmem:[%s3764_s9 + $0x38] sm:$0xff]  ;;  %v3831_v24 = vld [vmem:[%s3764_s9 + $0x28] sm:$0xff]  ;;  %s3469_s8 = smov 27   ;;  %s3470_s15 = smov 116   ;;  %v3859_v26 = vld [vmem:[%s3764_s9 + $0x30] sm:$0xff]  ;;  %v320_v30 = vshrl.u32 %v319_v29, 7 }
  0xa5   : > { %3085 = vset.pattern.permute.xlu1 %v5394_v3  ;;  %3087 = vset.pattern.permute.xlu0 %v5388_v4  ;;  %v3852_v25 = vld [vmem:[%s3764_s9 + $0x8] sm:$0xff]  ;;  %s3471_s27 = smov 7   ;;  %v3866_v27 = vld [vmem:[%s3764_s9] sm:$0xff]  ;;  %s3472_s30 = smov 115   ;;  %vm933_vm5 = vcmask 654336   ;;  %vm957_vm6 = vcmask 154624  }
  0xa6   : > { %418 = vperm.xlu1 %3085, %v313_v2   ;;  %486 = vperm.xlu0 %3087, %v313_v2   ;;  %v298_v28 = vld [vmem:[#allocation10 + $0x8] sm:$0xff]  ;;  %v3899_v31 = vsub.s32 2, %v320_v30  ;;  %v3901_v32 = vsub.s32 0, %v320_v30  ;;  %v3904_v33 = vsub.s32 3, %v320_v30  ;;  %v3912_v37 = vsub.s32 5, %v320_v30  ;;  %s3474_s10 = smov 55  }
  0xa7   : > { %v3920_v41 = vsub.s32 4, %v320_v30  ;;  %v3946_v53 = vsub.s32 6, %v320_v30  ;;  %vm978_vm7 = vcmask 1039360   ;;  %vm1001_vm8 = vcmask 228352   ;;  %s2914_s12 = smul.u32 48, %s3760_s6  ;;  %s3480_s13 = smov 126  }
  0xa8   : > { %5456 = vst [vmem:[#allocation19_spill] sm:$0xff] %v3899_v31  ;;  %5457 = vst [vmem:[#allocation20_spill] sm:$0xff] %v3904_v33  ;;  %v398_v34 = vrot.slane %v3818_v22, %v3899_v31  ;;  %v402_v35 = vrot.slane %v3795_v15, %v3899_v31  ;;  %v406_v36 = vrot.slane %v3806_v18, %v3899_v31  ;;  %vm1034_vm9 = vcmask 220160   ;;  %s3485_s29 = smov 114   ;;  %s3486_s23 = smov 104  }
  0xa9   : > { %5458 = vst [vmem:[#allocation21_spill] sm:$0xff] %v3912_v37  ;;  %v390_v38 = vrot.slane %v3866_v27, %v3899_v31  ;;  %v394_v39 = vrot.slane %v3852_v25, %v3899_v31  ;;  %v322_v40 = vrot.slane %v3866_v27, %v3901_v32  ;;  %5459 = vst [vmem:[#allocation22_spill] sm:$0xff] %v3920_v41  ;;  %vm1053_vm10 = vcmask 949248   ;;  %s4491_s16 = scalar_lea.vmem [#allocation13], %s2914_s12  ;;  %s3493_s9 = smov 103  }
  0xaa   : > { %3086 = vset.pattern.permute.xlu1 %v5390_v5  ;;  %3092 = vset.pattern.permute.xlu0 %v5380_v6  ;;  %v326_v42 = vrot.slane %v3852_v25, %v3901_v32  ;;  %v330_v43 = vrot.slane %v3818_v22, %v3901_v32  ;;  %v334_v44 = vrot.slane %v3795_v15, %v3901_v32  ;;  %vm1072_vm11 = vcmask 56320   ;;  %s3509_s12 = smov 110  }
  0xab   : > { %452 = vperm.xlu1 %3086, %v313_v2   ;;  %690 = vperm.xlu0 %3092, %v313_v2   ;;  %v338_v45 = vrot.slane %v3806_v18, %v3901_v32  ;;  %v424_v46 = vrot.slane %v3866_v27, %v3904_v33  ;;  %v428_v47 = vrot.slane %v3852_v25, %v3904_v33  ;;  %vm1091_vm12 = vcmask 941056  }
  0xac   : > { %v432_v48 = vrot.slane %v3818_v22, %v3904_v33  ;;  %v436_v49 = vrot.slane %v3795_v15, %v3904_v33  ;;  %v440_v50 = vrot.slane %v3806_v18, %v3904_v33  ;;  %v492_v51 = vrot.slane %v3866_v27, %v3912_v37  ;;  %5460 = vst [vmem:[#allocation23_spill] sm:$0xff] %v3946_v53 }
  0xad   : > { %v496_v52 = vrot.slane %v3852_v25, %v3912_v37  ;;  %v500_v54 = vrot.slane %v3818_v22, %v3912_v37  ;;  %v504_v55 = vrot.slane %v3795_v15, %v3912_v37  ;;  %v508_v56 = vrot.slane %v3806_v18, %v3912_v37 }
  0xae   : > { %v458_v57 = vrot.slane %v3866_v27, %v3920_v41  ;;  %v462_v58 = vrot.slane %v3852_v25, %v3920_v41  ;;  %v466_v59 = vrot.slane %v3818_v22, %v3920_v41  ;;  %v470_v60 = vrot.slane %v3795_v15, %v3920_v41 }
  0xaf   : > { %3088 = vset.pattern.permute.xlu1 %v5382_v7  ;;  %3095 = vset.pattern.permute.xlu0 %v5396_v8  ;;  %v474_v61 = vrot.slane %v3806_v18, %v3920_v41  ;;  %v704_v29 = vrot.slane %v3825_v23, %v3904_v33  ;;  %v5473_v37 = vrot.slane %v3795_v15, %v3946_v53 }
  0xb0   : > { %520 = vperm.xlu1 %3088, %v313_v2   ;;  %792 = vperm.xlu0 %3095, %v313_v2  }
  0xb4   : > { %3089 = vset.pattern.permute.xlu1 %v5378_v9  ;;  %3096 = vset.pattern.permute.xlu0 %v5386_v10 }
  0xb5   : > { %554 = vperm.xlu1 %3089, %v313_v2   ;;  %350 = vperm.xlu0 %3096, %v313_v2  }
  0xb9   : > { %3090 = vset.pattern.permute.xlu1 %v5374_v12  ;;  %870 = vperm.xlu0 %3096, %v3788_v11  }
  0xba   : > { %622 = vperm.xlu1 %3090, %v313_v2  }
  0xbd   : > { %3099 = vset.pattern.permute.xlu0 %v5376_v13 }
  0xbe   : > { %3091 = vset.pattern.permute.xlu1 %v5372_v14  ;;  %588 = vperm.xlu0 %3099, %v313_v2  }
  0xbf   : > { %656 = vperm.xlu1 %3091, %v313_v2  }
  0xc2   : > { %951 = vrot.lane.b32.xlu0 %v3795_v15, %s3462_s24 }
  0xc3   : > { %3093 = vset.pattern.permute.xlu1 %v5370_v16 }
  0xc4   : > { %724 = vperm.xlu1 %3093, %v313_v2  }
  0xc6   : > { %955 = vrot.lane.b32.xlu0 %v3801_v17, %s3462_s24 }
  0xc8   : > { %3094 = vset.pattern.permute.xlu1 %v5368_v19 }
  0xc9   : > { %758 = vperm.xlu1 %3094, %v313_v2  }
  0xca   : > { %972 = vrot.lane.b32.xlu0 %v3806_v18, %s3465_s26 }
  0xcd   : > { %3097 = vset.pattern.permute.xlu1 %v5366_v21 }
  0xce   : > { %826 = vperm.xlu1 %3097, %v313_v2   ;;  %976 = vrot.lane.b32.xlu0 %v3812_v20, %s3465_s26  ;;  %v696_v2 = vrot.slane %v3831_v24, %v3904_v33 }
  0xd2   : > { %3098 = vset.pattern.permute.xlu1 %v5392_v1  ;;  %995 = vrot.lane.b32.xlu0 %v3818_v22, %s3467_s7 }
  0xd3   : > { %861 = vperm.xlu1 %3098, %v3788_v11  }
  0xd6   : > { %999 = vrot.lane.b32.xlu0 %v3825_v23, %s3467_s7 }
  0xd7   : > { %3100 = vset.pattern.permute.xlu1 %v5384_v0 }
  0xd8   : > { %884 = vperm.xlu1 %3100, %v3788_v11  }
  0xda   : > { %1018 = vrot.lane.b32.xlu0 %v3831_v24, %s3468_s11 }
  0xdc   : > { %949 = vrot.lane.b32.xlu1 %v3818_v22, %s3462_s24 }
  0xdd   : > { %3101 = vset.pattern.permute.xlu1 %v5376_v13  ;;  %v530_v13 = vrot.slane %v3852_v25, %v3946_v53 }
  0xde   : > { %1028 = vrot.lane.b32.xlu0 %v3818_v22, %s3469_s8 }
  0xe0   : > { %953 = vrot.lane.b32.xlu1 %v3825_v23, %s3462_s24 }
  0xe2   : > { %1032 = vrot.lane.b32.xlu0 %v3825_v23, %s3469_s8 }
  0xe4   : > { %970 = vrot.lane.b32.xlu1 %v3795_v15, %s3465_s26 }
  0xe6   : > { %1047 = vrot.lane.b32.xlu0 %v3806_v18, %s3470_s15 }
  0xe8   : > { %974 = vrot.lane.b32.xlu1 %v3801_v17, %s3465_s26 }
  0xea   : > { %1051 = vrot.lane.b32.xlu0 %v3812_v20, %s3470_s15 }
  0xec   : > { %993 = vrot.lane.b32.xlu1 %v3852_v25, %s3467_s7 }
  0xee   : > { %1066 = vrot.lane.b32.xlu0 %v3795_v15, %s3471_s27 }
  0xf0   : > { %997 = vrot.lane.b32.xlu1 %v3859_v26, %s3467_s7 }
  0xf2   : > { %1070 = vrot.lane.b32.xlu0 %v3801_v17, %s3471_s27 }
  0xf4   : > { %1016 = vrot.lane.b32.xlu1 %v3866_v27, %s3468_s11 }
  0xf6   : > { %1085 = vrot.lane.b32.xlu0 %v3806_v18, %s3472_s30 }
  0xf8   : > { %1026 = vrot.lane.b32.xlu1 %v3852_v25, %s3469_s8 }
  0xfa   : > { %1089 = vrot.lane.b32.xlu0 %v3812_v20, %s3472_s30 }
  0xfc   : > { %1030 = vrot.lane.b32.xlu1 %v3859_v26, %s3469_s8 }
  0xfe   : > { %1116 = vperm.xlu0 %3099, %v298_v28   ;;  %v700_v28 = vrot.slane %v3859_v26, %v3904_v33 }
 0x100   : > { %1045 = vrot.lane.b32.xlu1 %v3795_v15, %s3470_s15 }
 0x102   : > { %3102 = vset.pattern.permute.xlu0 %v5374_v12  ;;  %v3983_v12 = vsub.s32 1, %v320_v30 }
 0x103   : > { %1150 = vperm.xlu0 %3102, %v3788_v11  }
 0x104   : > { %1049 = vrot.lane.b32.xlu1 %v3801_v17, %s3470_s15  ;;  %5461 = vst [vmem:[#allocation24_spill] sm:$0xff] %v3983_v12 }
 0x107   : > { %3105 = vset.pattern.permute.xlu0 %v5370_v16  ;;  %v712_v16 = vrot.slane %v3812_v20, %v3904_v33 }
 0x108   : > { %1196 = vperm.xlu0 %3105, %v3788_v11   ;;  %1064 = vrot.lane.b32.xlu1 %v3818_v22, %s3471_s27 }
 0x10c   : > { %3106 = vset.pattern.permute.xlu0 %v5368_v19  ;;  %1068 = vrot.lane.b32.xlu1 %v3825_v23, %s3471_s27  ;;  %v708_v19 = vrot.slane %v3801_v17, %v3904_v33  ;;  %v5472_v33 = vrot.slane %v3806_v18, %v3983_v12 }
 0x10d   : > { %1214 = vperm.xlu0 %3106, %v3788_v11  }
 0x110   : > { %1083 = vrot.lane.b32.xlu1 %v3795_v15, %s3472_s30 }
 0x111   : > { %3108 = vset.pattern.permute.xlu0 %v5366_v21  ;;  %v3974_v21 = vsub.s32 7, %v320_v30 }
 0x114   : > { %1087 = vrot.lane.b32.xlu1 %v3801_v17, %s3472_s30 }
 0x118   : > { %1111 = vperm.xlu1 %3101, %v3788_v11  }
 0x11c   : > { %3103 = vset.pattern.permute.xlu1 %v5372_v14  ;;  %v526_v14 = vrot.slane %v3866_v27, %v3946_v53 }
 0x11d   : > { %1160 = vperm.xlu1 %3103, %v3788_v11  }
 0x120   : > { %v3964_v62 = vpop.permute.xlu1 %384  ;;  %v3966_v63 = vpop.permute.xlu0 %316 }
 0x121   : > { %3104 = vset.pattern.permute.xlu1 %v5380_v6  ;;  %v407_v9 = vmul.f32 %v390_v38, %v3964_v62  ;;  %v408_v3 = vmul.f32 %v394_v39, %v3964_v62  ;;  %v409_v5 = vmul.f32 %v398_v34, %v3964_v62  ;;  %v410_v6 = vmul.f32 %v402_v35, %v3964_v62 }
 0x122   : > { %1177 = vperm.xlu1 %3104, %v3788_v11   ;;  %v411_v38 = vmul.f32 %v406_v36, %v3964_v62  ;;  %v339_v39 = vmul.f32 %v322_v40, %v3966_v63  ;;  %v340_v34 = vmul.f32 %v326_v42, %v3966_v63  ;;  %v341_v35 = vmul.f32 %v330_v43, %v3966_v63 }
 0x123   : > { %v342_v36 = vmul.f32 %v334_v44, %v3966_v63  ;;  %v343_v40 = vmul.f32 %v338_v45, %v3966_v63 }
 0x125   : > { %v419_v7 = vpop.permute.xlu1 %418  ;;  %v4010_v30 = vpop.permute.xlu0 %486 }
 0x126   : > { %3107 = vset.pattern.permute.xlu1 %v5396_v8  ;;  %v441_v42 = vmul.f32 %v424_v46, %v419_v7  ;;  %v442_v62 = vmul.f32 %v428_v47, %v419_v7  ;;  %v443_v43 = vmul.f32 %v432_v48, %v419_v7  ;;  %v444_v44 = vmul.f32 %v436_v49, %v419_v7 }
 0x127   : > { %1225 = vperm.xlu1 %3107, %v3788_v11   ;;  %v445_v45 = vmul.f32 %v440_v50, %v419_v7  ;;  %v4149_v46 = vmul.f32 %v492_v51, %v4010_v30  ;;  %v4155_v47 = vmul.f32 %v496_v52, %v4010_v30  ;;  %v4161_v48 = vmul.f32 %v500_v54, %v4010_v30 }
 0x128   : > { %v4167_v7 = vmul.f32 %v504_v55, %v4010_v30  ;;  %v4173_v49 = vmul.f32 %v508_v56, %v4010_v30  ;;  %v5470_v8 = vrot.slane %v3818_v22, %v3946_v53  ;;  %v5471_v11 = vrot.slane %v3795_v15, %v3983_v12 }
 0x12a   : > { %v453_v1 = vpop.permute.xlu1 %452  ;;  %v691_v4 = vpop.permute.xlu0 %690 }
 0x12b   : > { %v475_v50 = vmul.f32 %v458_v57, %v453_v1  ;;  %v476_v51 = vmul.f32 %v462_v58, %v453_v1  ;;  %v477_v52 = vmul.f32 %v466_v59, %v453_v1  ;;  %v478_v54 = vmul.f32 %v470_v60, %v453_v1 }
 0x12c   : > { %v479_v55 = vmul.f32 %v474_v61, %v453_v1  ;;  %v4193_v56 = vmul.f32 %v696_v2, %v691_v4  ;;  %v4198_v57 = vmul.f32 %v700_v28, %v691_v4  ;;  %v4203_v60 = vmul.f32 %v704_v29, %v691_v4 }
 0x12d   : > { %v4208_v1 = vmul.f32 %v708_v19, %v691_v4  ;;  %v4213_v61 = vmul.f32 %v712_v16, %v691_v4  ;;  %v5467_v28 = vrot.slane %v3866_v27, %v3983_v12  ;;  %v5468_v19 = vrot.slane %v3852_v25, %v3983_v12 }
 0x12e   : > { %5462 = vst [vmem:[#allocation25_spill] sm:$0xff] %v4193_v56  ;;  %5463 = vst [vmem:[#allocation26_spill] sm:$0xff] %v4198_v57  ;;  %v5469_v4 = vrot.slane %v3818_v22, %v3983_v12  ;;  %v5404_v57 = vmov 19  }
 0x12f   : > { %v521_v0 = vpop.permute.xlu1 %520  ;;  %v4116_v10 = vpop.permute.xlu0 %792  ;;  %5464 = vst [vmem:[#allocation27_spill] sm:$0xff] %v4203_v60  ;;  %5465 = vst [vmem:[#allocation28_spill] sm:$0xff] %v4208_v1  ;;  %3112 = vset.pattern.permute.xlu1 %v5404_v57 }
 0x130   : > { %5466 = vst [vmem:[#allocation29_spill] sm:$0xff] %v4213_v61  ;;  %v543_v63 = vmul.f32 %v526_v14, %v521_v0  ;;  %v544_v2 = vmul.f32 %v530_v13, %v521_v0  ;;  %v545_v14 = vmul.f32 %v5470_v8, %v521_v0  ;;  %v5475_v8 = vrot.slane %v3806_v18, %v3946_v53 }
 0x134   : > { %v555_v58 = vpop.permute.xlu1 %554  ;;  %v351_v59 = vpop.permute.xlu0 %350 }
 0x135   : > { %v373_v29 = vmul.f32 %v5467_v28, %v351_v59  ;;  %v374_v30 = vmul.f32 %v5468_v19, %v351_v59  ;;  %v375_v16 = vmul.f32 %v5469_v4, %v351_v59  ;;  %v376_v13 = vmul.f32 %v5471_v11, %v351_v59 }
 0x136   : > { %v377_v28 = vmul.f32 %v5472_v33, %v351_v59  ;;  %v546_v19 = vmul.f32 %v5473_v37, %v521_v0  ;;  %v547_v11 = vmul.f32 %v5475_v8, %v521_v0  ;;  %v5476_v33 = vrot.slane %v3831_v24, %v3946_v53 }
 0x137   : > { %v378_v61 = vadd.f32 %v373_v29, %v339_v39  ;;  %v379_v1 = vadd.f32 %v374_v30, %v340_v34  ;;  %v380_v60 = vadd.f32 %v375_v16, %v341_v35  ;;  %v381_v56 = vadd.f32 %v376_v13, %v342_v36 }
 0x138   : > { %v4242_v4 = vpop.permute.xlu0 %870  ;;  %v4252_v59 = vmul.f32 %v5476_v33, %v4116_v10  ;;  %v382_v37 = vadd.f32 %v377_v28, %v343_v40  ;;  %v5477_v34 = vrot.slane %v3859_v26, %v3946_v53  ;;  %v5478_v0 = vrot.slane %v3825_v23, %v3946_v53 }
 0x139   : > { %5474 = vst [vmem:[#allocation30_spill] sm:$0xff] %v4242_v4  ;;  %v623_v39 = vpop.permute.xlu1 %622  ;;  %v412_v29 = vadd.f32 %v407_v9, %v378_v61  ;;  %v413_v30 = vadd.f32 %v408_v3, %v379_v1  ;;  %v414_v16 = vadd.f32 %v409_v5, %v380_v60  ;;  %v5479_v36 = vrot.slane %v3801_v17, %v3946_v53 }
 0x13a   : > { %v4258_v35 = vmul.f32 %v5477_v34, %v4116_v10  ;;  %v4264_v8 = vmul.f32 %v5478_v0, %v4116_v10  ;;  %v415_v13 = vadd.f32 %v410_v6, %v381_v56  ;;  %v416_v28 = vadd.f32 %v411_v38, %v382_v37 }
 0x13b   : > { %v4270_v40 = vmul.f32 %v5479_v36, %v4116_v10  ;;  %v5480_v33 = vrot.slane %v3866_v27, %v3974_v21  ;;  %v446_v3 = vadd.f32 %v441_v42, %v412_v29  ;;  %v447_v5 = vadd.f32 %v442_v62, %v413_v30 }
 0x13c   : > { %v448_v60 = vadd.f32 %v443_v43, %v414_v16  ;;  %v5481_v1 = vrot.slane %v3852_v25, %v3974_v21  ;;  %v5482_v34 = vrot.slane %v3818_v22, %v3974_v21  ;;  %v449_v57 = vadd.f32 %v444_v44, %v415_v13 }
 0x13d   : > { %v577_v9 = vmul.f32 %v5480_v33, %v555_v58  ;;  %v450_v36 = vadd.f32 %v445_v45, %v416_v28  ;;  %v589_v4 = vpop.permute.xlu0 %588  ;;  %v5483_v6 = vrot.slane %v3795_v15, %v3974_v21  ;;  %v480_v27 = vadd.f32 %v475_v50, %v446_v3 }
 0x13e   : > { %v578_v61 = vmul.f32 %v5481_v1, %v555_v58  ;;  %v579_v0 = vmul.f32 %v5482_v34, %v555_v58  ;;  %v481_v56 = vadd.f32 %v476_v51, %v447_v5  ;;  %v482_v42 = vadd.f32 %v477_v52, %v448_v60  ;;  %v657_v62 = vpop.permute.xlu1 %656 }
 0x13f   : > { %v580_v38 = vmul.f32 %v5483_v6, %v555_v58  ;;  %v5484_v43 = vrot.slane %v3806_v18, %v3974_v21  ;;  %v483_v37 = vadd.f32 %v478_v54, %v449_v57  ;;  %v484_v29 = vadd.f32 %v479_v55, %v450_v36 }
 0x140   : > { %v5485_v22 = vrot.slane %v3831_v24, %v3983_v12  ;;  %v5486_v45 = vrot.slane %v3859_v26, %v3983_v12  ;;  %v514_v16 = vadd.f32 %v4149_v46, %v480_v27  ;;  %v515_v50 = vadd.f32 %v4155_v47, %v481_v56 }
 0x141   : > { %v581_v25 = vmul.f32 %v5484_v43, %v555_v58  ;;  %v516_v51 = vadd.f32 %v4161_v48, %v482_v42  ;;  %v517_v52 = vadd.f32 %v4167_v7, %v483_v37  ;;  %v518_v58 = vadd.f32 %v4173_v49, %v484_v29  ;;  %v4304_v28 = vpop.permute.xlu0 %951 }
 0x142   : > { %v645_v44 = vmul.f32 %v5485_v22, %v623_v39  ;;  %v646_v30 = vmul.f32 %v5486_v45, %v623_v39  ;;  %v5487_v54 = vrot.slane %v3831_v24, %v3901_v32  ;;  %v5488_v57 = vrot.slane %v3859_v26, %v3901_v32 }
 0x143   : > { %v548_v33 = vadd.f32 %v543_v63, %v514_v16  ;;  %v549_v46 = vadd.f32 %v544_v2, %v515_v50  ;;  %v550_v3 = vadd.f32 %v545_v14, %v516_v51  ;;  %v5489_v47 = vrot.slane %v3825_v23, %v3901_v32  ;;  %v725_v36 = vpop.permute.xlu1 %724 }
 0x144   : > { %v611_v55 = vmul.f32 %v5487_v54, %v589_v4  ;;  %v612_v13 = vmul.f32 %v5488_v57, %v589_v4  ;;  %v551_v7 = vadd.f32 %v546_v19, %v517_v52  ;;  %v552_v5 = vadd.f32 %v547_v11, %v518_v58 }
 0x145   : > { %v613_v48 = vmul.f32 %v5489_v47, %v589_v4  ;;  %v5490_v49 = vrot.slane %v3801_v17, %v3901_v32  ;;  %v5491_v1 = vrot.slane %v3812_v20, %v3901_v32  ;;  %v5492_v63 = vrot.slane %v3825_v23, %v3983_v12  ;;  %v4324_v29 = vpop.permute.xlu0 %955 }
 0x146   : > { %v582_v14 = vadd.f32 %v577_v9, %v548_v33  ;;  %v583_v6 = vadd.f32 %v578_v61, %v549_v46  ;;  %v584_v27 = vadd.f32 %v579_v0, %v550_v3  ;;  %v5493_v19 = vrot.slane %v3801_v17, %v3983_v12 }
 0x147   : > { %v614_v60 = vmul.f32 %v5490_v49, %v589_v4  ;;  %v615_v34 = vmul.f32 %v5491_v1, %v589_v4  ;;  %v647_v2 = vmul.f32 %v5492_v63, %v623_v39  ;;  %v5494_v56 = vrot.slane %v3812_v20, %v3983_v12 }
 0x148   : > { %v648_v11 = vmul.f32 %v5493_v19, %v623_v39  ;;  %v585_v43 = vadd.f32 %v580_v38, %v551_v7  ;;  %v586_v37 = vadd.f32 %v581_v25, %v552_v5  ;;  %v616_v4 = vadd.f32 %v611_v55, %v582_v14  ;;  %v759_v57 = vpop.permute.xlu1 %758  ;;  %v5505_v19 = vld [vmem:[#allocation26_spill] sm:$0xff] }
 0x149   : > { %v649_v42 = vmul.f32 %v5494_v56, %v623_v39  ;;  %v617_v22 = vadd.f32 %v612_v13, %v583_v6  ;;  %v618_v45 = vadd.f32 %v613_v48, %v584_v27  ;;  %v5495_v9 = vrot.slane %v3831_v24, %v3899_v31  ;;  %v5504_v6 = vld [vmem:[#allocation25_spill] sm:$0xff]  ;;  %v5506_v56 = vld [vmem:[#allocation27_spill] sm:$0xff] }
 0x14a   : > { %v619_v0 = vadd.f32 %v614_v60, %v585_v43  ;;  %v620_v16 = vadd.f32 %v615_v34, %v586_v37  ;;  %v5496_v50 = vrot.slane %v3859_v26, %v3899_v31  ;;  %v5497_v39 = vrot.slane %v3825_v23, %v3899_v31  ;;  %v4347_v60 = vpop.permute.xlu0 %972 }
 0x14b   : > { %v679_v61 = vmul.f32 %v5495_v9, %v657_v62  ;;  %v650_v25 = vadd.f32 %v645_v44, %v616_v4  ;;  %v651_v52 = vadd.f32 %v646_v30, %v617_v22  ;;  %v652_v58 = vadd.f32 %v647_v2, %v618_v45  ;;  %v5508_v4 = vld [vmem:[#allocation28_spill] sm:$0xff]  ;;  %v5509_v45 = vld [vmem:[#allocation29_spill] sm:$0xff] }
 0x14c   : > { %v680_v51 = vmul.f32 %v5496_v50, %v657_v62  ;;  %v681_v38 = vmul.f32 %v5497_v39, %v657_v62  ;;  %v5498_v54 = vrot.slane %v3801_v17, %v3899_v31  ;;  %v653_v13 = vadd.f32 %v648_v11, %v619_v0 }
 0x14d   : > { %v654_v33 = vadd.f32 %v649_v42, %v620_v16  ;;  %v5499_v46 = vrot.slane %v3812_v20, %v3899_v31  ;;  %v5500_v47 = vrot.slane %v3831_v24, %v3920_v41  ;;  %v684_v7 = vadd.f32 %v679_v61, %v650_v25  ;;  %v5510_v61 = vld [vmem:[#allocation21_spill] sm:$0xff]  ;;  %v827_v39 = vpop.permute.xlu1 %826 }
 0x14e   : > { %v682_v55 = vmul.f32 %v5498_v54, %v657_v62  ;;  %v685_v5 = vadd.f32 %v680_v51, %v651_v52  ;;  %v686_v44 = vadd.f32 %v681_v38, %v652_v58  ;;  %v5501_v30 = vrot.slane %v3859_v26, %v3920_v41 }
 0x14f   : > { %v683_v3 = vmul.f32 %v5499_v46, %v657_v62  ;;  %v747_v48 = vmul.f32 %v5500_v47, %v725_v36  ;;  %v5502_v63 = vrot.slane %v3825_v23, %v3920_v41  ;;  %v5503_v62 = vrot.slane %v3801_v17, %v3920_v41 }
 0x150   : > { %v748_v49 = vmul.f32 %v5501_v30, %v725_v36  ;;  %v687_v1 = vadd.f32 %v682_v55, %v653_v13  ;;  %v718_v27 = vadd.f32 %v5504_v6, %v684_v7  ;;  %v719_v11 = vadd.f32 %v5505_v19, %v685_v5  ;;  %v4382_v30 = vpop.permute.xlu0 %976 }
 0x151   : > { %v688_v34 = vadd.f32 %v683_v3, %v654_v33  ;;  %v749_v2 = vmul.f32 %v5502_v63, %v725_v36  ;;  %v750_v14 = vmul.f32 %v5503_v62, %v725_v36  ;;  %v720_v42 = vadd.f32 %v5506_v56, %v686_v44 }
 0x152   : > { %v5507_v43 = vrot.slane %v3812_v20, %v3920_v41  ;;  %v721_v22 = vadd.f32 %v5508_v4, %v687_v1  ;;  %v5511_v0 = vrot.slane %v3831_v24, %v5510_v61  ;;  %v5512_v50 = vrot.slane %v3859_v26, %v5510_v61  ;;  %v862_v19 = vpop.permute.xlu1 %861 }
 0x153   : > { %v722_v9 = vadd.f32 %v5509_v45, %v688_v34  ;;  %v752_v38 = vadd.f32 %v747_v48, %v718_v27  ;;  %v753_v25 = vadd.f32 %v748_v49, %v719_v11  ;;  %v754_v52 = vadd.f32 %v749_v2, %v720_v42 }
 0x154   : > { %v751_v37 = vmul.f32 %v5507_v43, %v725_v36  ;;  %v781_v16 = vmul.f32 %v5511_v0, %v759_v57  ;;  %v782_v51 = vmul.f32 %v5512_v50, %v759_v57  ;;  %v5513_v58 = vrot.slane %v3825_v23, %v5510_v61  ;;  %v4403_v45 = vpop.permute.xlu0 %995 }
 0x155   : > { %v755_v54 = vadd.f32 %v750_v14, %v721_v22  ;;  %v5514_v13 = vrot.slane %v3801_v17, %v5510_v61  ;;  %v5515_v46 = vrot.slane %v3812_v20, %v5510_v61  ;;  %v5516_v47 = vrot.slane %v3812_v20, %v3946_v53 }
 0x156   : > { %v783_v36 = vmul.f32 %v5513_v58, %v759_v57  ;;  %v756_v55 = vadd.f32 %v751_v37, %v722_v9  ;;  %v786_v7 = vadd.f32 %v781_v16, %v752_v38  ;;  %v787_v5 = vadd.f32 %v782_v51, %v753_v25 }
 0x157   : > { %v784_v33 = vmul.f32 %v5514_v13, %v759_v57  ;;  %v785_v3 = vmul.f32 %v5515_v46, %v759_v57  ;;  %v819_v48 = vmul.f32 %v5516_v47, %v4116_v10  ;;  %v5517_v34 = vrot.slane %v3831_v24, %v3974_v21  ;;  %v885_v38 = vpop.permute.xlu1 %884  ;;  %v5523_v13 = vld [vmem:[#allocation20_spill] sm:$0xff] }
 0x158   : > { %v788_v44 = vadd.f32 %v783_v36, %v754_v52  ;;  %v5518_v2 = vrot.slane %v3859_v26, %v3974_v21  ;;  %v5519_v62 = vrot.slane %v3825_v23, %v3974_v21  ;;  %v820_v10 = vadd.f32 %v4252_v59, %v786_v7  ;;  %v897_v59 = vld [vmem:[#allocation12] sm:$0x1f] }
 0x159   : > { %v789_v49 = vadd.f32 %v784_v33, %v755_v54  ;;  %v790_v1 = vadd.f32 %v785_v3, %v756_v55  ;;  %v849_v63 = vmul.f32 %v5517_v34, %v827_v39  ;;  %v821_v6 = vadd.f32 %v4258_v35, %v787_v5  ;;  %v1000_v5 = vpop.permute.xlu0 %999 }
 0x15a   : > { %v850_v57 = vmul.f32 %v5518_v2, %v827_v39  ;;  %v851_v14 = vmul.f32 %v5519_v62, %v827_v39  ;;  %v822_v27 = vadd.f32 %v4264_v8, %v788_v44  ;;  %v5520_v11 = vrot.slane %v3801_v17, %v3974_v21 }
 0x15b   : > { %v5521_v56 = vrot.slane %v3812_v20, %v3974_v21  ;;  %v823_v42 = vadd.f32 %v4270_v40, %v789_v49  ;;  %v824_v43 = vadd.f32 %v819_v48, %v790_v1  ;;  %v854_v23 = vadd.f32 %v849_v63, %v820_v10  ;;  %v5522_v40 = vld [vmem:[#allocation30_spill] sm:$0xff]  ;;  %v950_v7 = vpop.permute.xlu1 %949 }
 0x15c   : > { %v852_v24 = vmul.f32 %v5520_v11, %v827_v39  ;;  %v855_v37 = vadd.f32 %v850_v57, %v821_v6  ;;  %v856_v4 = vadd.f32 %v851_v14, %v822_v27  ;;  %v902_v51 = vrot.slane %v897_v59, %v3901_v32 }
 0x15d   : > { %v853_v26 = vmul.f32 %v5521_v56, %v827_v39  ;;  %v864_v8 = vmul.f32 %v862_v19, %v854_v23  ;;  %v906_v39 = vrot.slane %v897_v59, %v3983_v12  ;;  %v910_v36 = vrot.slane %v897_v59, %v3899_v31  ;;  %v1019_v11 = vpop.permute.xlu0 %1018 }
 0x15e   : > { %v857_v22 = vadd.f32 %v852_v24, %v823_v42  ;;  %v865_v9 = vmul.f32 %v862_v19, %v855_v37  ;;  %v866_v0 = vmul.f32 %v862_v19, %v856_v4  ;;  %v914_v33 = vrot.slane %v897_v59, %v5523_v13 }
 0x15f   : > { %v858_v35 = vadd.f32 %v853_v26, %v824_v43  ;;  %v873_v25 = vadd.f32 %v5522_v40, %v864_v8  ;;  %v918_v46 = vrot.slane %v897_v59, %v3920_v41  ;;  %v958_v8 = vsel %vm957_vm6, %v950_v7, %v4304_v28 }
 0x160   : > { %v867_v16 = vmul.f32 %v862_v19, %v857_v22  ;;  %v874_v52 = vadd.f32 %v5522_v40, %v865_v9  ;;  %v875_v58 = vadd.f32 %v5522_v40, %v866_v0 }
 0x161   : > { %v868_v50 = vmul.f32 %v862_v19, %v858_v35  ;;  %vm878_vm0 = vcmp.ge.f32.partialorder %v873_v25, 0.0  ;;  %v887_v3 = vmul.f32 %v885_v38, %v873_v25  ;;  %v954_v19 = vpop.permute.xlu1 %953  ;;  %v1029_v26 = vpop.permute.xlu0 %1028 }
 0x162   : > { %v876_v54 = vadd.f32 %v5522_v40, %v867_v16  ;;  %vm879_vm1 = vcmp.ge.f32.partialorder %v874_v52, 0.0  ;;  %vm880_vm2 = vcmp.ge.f32.partialorder %v875_v58, 0.0  ;;  %v888_v47 = vmul.f32 %v885_v38, %v874_v52 }
 0x163   : > { %v877_v55 = vadd.f32 %v5522_v40, %v868_v50  ;;  %v889_v48 = vmul.f32 %v885_v38, %v875_v58  ;;  %v892_v1 = vsel %vm878_vm0, %v873_v25, %v887_v3  ;;  %v959_v9 = vsel %vm957_vm6, %v954_v19, %v4324_v29 }
 0x164   : > { %vm881_vm3 = vcmp.ge.f32.partialorder %v876_v54, 0.0  ;;  %v890_v44 = vmul.f32 %v885_v38, %v876_v54  ;;  %v893_v34 = vsel %vm879_vm1, %v874_v52, %v888_v47  ;;  %v4415_v2 = vmul.f32 %v902_v51, %v892_v1 }
 0x165   : > { %vm882_vm4 = vcmp.ge.f32.partialorder %v877_v55, 0.0  ;;  %v891_v49 = vmul.f32 %v885_v38, %v877_v55  ;;  %v894_v63 = vsel %vm880_vm2, %v875_v58, %v889_v48  ;;  %v4417_v14 = vmul.f32 %v906_v39, %v893_v34  ;;  %v971_v24 = vpop.permute.xlu1 %970  ;;  %v1033_v43 = vpop.permute.xlu0 %1032 }
 0x166   : > { %v895_v57 = vsel %vm881_vm3, %v876_v54, %v890_v44  ;;  %v4419_v10 = vmul.f32 %v910_v36, %v894_v63  ;;  %929 = vst [vmem:[#allocation2] sm:$0xff] %v4415_v2  ;;  %v965_v16 = vadd.f32 %v958_v8, %v3806_v18  ;;  %v967_v50 = vadd.f32 %v959_v9, %v3812_v20 }
 0x167   : > { %v896_v62 = vsel %vm882_vm4, %v877_v55, %v891_v49  ;;  %v4421_v6 = vmul.f32 %v914_v33, %v895_v57  ;;  %v979_v39 = vsel %vm978_vm7, %v971_v24, %v4347_v60  ;;  %v964_v38 = vadd.f32 %v950_v7, %v3795_v15 }
 0x168   : > { %v928_v27 = vmul.f32 %v918_v46, %v896_v62  ;;  %v986_v18 = vadd.f32 %v4347_v60, %v965_v16  ;;  %v988_v20 = vadd.f32 %v4382_v30, %v967_v50  ;;  %v966_v52 = vadd.f32 %v954_v19, %v3801_v17 }
 0x169   : > { %v975_v56 = vpop.permute.xlu1 %974  ;;  %v1048_v4 = vpop.permute.xlu0 %1047  ;;  %v985_v58 = vadd.f32 %v979_v39, %v964_v38  ;;  %vm1139_vm1 = vcmask 449536   ;;  %vm1144_vm2 = vcmask 785408   ;;  %vm1374_vm3 = vcmask 850944  }
 0x16a   : > { %934 = vst.msk [vmem:[#allocation2 + $0x20] sm:$0xff] %vm933_vm5, %v928_v27  ;;  %v980_v29 = vsel %vm978_vm7, %v975_v56, %v4382_v30  ;;  %vm1390_vm4 = vcmask 842752  }
 0x16b   : > { %v987_v55 = vadd.f32 %v980_v29, %v966_v52 }
 0x16d   : > { %v994_v42 = vpop.permute.xlu1 %993  ;;  %v1052_v22 = vpop.permute.xlu0 %1051 }
 0x16e   : > { %v1002_v40 = vsel %vm1001_vm8, %v994_v42, %v4403_v45  ;;  %v1008_v33 = vadd.f32 %v994_v42, %v985_v58 }
 0x16f   : > { %v1009_v36 = vadd.f32 %v1002_v40, %v986_v18 }
 0x171   : > { %v998_v23 = vpop.permute.xlu1 %997  ;;  %v1067_v51 = vpop.permute.xlu0 %1066 }
 0x172   : > { %v1003_v28 = vsel %vm1001_vm8, %v998_v23, %v1000_v5  ;;  %v1010_v47 = vadd.f32 %v998_v23, %v987_v55 }
 0x173   : > { %v1011_v54 = vadd.f32 %v1003_v28, %v988_v20 }
 0x174   : > { %v1024_v34 = vadd.f32 %v1019_v11, %v1010_v47  ;;  %v4461_v47 = vld [vmem:[#allocation2 + $0x20] sm:$0xff] }
 0x175   : > { %v1017_v37 = vpop.permute.xlu1 %1016  ;;  %v1071_v15 = vpop.permute.xlu0 %1070  ;;  %v1025_v30 = vadd.f32 %v1019_v11, %v1011_v54 }
 0x176   : > { %v1023_v3 = vadd.f32 %v1017_v37, %v1009_v36  ;;  %v1022_v48 = vadd.f32 %v1017_v37, %v1008_v33 }
 0x179   : > { %v1027_v59 = vpop.permute.xlu1 %1026  ;;  %v1086_v49 = vpop.permute.xlu0 %1085 }
 0x17a   : > { %v1035_v45 = vsel %vm1034_vm9, %v1027_v59, %v1029_v26  ;;  %v1041_v17 = vadd.f32 %v1027_v59, %v1022_v48 }
 0x17b   : > { %v1042_v7 = vadd.f32 %v1035_v45, %v1023_v3  ;;  %v3475_v45 = vmov 16  }
 0x17d   : > { %v1031_v35 = vpop.permute.xlu1 %1030  ;;  %v1061_v27 = vadd.f32 %v1048_v4, %v1042_v7  ;;  %v1090_v8 = vpop.permute.xlu0 %1089 }
 0x17e   : > { %v1036_v60 = vsel %vm1034_vm9, %v1031_v35, %v1033_v43  ;;  %v1043_v19 = vadd.f32 %v1031_v35, %v1024_v34 }
 0x17f   : > { %v1044_v1 = vadd.f32 %v1036_v60, %v1025_v30  ;;  %v5430_v60 = vmov 17   ;;  %v4465_v30 = vld [vmem:[#allocation10] sm:$0xff] }
 0x181   : > { %v1046_v0 = vpop.permute.xlu1 %1045  ;;  %v1063_v43 = vadd.f32 %v1052_v22, %v1044_v1  ;;  %v1117_v40 = vpop.permute.xlu0 %1116 }
 0x182   : > { %v1054_v5 = vsel %vm1053_vm10, %v1046_v0, %v1048_v4 }
 0x183   : > { %v1060_v63 = vadd.f32 %v1054_v5, %v1041_v17 }
 0x185   : > { %v1050_v25 = vpop.permute.xlu1 %1049  ;;  %v4455_v33 = vpop.permute.xlu0 %1150 }
 0x186   : > { %v1055_v62 = vsel %vm1053_vm10, %v1050_v25, %v1052_v22 }
 0x187   : > { %v1062_v37 = vadd.f32 %v1055_v62, %v1043_v19  ;;  %v5428_v19 = vmov 20  }
 0x189   : > { %v1065_v46 = vpop.permute.xlu1 %1064  ;;  %v1197_v7 = vpop.permute.xlu0 %1196 }
 0x18a   : > { %v1073_v57 = vsel %vm1072_vm11, %v1065_v46, %v1067_v51  ;;  %v1079_v24 = vadd.f32 %v1065_v46, %v1060_v63  ;;  %v1199_v17 = vmul.f32 %v1197_v7, %v4417_v14  ;;  %v1200_v1 = vmul.f32 %v1197_v7, %v4419_v10 }
 0x18b   : > { %v1080_v42 = vadd.f32 %v1073_v57, %v1061_v27 }
 0x18d   : > { %v1069_v44 = vpop.permute.xlu1 %1068  ;;  %v1099_v16 = vadd.f32 %v1086_v49, %v1080_v42  ;;  %v1215_v63 = vpop.permute.xlu0 %1214 }
 0x18e   : > { %v1074_v56 = vsel %vm1072_vm11, %v1069_v44, %v1071_v15  ;;  %v1081_v9 = vadd.f32 %v1069_v44, %v1062_v37  ;;  %v5524_v15 = vld [vmem:[#allocation18_spill] sm:$0xff]  ;;  %v5429_v44 = vmov 18   ;;  %v1217_v62 = vmul.f32 %v1215_v63, %v4415_v2 }
 0x18f   : > { %v1082_v11 = vadd.f32 %v1074_v56, %v1063_v43  ;;  %v1103_v28 = vmul.f32 0.11111111, %v1099_v16 }
 0x191   : > { %v1084_v26 = vpop.permute.xlu1 %1083  ;;  %v1101_v35 = vadd.f32 %v1090_v8, %v1082_v11  ;;  %vm1107_vm15 = vcmp.ge.f32.partialorder %v1103_v28, 0.0 }
 0x192   : > { %v1092_v23 = vsel %vm1091_vm12, %v1084_v26, %v1086_v49 }
 0x193   : > { %v1098_v59 = vadd.f32 %v1092_v23, %v1079_v24  ;;  %v1105_v20 = vmul.f32 0.11111111, %v1101_v35  ;;  %v5427_v24 = vmov 21  }
 0x195   : > { %v1088_v0 = vpop.permute.xlu1 %1087  ;;  %v1102_v51 = vmul.f32 0.11111111, %v1098_v59  ;;  %v1122_v36 = vmul.f32 %v1117_v40, %v1105_v20  ;;  %vm1109_vm0 = vcmp.ge.f32.partialorder %v1105_v20, 0.0 }
 0x196   : > { %v1093_v50 = vsel %vm1091_vm12, %v1088_v0, %v1090_v8 }
 0x197   : > { %v1100_v4 = vadd.f32 %v1093_v50, %v1081_v9  ;;  %vm1106_vm13 = vcmp.ge.f32.partialorder %v1102_v51, 0.0  ;;  %v1126_v55 = vsel %vm1109_vm0, %v1105_v20, %v1122_v36  ;;  %vm1487_vm0 = vcmask 130048  }
 0x199   : > { %v1104_v39 = vmul.f32 0.11111111, %v1100_v4  ;;  %v1112_v38 = vpop.permute.xlu1 %1111 }
 0x19a   : > { %v1119_v25 = vmul.f32 %v1112_v38, %v1102_v51  ;;  %v1120_v29 = vmul.f32 %v1112_v38, %v1103_v28 }
 0x19b   : > { %vm1108_vm14 = vcmp.ge.f32.partialorder %v1104_v39, 0.0  ;;  %v1121_v22 = vmul.f32 %v1117_v40, %v1104_v39 }
 0x19c   : > { %v1123_v18 = vsel %vm1106_vm13, %v1102_v51, %v1119_v25  ;;  %v1124_v58 = vsel %vm1107_vm15, %v1103_v28, %v1120_v29  ;;  %vm1553_vm13 = vcmask 900096   ;;  %vm1449_vm15 = vcmask 146432  }
 0x19d   : > { %1131 = vrot.lane.b32.xlu1 %v1123_v18, %s3474_s10  ;;  %v1125_v52 = vsel %vm1108_vm14, %v1104_v39, %v1121_v22  ;;  %v1161_v54 = vpop.permute.xlu1 %1160  ;;  %vm1571_vm14 = vcmask 728064  }
 0x19e   : > { %1135 = vrot.lane.b32.xlu0 %v1125_v52, %s3474_s10  ;;  %v1163_v46 = vmul.f32 %v1161_v54, %v4419_v10  ;;  %v1164_v5 = vmul.f32 %v1161_v54, %v4421_v6  ;;  %v5425_v54 = vmov 22  }
 0x1a1   : > { %1133 = vrot.lane.b32.xlu1 %v1124_v58, %s3474_s10  ;;  %v1178_v3 = vpop.permute.xlu1 %1177 }
 0x1a2   : > { %1242 = vperm.xlu0 %3108, %v5524_v15   ;;  %v1181_v48 = vmul.f32 %v1178_v3, %v4461_v47  ;;  %v1180_v49 = vmul.f32 %v1178_v3, %v4421_v6 }
 0x1a5   : > { %1137 = vrot.lane.b32.xlu1 %v1126_v55, %s3474_s10  ;;  %v5421_v55 = vmov 24  }
 0x1a6   : > { %3109 = vset.pattern.permute.xlu0 %v3475_v45  ;;  %v1226_v34 = vpop.permute.xlu1 %1225 }
 0x1a7   : > { %1259 = vperm.xlu0 %3109, %v5524_v15   ;;  %v1228_v57 = vmul.f32 %v1226_v34, %v4417_v14  ;;  %v1229_v27 = vmul.f32 %v1226_v34, %v4419_v10  ;;  %v5423_v15 = vmov 23  }
 0x1a9   : > { %1167 = vrot.lane.b32.xlu1 %v1163_v46, %s3462_s24  ;;  %v5419_v46 = vmov 25  }
 0x1ab   : > { %3110 = vset.pattern.permute.xlu0 %v5430_v60 }
 0x1ac   : > { %1276 = vperm.xlu0 %3110, %v4465_v30  }
 0x1ad   : > { %1186 = vrot.lane.b32.xlu1 %v1181_v48, %s3465_s26 }
 0x1b0   : > { %1169 = vrot.lane.b32.xlu0 %v1164_v5, %s3462_s24  ;;  %s3494_s24 = smov 102  }
 0x1b1   : > { %1203 = vrot.lane.b32.xlu1 %v1199_v17, %s3467_s7  ;;  %3111 = vset.pattern.permute.xlu0 %v5429_v44 }
 0x1b4   : > { %1184 = vrot.lane.b32.xlu0 %v1180_v49, %s3465_s26 }
 0x1b5   : > { %1205 = vrot.lane.b32.xlu1 %v1200_v1, %s3467_s7  ;;  %s3497_s7 = smov 125  }
 0x1b8   : > { %1232 = vrot.lane.b32.xlu0 %v1228_v57, %s3469_s8 }
 0x1b9   : > { %1219 = vrot.lane.b32.xlu1 %v1217_v62, %s3468_s11  ;;  %s3498_s11 = smov 16  }
 0x1bc   : > { %1305 = vperm.xlu0 %3111, %v4465_v30  }
 0x1bd   : > { %1311 = vperm.xlu1 %3112, %v4465_v30  }
 0x1c0   : > { %3113 = vset.pattern.permute.xlu0 %v5428_v19 }
 0x1c1   : > { %1234 = vrot.lane.b32.xlu1 %v1229_v27, %s3469_s8  ;;  %1321 = vperm.xlu0 %3113, %v4465_v30   ;;  %s3499_s8 = smov 34  }
 0x1c2   : > { %3114 = vset.pattern.permute.xlu1 %v5427_v24 }
 0x1c5   : > { %3118 = vset.pattern.permute.xlu0 %v5419_v46 }
 0x20f   : > { %v1132_v56 = vpop.permute.xlu1 %1131 }
 0x210   : > { %v1136_v43 = vpop.permute.xlu0 %1135 }
 0x213   : > { %v1134_v26 = vpop.permute.xlu1 %1133 }
 0x214   : > { %v1140_v42 = vsel %vm1139_vm1, %v1132_v56, %v1134_v26 }
 0x215   : > { %1145 = vst.msk [vmem:[%s4491_s16] sm:$0xff] %vm1144_vm2, %v1140_v42 }
 0x217   : > { %v1138_v23 = vpop.permute.xlu1 %1137 }
 0x218   : > { %v1141_v37 = vsel %vm1139_vm1, %v1136_v43, %v1138_v23 }
 0x219   : > { %1146 = vst.msk [vmem:[%s4491_s16 + $0x8] sm:$0xff] %vm1144_vm2, %v1141_v37 }
 0x21b   : > { %v4498_v59 = vpop.permute.xlu1 %1167 }
 0x21f   : > { %v4502_v9 = vpop.permute.xlu1 %1186 }
 0x221   : > { %v1243_v8 = vpop.permute.xlu0 %1242 }
 0x222   : > { %v1245_v11 = vmul.f32 %v1243_v8, %v4421_v6  ;;  %v1246_v0 = vmul.f32 %v1243_v8, %v4461_v47  ;;  %v5417_v8 = vmov 26  }
 0x223   : > { %v4507_v4 = vpop.permute.xlu1 %1203 }
 0x224   : > { %1249 = vrot.lane.b32.xlu1 %v1245_v11, %s3470_s15  ;;  %v5413_v11 = vmov 28  }
 0x226   : > { %v1260_v16 = vpop.permute.xlu0 %1259 }
 0x227   : > { %v1262_v50 = vmul.f32 %v1260_v16, %v4419_v10  ;;  %v1263_v35 = vmul.f32 %v1260_v16, %v4421_v6  ;;  %v4514_v38 = vpop.permute.xlu1 %1205  ;;  %v5415_v16 = vmov 27  }
 0x228   : > { %1251 = vrot.lane.b32.xlu1 %v1246_v0, %s3470_s15  ;;  %v5411_v0 = vmov 29  }
 0x22b   : > { %v1277_v51 = vpop.permute.xlu0 %1276  ;;  %v4523_v29 = vpop.permute.xlu1 %1219 }
 0x22c   : > { %1266 = vrot.lane.b32.xlu1 %v1262_v50, %s3471_s27  ;;  %v1279_v40 = vmul.f32 %v1277_v51, %v4421_v6  ;;  %v1280_v25 = vmul.f32 %v1277_v51, %v4461_v47  ;;  %v5409_v50 = vmov 30   ;;  %v5407_v51 = vmov 31  }
 0x22f   : > { %v4511_v39 = vpop.permute.xlu0 %1169 }
 0x230   : > { %1268 = vrot.lane.b32.xlu1 %v1263_v35, %s3471_s27  ;;  %s3507_s27 = smov 60  }
 0x233   : > { %v4517_v28 = vpop.permute.xlu0 %1184 }
 0x234   : > { %1283 = vrot.lane.b32.xlu1 %v1279_v40, %s3472_s30 }
 0x237   : > { %v4521_v22 = vpop.permute.xlu0 %1232 }
 0x238   : > { %1285 = vrot.lane.b32.xlu1 %v1280_v25, %s3472_s30 }
 0x23b   : > { %v4526_v18 = vpop.permute.xlu0 %1305 }
 0x23c   : > { %v1312_v20 = vpop.permute.xlu1 %1311 }
 0x23d   : > { %v1314_v52 = vmul.f32 %v1312_v20, %v4415_v2 }
 0x23f   : > { %1316 = vrot.lane.b32.xlu1 %v1314_v52, %s3465_s26  ;;  %s3495_s26 = smov 18  }
 0x240   : > { %v1322_v58 = vpop.permute.xlu0 %1321  ;;  %v4540_v3 = vpop.permute.xlu1 %1234 }
 0x241   : > { %v1324_v36 = vmul.f32 %v1322_v58, %v4415_v2 }
 0x243   : > { %1326 = vrot.lane.b32.xlu1 %v1324_v36, %s3480_s13 }
 0x247   : > { %1331 = vperm.xlu1 %3114, %v4465_v30  }
 0x24b   : > { %3115 = vset.pattern.permute.xlu1 %v5425_v54  ;;  %v1308_v54 = vmul.f32 %v4526_v18, %v4415_v2 }
 0x24c   : > { %1341 = vperm.xlu1 %3115, %v4465_v30  }
 0x250   : > { %3116 = vset.pattern.permute.xlu1 %v5423_v15  ;;  %v3502_v15 = vmov 34  }
 0x251   : > { %1351 = vperm.xlu1 %3116, %v4465_v30  }
 0x255   : > { %3117 = vset.pattern.permute.xlu1 %v5421_v55 }
 0x256   : > { %1363 = vperm.xlu1 %3117, %v4465_v30  }
 0x25a   : > { %3120 = vset.pattern.permute.xlu1 %v5415_v16  ;;  %v1153_v16 = vmul.f32 %v4455_v33, %v4421_v6 }
 0x25c   : > { %v1174_v46 = vadd.f32 %v4498_v59, %v1153_v16 }
 0x296   : > { %v4542_v48 = vpop.permute.xlu1 %1249 }
 0x29a   : > { %v4544_v7 = vpop.permute.xlu1 %1251 }
 0x29e   : > { %v4546_v5 = vpop.permute.xlu1 %1266 }
 0x2a2   : > { %v4548_v17 = vpop.permute.xlu1 %1268 }
 0x2a6   : > { %v4550_v49 = vpop.permute.xlu1 %1283 }
 0x2aa   : > { %v4552_v1 = vpop.permute.xlu1 %1285 }
 0x2b1   : > { %v4554_v34 = vpop.permute.xlu1 %1316 }
 0x2b5   : > { %v4556_v63 = vpop.permute.xlu1 %1326 }
 0x2c6   : > { %v1332_v57 = vpop.permute.xlu1 %1331 }
 0x2c7   : > { %v1334_v62 = vmul.f32 %v1332_v57, %v4415_v2 }
 0x2c9   : > { %1336 = vrot.lane.b32.xlu0 %v1334_v62, %s3470_s15  ;;  %s3501_s15 = smov 13  }
 0x2cb   : > { %v1342_v27 = vpop.permute.xlu1 %1341 }
 0x2cc   : > { %v1344_v56 = vmul.f32 %v1342_v27, %v4415_v2 }
 0x2ce   : > { %1346 = vrot.lane.b32.xlu0 %v1344_v56, %s3472_s30  ;;  %s3508_s30 = smov 92  }
 0x2d0   : > { %v1352_v26 = vpop.permute.xlu1 %1351 }
 0x2d1   : > { %v1354_v42 = vmul.f32 %v1352_v26, %v4415_v2 }
 0x2d3   : > { %1356 = vrot.lane.b32.xlu0 %v1354_v42, %s3485_s29  ;;  %v3496_v42 = vmov 32   ;;  %s3510_s29 = smov 89  }
 0x2d5   : > { %v1364_v43 = vpop.permute.xlu1 %1363 }
 0x2d6   : > { %v1366_v23 = vmul.f32 %v1364_v43, %v4415_v2  ;;  %v1367_v37 = vmul.f32 %v1364_v43, %v4417_v14 }
 0x2d8   : > { %1372 = vrot.lane.b32.xlu1 %v1367_v37, %s3486_s23  ;;  %1370 = vrot.lane.b32.xlu0 %v1366_v23, %s3486_s23 }
 0x2dc   : > { %1379 = vperm.xlu0 %3118, %v4465_v30  }
 0x2e0   : > { %3119 = vset.pattern.permute.xlu0 %v5417_v8  ;;  %v1188_v8 = vsel %vm978_vm7, %v4517_v28, %v4502_v9  ;;  %v1319_v28 = vadd.f32 %v4554_v34, %v1308_v54  ;;  %v1287_v54 = vsel %vm1091_vm12, %v4550_v49, %v4552_v1  ;;  %v3505_v34 = vmov 38  }
 0x2e1   : > { %1395 = vperm.xlu0 %3119, %v4465_v30   ;;  %v1191_v55 = vadd.f32 %v1188_v8, %v1174_v46  ;;  %v1253_v46 = vsel %vm1053_vm10, %v4542_v48, %v4544_v7  ;;  %vm1406_vm7 = vcmask 834560   ;;  %v3506_v49 = vmov 37  }
 0x2e2   : > { %v1329_v8 = vadd.f32 %v4556_v63, %v1319_v28  ;;  %vm1467_vm10 = vcmask 1022976   ;;  %vm1535_vm12 = vcmask 752640  }
 0x2e5   : > { %3121 = vset.pattern.permute.xlu0 %v5413_v11 }
 0x2e6   : > { %1438 = vperm.xlu0 %3121, %v4465_v30  }
 0x2ea   : > { %3122 = vset.pattern.permute.xlu0 %v5411_v0 }
 0x2eb   : > { %1456 = vperm.xlu0 %3122, %v4465_v30  }
 0x2ef   : > { %3123 = vset.pattern.permute.xlu0 %v5409_v50 }
 0x2f0   : > { %1476 = vperm.xlu0 %3123, %v4465_v30  }
 0x2f4   : > { %3124 = vset.pattern.permute.xlu0 %v5407_v51 }
 0x2f5   : > { %1495 = vperm.xlu0 %3124, %v4465_v30  }
 0x33b   : > { %v4579_v35 = vpop.permute.xlu0 %1336 }
 0x340   : > { %v4581_v40 = vpop.permute.xlu0 %1346 }
 0x345   : > { %v4583_v25 = vpop.permute.xlu0 %1356 }
 0x34a   : > { %v4585_v20 = vpop.permute.xlu0 %1370 }
 0x35b   : > { %v1380_v52 = vpop.permute.xlu0 %1379 }
 0x35c   : > { %v1382_v58 = vmul.f32 %v1380_v52, %v4415_v2  ;;  %v1383_v36 = vmul.f32 %v1380_v52, %v4417_v14 }
 0x35e   : > { %1386 = vrot.lane.b32.xlu1 %v1382_v58, %s3493_s9 }
 0x360   : > { %v1396_v57 = vpop.permute.xlu0 %1395 }
 0x361   : > { %v1398_v62 = vmul.f32 %v1396_v57, %v4415_v2  ;;  %v1399_v27 = vmul.f32 %v1396_v57, %v4417_v14 }
 0x362   : > { %1388 = vrot.lane.b32.xlu1 %v1383_v36, %s3493_s9  ;;  %s3512_s9 = smov 124  }
 0x365   : > { %v1439_v56 = vpop.permute.xlu0 %1438 }
 0x366   : > { %1402 = vrot.lane.b32.xlu1 %v1398_v62, %s3494_s24  ;;  %v1441_v26 = vmul.f32 %v1439_v56, %v4419_v10  ;;  %v1442_v43 = vmul.f32 %v1439_v56, %v4421_v6  ;;  %v3500_v56 = vmov 33  }
 0x367   : > { %3126 = vset.pattern.permute.xlu0 %v3500_v56 }
 0x36a   : > { %1404 = vrot.lane.b32.xlu1 %v1399_v27, %s3494_s24  ;;  %v1457_v23 = vpop.permute.xlu0 %1456 }
 0x36b   : > { %v1459_v37 = vmul.f32 %v1457_v23, %v4421_v6  ;;  %v1460_v52 = vmul.f32 %v1457_v23, %v4461_v47 }
 0x36e   : > { %1428 = vperm.xlu1 %3120, %v4465_v30  }
 0x36f   : > { %v1477_v58 = vpop.permute.xlu0 %1476 }
 0x370   : > { %v1479_v36 = vmul.f32 %v1477_v58, %v4417_v14  ;;  %v1480_v57 = vmul.f32 %v1477_v58, %v4419_v10 }
 0x372   : > { %1445 = vrot.lane.b32.xlu1 %v1441_v26, %s3495_s26  ;;  %v1373_v26 = vpop.permute.xlu1 %1372 }
 0x373   : > { %3125 = vset.pattern.permute.xlu1 %v3496_v42  ;;  %v1375_v48 = vsel %vm1374_vm3, %v4585_v20, %v1373_v26 }
 0x374   : > { %v1496_v62 = vpop.permute.xlu0 %1495 }
 0x375   : > { %v1498_v27 = vmul.f32 %v1496_v62, %v4415_v2 }
 0x376   : > { %1447 = vrot.lane.b32.xlu1 %v1442_v43, %s3495_s26  ;;  %s3521_s26 = smov 76  }
 0x37a   : > { %1463 = vrot.lane.b32.xlu1 %v1459_v37, %s3497_s7 }
 0x37e   : > { %1465 = vrot.lane.b32.xlu1 %v1460_v52, %s3497_s7  ;;  %s3522_s7 = smov 73  }
 0x382   : > { %1483 = vrot.lane.b32.xlu1 %v1479_v36, %s3498_s11 }
 0x386   : > { %1485 = vrot.lane.b32.xlu1 %v1480_v57, %s3498_s11  ;;  %s2915_s11 = smul.u32 768, %s3577_s22  ;;  %s2771_s22 = scalar_lea.sflag [#allocation6], %s3760_s6 }
 0x38a   : > { %1500 = vrot.lane.b32.xlu1 %v1498_v27, %s3499_s8 }
 0x38e   : > { %1506 = vperm.xlu1 %3125, %v4465_v30  }
 0x392   : > { %3130 = vset.pattern.permute.xlu1 %v3506_v49 }
 0x3d0   : > { %v1387_v42 = vpop.permute.xlu1 %1386 }
 0x3d4   : > { %v1389_v43 = vpop.permute.xlu1 %1388 }
 0x3d8   : > { %v1403_v23 = vpop.permute.xlu1 %1402 }
 0x3dc   : > { %v1405_v37 = vpop.permute.xlu1 %1404 }
 0x3dd   : > { %v1407_v28 = vsel %vm1406_vm7, %v1403_v23, %v1405_v37 }
 0x3ed   : > { %v4602_v52 = vpop.permute.xlu1 %1428 }
 0x3f1   : > { %v4604_v36 = vpop.permute.xlu1 %1445 }
 0x3f5   : > { %v4606_v58 = vpop.permute.xlu1 %1447 }
 0x3f9   : > { %v4608_v57 = vpop.permute.xlu1 %1463 }
 0x3fd   : > { %v4610_v62 = vpop.permute.xlu1 %1465 }
 0x401   : > { %v4612_v27 = vpop.permute.xlu1 %1483 }
 0x405   : > { %v4614_v51 = vpop.permute.xlu1 %1485 }
 0x409   : > { %v4616_v56 = vpop.permute.xlu1 %1500 }
 0x40d   : > { %v1507_v50 = vpop.permute.xlu1 %1506 }
 0x40e   : > { %v1509_v0 = vmul.f32 %v1507_v50, %v4417_v14  ;;  %v1510_v11 = vmul.f32 %v1507_v50, %v4419_v10  ;;  %v3503_v50 = vmov 35  }
 0x410   : > { %1515 = vrot.lane.b32.xlu1 %v1510_v11, %s3501_s15  ;;  %1513 = vrot.lane.b32.xlu0 %v1509_v0, %s3501_s15  ;;  %v1210_v11 = vadd.f32 %v4507_v4, %v1191_v55  ;;  %v3504_v55 = vmov 36  }
 0x412   : > { %v1222_v0 = vadd.f32 %v4523_v29, %v1210_v11  ;;  %v1339_v11 = vadd.f32 %v4579_v35, %v1329_v8  ;;  %v1391_v35 = vsel %vm1390_vm4, %v1387_v42, %v1389_v43 }
 0x414   : > { %1524 = vperm.xlu0 %3126, %v4465_v30   ;;  %v1349_v18 = vadd.f32 %v4581_v40, %v1339_v11  ;;  %v3511_v11 = vmov 39  }
 0x418   : > { %3127 = vset.pattern.permute.xlu0 %v3502_v15  ;;  %v1239_v15 = vadd.f32 %v4521_v22, %v1222_v0 }
 0x419   : > { %1542 = vperm.xlu0 %3127, %v4465_v30  }
 0x41a   : > { %v1256_v16 = vadd.f32 %v1253_v46, %v1239_v15 }
 0x41c   : > { %v1273_v63 = vadd.f32 %v4546_v5, %v1256_v16 }
 0x41d   : > { %3128 = vset.pattern.permute.xlu0 %v3503_v50  ;;  %v1359_v50 = vadd.f32 %v4583_v25, %v1349_v18 }
 0x41e   : > { %1560 = vperm.xlu0 %3128, %v4465_v30   ;;  %v4651_v0 = vadd.f32 %v1287_v54, %v1273_v63 }
 0x41f   : > { %v1377_v40 = vadd.f32 %v1375_v48, %v1359_v50 }
 0x421   : > { %v1393_v46 = vadd.f32 %v1391_v35, %v1377_v40 }
 0x422   : > { %3129 = vset.pattern.permute.xlu0 %v3504_v55 }
 0x423   : > { %1599 = vperm.xlu0 %3129, %v4465_v30   ;;  %v1409_v20 = vadd.f32 %v1407_v28, %v1393_v46 }
 0x427   : > { %3131 = vset.pattern.permute.xlu0 %v3505_v34  ;;  %v1468_v34 = vsel %vm1467_vm10, %v4608_v57, %v4610_v62 }
 0x428   : > { %1615 = vperm.xlu0 %3131, %v4465_v30  }
 0x42c   : > { %1296 = vrot.lane.b32.xlu0 %v4651_v0, %s3474_s10 }
 0x430   : > { %1411 = vrot.lane.b32.xlu0 %v1409_v20, %s3507_s27  ;;  %s5311_s27 = scalar_lea.hbm %s5362_s5, %s2915_s11 }
 0x482   : > { %v4655_v26 = vpop.permute.xlu0 %1513  ;;  %v1516_v18 = vpop.permute.xlu1 %1515 }
 0x493   : > { %v1525_v25 = vpop.permute.xlu0 %1524 }
 0x494   : > { %v1527_v15 = vmul.f32 %v1525_v25, %v4421_v6  ;;  %v1528_v42 = vmul.f32 %v1525_v25, %v4461_v47 }
 0x496   : > { %1531 = vrot.lane.b32.xlu1 %v1527_v15, %s3508_s30 }
 0x498   : > { %v1543_v43 = vpop.permute.xlu0 %1542 }
 0x499   : > { %v1545_v23 = vmul.f32 %v1543_v43, %v4419_v10  ;;  %v1546_v37 = vmul.f32 %v1543_v43, %v4421_v6  ;;  %v1431_v10 = vmul.f32 %v4602_v52, %v4421_v6 }
 0x49a   : > { %1533 = vrot.lane.b32.xlu1 %v1528_v42, %s3508_s30 }
 0x49b   : > { %v1453_v63 = vadd.f32 %v4604_v36, %v1431_v10  ;;  %v1432_v10 = vmul.f32 %v4602_v52, %v4461_v47 }
 0x49d   : > { %v1561_v8 = vpop.permute.xlu0 %1560  ;;  %v1471_v50 = vadd.f32 %v1468_v34, %v1453_v63 }
 0x49e   : > { %1549 = vrot.lane.b32.xlu1 %v1545_v23, %s3509_s12  ;;  %v1563_v55 = vmul.f32 %v1561_v8, %v4421_v6  ;;  %v1564_v16 = vmul.f32 %v1561_v8, %v4461_v47  ;;  %v1154_v8 = vmul.f32 %v4455_v33, %v4461_v47  ;;  %v1236_v47 = vsel %vm1034_vm9, %v4521_v22, %v4540_v3 }
 0x49f   : > { %v1491_v40 = vadd.f32 %v4612_v27, %v1471_v50  ;;  %v1488_v50 = vsel %vm1487_vm0, %v4612_v27, %v4614_v51  ;;  %v1270_v51 = vsel %vm1072_vm11, %v4546_v5, %v4548_v17  ;;  %v3513_v5 = vmov 40  }
 0x4a0   : > { %vm1699_vm9 = vcmask 621568  }
 0x4a1   : > { %v1503_v46 = vadd.f32 %v4616_v56, %v1491_v40 }
 0x4a2   : > { %1551 = vrot.lane.b32.xlu1 %v1546_v37, %s3509_s12  ;;  %v1171_v37 = vsel %vm957_vm6, %v4498_v59, %v4511_v39  ;;  %v1207_v59 = vsel %vm1001_vm8, %v4507_v4, %v4514_v38  ;;  %vm1517_vm6 = vcmask 105472   ;;  %vm1683_vm8 = vcmask 637952   ;;  %s3523_s12 = smov [#allocation13]  }
 0x4a3   : > { %v1521_v20 = vadd.f32 %v4655_v26, %v1503_v46 }
 0x4a6   : > { %1567 = vrot.lane.b32.xlu1 %v1563_v55, %s3510_s29  ;;  %v1175_v55 = vadd.f32 %v1171_v37, %v1154_v8 }
 0x4aa   : > { %1569 = vrot.lane.b32.xlu1 %v1564_v16, %s3510_s29  ;;  %v4678_v16 = vpop.permute.xlu0 %1599  ;;  %s3368_s29 = sshll.u32 %s3523_s12, 4  ;;  %s3369_s29 = int_to_ptr.vmem [resolvable:$false] %s3368_s29 }
 0x4ae   : > { %1605 = vperm.xlu1 %3130, %v4465_v30  }
 0x4b2   : > { %3132 = vset.pattern.permute.xlu1 %v3511_v11  ;;  %v1192_v11 = vadd.f32 %v4502_v9, %v1175_v55  ;;  %v1616_v9 = vpop.permute.xlu0 %1615 }
 0x4b3   : > { %v1618_v38 = vmul.f32 %v1616_v9, %v4415_v2 }
 0x4b4   : > { %v1211_v34 = vadd.f32 %v1207_v59, %v1192_v11  ;;  %v3519_v11 = vmov 44  }
 0x4b6   : > { %v1223_v52 = vadd.f32 %v4523_v29, %v1211_v34 }
 0x508   : > { %v1532_v54 = vpop.permute.xlu1 %1531 }
 0x50c   : > { %v1534_v48 = vpop.permute.xlu1 %1533 }
 0x50d   : > { %v1536_v49 = vsel %vm1535_vm12, %v1532_v54, %v1534_v48  ;;  %v1450_v54 = vsel %vm1449_vm15, %v4604_v36, %v4606_v58  ;;  %v1240_v36 = vadd.f32 %v1236_v47, %v1223_v52  ;;  %v1518_v58 = vsel %vm1517_vm6, %v4655_v26, %v1516_v18 }
 0x50e   : > { %v1539_v15 = vadd.f32 %v1536_v49, %v1521_v20  ;;  %v1454_v33 = vadd.f32 %v1450_v54, %v1432_v10  ;;  %v5525_v26 = vmov 3   ;;  %v1297_v20 = vpop.permute.xlu0 %1296  ;;  %v5526_v54 = vmov 0  }
 0x510   : > { %v1550_v35 = vpop.permute.xlu1 %1549 }
 0x512   : > { %v1412_v10 = vpop.permute.xlu0 %1411 }
 0x514   : > { %v1552_v28 = vpop.permute.xlu1 %1551 }
 0x515   : > { %v1554_v6 = vsel %vm1553_vm13, %v1550_v35, %v1552_v28  ;;  %v1472_v35 = vadd.f32 %v4610_v62, %v1454_v33  ;;  %v1257_v62 = vadd.f32 %v4544_v7, %v1240_v36  ;;  %v3514_v7 = vmov 41   ;;  %v4748_v36 = vld [vmem:[#allocation10 + $0x18] sm:$0xff] }
 0x516   : > { %v1557_v42 = vadd.f32 %v1554_v6, %v1539_v15 }
 0x517   : > { %v1492_v4 = vadd.f32 %v1488_v50, %v1472_v35  ;;  %v1274_v3 = vadd.f32 %v1270_v51, %v1257_v62  ;;  %v5527_v51 = vmov 4   ;;  %v4764_v62 = vld [vmem:[#allocation9 + $0x10] sm:$0xff] }
 0x518   : > { %v1568_v25 = vpop.permute.xlu1 %1567 }
 0x519   : > { %v1504_v22 = vadd.f32 %v4616_v56, %v1492_v4  ;;  %v4707_v27 = vadd.f32 %v4552_v1, %v1274_v3  ;;  %v3515_v56 = vmov 42   ;;  %v3516_v1 = vmov 43  }
 0x51a   : > { %3136 = vset.pattern.permute.xlu0 %v3516_v1  ;;  %v5529_v3 = vmov 1   ;;  %v3213_v1 = vld [vmem:[#allocation2] sm:$0xff] }
 0x51b   : > { %v1522_v29 = vadd.f32 %v1518_v58, %v1504_v22  ;;  %v4752_v58 = vld [vmem:[#allocation10 + $0x8] sm:$0xff]  ;;  %v4767_v22 = vld [vmem:[#allocation9] sm:$0xff] }
 0x51c   : > { %v1570_v57 = vpop.permute.xlu1 %1569 }
 0x51d   : > { %v1572_v43 = vsel %vm1571_vm14, %v1568_v25, %v1570_v57  ;;  %v1540_v40 = vadd.f32 %v1534_v48, %v1522_v29  ;;  %v4772_v29 = vld [vmem:[#allocation9 + $0x18] sm:$0xff] }
 0x51e   : > { %v1575_v23 = vadd.f32 %v1572_v43, %v1557_v42 }
 0x51f   : > { %v1558_v46 = vadd.f32 %v1552_v28, %v1540_v40  ;;  %v5530_v40 = vmov 2  }
 0x520   : > { %1579 = vrot.lane.b32.xlu0 %v1575_v23, %s3501_s15 }
 0x521   : > { %v1576_v17 = vadd.f32 %v1570_v57, %v1558_v46  ;;  %v1414_v46 = vadd.f32 %v1412_v10, %v4651_v0 }
 0x52d   : > { %v1606_v39 = vpop.permute.xlu1 %1605 }
 0x52e   : > { %v1608_v63 = vmul.f32 %v1606_v39, %v4415_v2 }
 0x530   : > { %1610 = vrot.lane.b32.xlu1 %v1608_v63, %s3480_s13  ;;  %s3517_s13 = smov 100  }
 0x534   : > { %1620 = vrot.lane.b32.xlu1 %v1618_v38, %s3512_s9  ;;  %v4745_v38 = vld [vmem:[#allocation10 + $0x10] sm:$0xff]  ;;  %s3370_s9 = scalar_lea.vmem %s3369_s29, 1536 }
 0x538   : > { %1625 = vperm.xlu1 %3132, %v4465_v30  }
 0x53c   : > { %1298 = vrot.lane.b32.xlu1 %v4707_v27, %s3474_s10 }
 0x53d   : > { %3133 = vset.pattern.permute.xlu1 %v3513_v5 }
 0x540   : > { %1581 = vrot.lane.b32.xlu1 %v1576_v17, %s3501_s15  ;;  %v1415_v17 = vadd.f32 %v1412_v10, %v4707_v27 }
 0x544   : > { %1635 = vperm.xlu1 %3133, %v4465_v30  }
 0x548   : > { %3134 = vset.pattern.permute.xlu1 %v3514_v7 }
 0x549   : > { %1645 = vperm.xlu1 %3134, %v4465_v30  }
 0x54d   : > { %3135 = vset.pattern.permute.xlu1 %v3515_v56 }
 0x54e   : > { %1657 = vperm.xlu1 %3135, %v4465_v30  }
 0x552   : > { %3138 = vset.pattern.permute.xlu1 %v5525_v26 }
 0x592   : > { %v4734_v59 = vpop.permute.xlu0 %1579 }
 0x5a2   : > { %v4716_v18 = vpop.permute.xlu1 %1610 }
 0x5a6   : > { %v4718_v48 = vpop.permute.xlu1 %1620 }
 0x5b7   : > { %v1626_v28 = vpop.permute.xlu1 %1625 }
 0x5b8   : > { %v1628_v49 = vmul.f32 %v1626_v28, %v4415_v2  ;;  %v1602_v28 = vmul.f32 %v3213_v1, %v4678_v16 }
 0x5ba   : > { %1630 = vrot.lane.b32.xlu0 %v1628_v49, %s3486_s23  ;;  %s3518_s23 = smov 80   ;;  %v1613_v49 = vadd.f32 %v4716_v18, %v1602_v28  ;;  %v5536_v28 = vmov 9  }
 0x5bb   : > { %v1299_v25 = vpop.permute.xlu1 %1298 }
 0x5bc   : > { %v1300_v6 = vsel %vm1139_vm1, %v1297_v20, %v1299_v25  ;;  %v1623_v0 = vadd.f32 %v4718_v48, %v1613_v49  ;;  %v1586_v48 = vadd.f32 %v4734_v59, %v1414_v46 }
 0x5bd   : > { %1302 = vst.msk [vmem:[#allocation3] sm:$0xff] %vm1144_vm2, %v1300_v6 }
 0x5bf   : > { %v4724_v15 = vpop.permute.xlu1 %1581 }
 0x5c0   : > { %v1583_v5 = vsel %vm1517_vm6, %v4734_v59, %v4724_v15 }
 0x5c1   : > { %v1587_v7 = vadd.f32 %v1583_v5, %v1415_v17 }
 0x5c3   : > { %v1636_v42 = vpop.permute.xlu1 %1635 }
 0x5c4   : > { %v1638_v57 = vmul.f32 %v1636_v42, %v4415_v2 }
 0x5c6   : > { %1640 = vrot.lane.b32.xlu0 %v1638_v57, %s3494_s24  ;;  %s3520_s24 = smov 78  }
 0x5c8   : > { %v1646_v43 = vpop.permute.xlu1 %1645 }
 0x5c9   : > { %v1648_v23 = vmul.f32 %v1646_v43, %v4415_v2 }
 0x5cb   : > { %1650 = vrot.lane.b32.xlu0 %v1648_v23, %s3517_s13 }
 0x5cd   : > { %v1658_v37 = vpop.permute.xlu1 %1657 }
 0x5ce   : > { %v1660_v8 = vmul.f32 %v1658_v37, %v4415_v2  ;;  %v1661_v55 = vmul.f32 %v1658_v37, %v4417_v14 }
 0x5d0   : > { %1666 = vrot.lane.b32.xlu1 %v1661_v55, %s3518_s23  ;;  %1664 = vrot.lane.b32.xlu0 %v1660_v8, %s3518_s23 }
 0x5d4   : > { %1672 = vperm.xlu0 %3136, %v4465_v30  }
 0x5d8   : > { %3137 = vset.pattern.permute.xlu0 %v3519_v11 }
 0x5d9   : > { %1688 = vperm.xlu0 %3137, %v4465_v30  }
 0x5dd   : > { %3141 = vset.pattern.permute.xlu0 %v5526_v54 }
 0x62c   : > { %v1631_v39 = vpop.permute.xlu0 %1630 }
 0x62d   : > { %v1633_v25 = vadd.f32 %v1631_v39, %v1623_v0  ;;  %v5537_v0 = vmov 10  }
 0x638   : > { %v1641_v34 = vpop.permute.xlu0 %1640 }
 0x639   : > { %v1643_v42 = vadd.f32 %v1641_v34, %v1633_v25 }
 0x63d   : > { %v4736_v33 = vpop.permute.xlu0 %1650 }
 0x63e   : > { %v1653_v15 = vadd.f32 %v4736_v33, %v1643_v42 }
 0x642   : > { %v4738_v63 = vpop.permute.xlu0 %1664  ;;  %v1667_v56 = vpop.permute.xlu1 %1666 }
 0x643   : > { %v1668_v27 = vsel %vm933_vm5, %v4738_v63, %v1667_v56 }
 0x644   : > { %v1670_v23 = vadd.f32 %v1668_v27, %v1653_v15  ;;  %v5538_v27 = vmov 11  }
 0x653   : > { %v1673_v50 = vpop.permute.xlu0 %1672 }
 0x654   : > { %v1675_v9 = vmul.f32 %v1673_v50, %v4415_v2  ;;  %v1676_v35 = vmul.f32 %v1673_v50, %v4417_v14 }
 0x656   : > { %1679 = vrot.lane.b32.xlu1 %v1675_v9, %s3520_s24 }
 0x658   : > { %v1689_v47 = vpop.permute.xlu0 %1688 }
 0x659   : > { %v1691_v52 = vmul.f32 %v1689_v47, %v4415_v2  ;;  %v1692_v4 = vmul.f32 %v1689_v47, %v4417_v14  ;;  %v5528_v2 = vmov 5   ;;  %v4760_v14 = vld [vmem:[#allocation9 + $0x8] sm:$0xff] }
 0x65a   : > { %1681 = vrot.lane.b32.xlu1 %v1676_v35, %s3520_s24 }
 0x65e   : > { %1695 = vrot.lane.b32.xlu1 %v1691_v52, %s3521_s26  ;;  %v5533_v52 = vmov 6  }
 0x662   : > { %1697 = vrot.lane.b32.xlu1 %v1692_v4, %s3521_s26 }
 0x666   : > { %1723 = vperm.xlu1 %3138, %v4465_v30  }
 0x66a   : > { %1732 = vperm.xlu1 %3138, %v4745_v38  }
 0x66e   : > { %1737 = vperm.xlu1 %3138, %v4748_v36  }
 0x672   : > { %3139 = vset.pattern.permute.xlu1 %v5527_v51 }
 0x673   : > { %1749 = vperm.xlu1 %3139, %v4752_v58  }
 0x677   : > { %1753 = vperm.xlu1 %3139, %v4745_v38  }
 0x67b   : > { %3140 = vset.pattern.permute.xlu1 %v5528_v2 }
 0x67c   : > { %1769 = vperm.xlu1 %3140, %v4465_v30  }
 0x680   : > { %1777 = vperm.xlu1 %3140, %v4745_v38  }
 0x684   : > { %1781 = vperm.xlu1 %3140, %v4748_v36  }
 0x688   : > { %3142 = vset.pattern.permute.xlu1 %v5526_v54 }
 0x689   : > { %1803 = vperm.xlu1 %3142, %v4760_v14  }
 0x68d   : > { %1808 = vperm.xlu1 %3142, %v4764_v62  }
 0x691   : > { %3143 = vset.pattern.permute.xlu1 %v5529_v3 }
 0x692   : > { %1829 = vperm.xlu1 %3143, %v4767_v22  }
 0x696   : > { %1837 = vperm.xlu1 %3143, %v4764_v62  }
 0x69a   : > { %1841 = vperm.xlu1 %3143, %v4772_v29  }
 0x69e   : > { %3146 = vset.pattern.permute.xlu1 %v5530_v40 }
 0x69f   : > { %1861 = vperm.xlu1 %3146, %v4760_v14  }
 0x6a3   : > { %1865 = vperm.xlu1 %3146, %v4764_v62  }
 0x6a7   : > { %3148 = vset.pattern.permute.xlu1 %v5525_v26 }
 0x6a8   : > { %1885 = vperm.xlu1 %3148, %v4767_v22  }
 0x6ac   : > { %1893 = vperm.xlu1 %3148, %v4764_v62  }
 0x6b0   : > { %1897 = vperm.xlu1 %3148, %v4772_v29  }
 0x6b4   : > { %3150 = vset.pattern.permute.xlu1 %v5527_v51 }
 0x6b5   : > { %1917 = vperm.xlu1 %3150, %v4760_v14  }
 0x6b9   : > { %1418 = vrot.lane.b32.xlu1 %v1414_v46, %s3474_s10 }
 0x6bd   : > { %1592 = vrot.lane.b32.xlu1 %v1587_v7, %s3474_s10 }
 0x6c8   : > { %v1680_v20 = vpop.permute.xlu1 %1679 }
 0x6cc   : > { %v1682_v6 = vpop.permute.xlu1 %1681 }
 0x6cd   : > { %v1684_v43 = vsel %vm1683_vm8, %v1680_v20, %v1682_v6 }
 0x6ce   : > { %v1686_v37 = vadd.f32 %v1684_v43, %v1670_v23  ;;  %v5540_v43 = vmov 12  }
 0x6d0   : > { %v1696_v57 = vpop.permute.xlu1 %1695 }
 0x6d4   : > { %v1698_v16 = vpop.permute.xlu1 %1697 }
 0x6d5   : > { %v1700_v8 = vsel %vm1699_vm9, %v1696_v57, %v1698_v16 }
 0x6d6   : > { %v1702_v18 = vadd.f32 %v1700_v8, %v1686_v37 }
 0x6d8   : > { %1704 = vrot.lane.b32.xlu0 %v1702_v18, %s3522_s7 }
 0x6dc   : > { %1798 = vperm.xlu0 %3141, %v4767_v22  }
 0x6e0   : > { %1813 = vperm.xlu0 %3141, %v4772_v29  }
 0x6e4   : > { %3144 = vset.pattern.permute.xlu0 %v5529_v3 }
 0x6e5   : > { %1833 = vperm.xlu0 %3144, %v4760_v14  }
 0x6e9   : > { %3145 = vset.pattern.permute.xlu0 %v5530_v40 }
 0x6ea   : > { %1857 = vperm.xlu0 %3145, %v4767_v22  }
 0x6ee   : > { %1869 = vperm.xlu0 %3145, %v4772_v29  }
 0x6f2   : > { %3147 = vset.pattern.permute.xlu0 %v5525_v26  ;;  %v4816_v26 = vpop.permute.xlu1 %1723 }
 0x6f3   : > { %1727 = vperm.xlu0 %3147, %v4752_v58  }
 0x6f6   : > { %v4818_v55 = vpop.permute.xlu1 %1732 }
 0x6f7   : > { %1889 = vperm.xlu0 %3147, %v4760_v14  }
 0x6fa   : > { %v4820_v11 = vpop.permute.xlu1 %1737 }
 0x6fb   : > { %3149 = vset.pattern.permute.xlu0 %v5527_v51  ;;  %5531 = vst [vmem:[#allocation25_spill] sm:$0xff] %v4820_v11 }
 0x6fc   : > { %1745 = vperm.xlu0 %3149, %v4465_v30  }
 0x6fe   : > { %v4822_v30 = vpop.permute.xlu1 %1749 }
 0x700   : > { %1757 = vperm.xlu0 %3149, %v4748_v36  }
 0x702   : > { %v4824_v54 = vpop.permute.xlu1 %1753 }
 0x704   : > { %1913 = vperm.xlu0 %3149, %v4767_v22  }
 0x706   : > { %v4826_v10 = vpop.permute.xlu1 %1769 }
 0x708   : > { %1420 = vrot.lane.b32.xlu0 %v1415_v17, %s3474_s10  ;;  %v5535_v17 = vmov 8  }
 0x70a   : > { %v4828_v39 = vpop.permute.xlu1 %1777 }
 0x70c   : > { %1590 = vrot.lane.b32.xlu0 %v1586_v48, %s3474_s10 }
 0x70e   : > { %v4830_v59 = vpop.permute.xlu1 %1781 }
 0x70f   : > { %5532 = vst [vmem:[#allocation26_spill] sm:$0xff] %v4830_v59 }
 0x710   : > { %1925 = vperm.xlu0 %3149, %v4772_v29  }
 0x712   : > { %v4832_v34 = vpop.permute.xlu1 %1803 }
 0x714   : > { %3151 = vset.pattern.permute.xlu0 %v5528_v2 }
 0x716   : > { %v4834_v33 = vpop.permute.xlu1 %1808 }
 0x71a   : > { %v4838_v35 = vpop.permute.xlu1 %1829 }
 0x71e   : > { %v4842_v47 = vpop.permute.xlu1 %1837 }
 0x722   : > { %v4850_v4 = vpop.permute.xlu1 %1841 }
 0x726   : > { %v4858_v40 = vpop.permute.xlu1 %1861 }
 0x72a   : > { %v4866_v5 = vpop.permute.xlu1 %1865 }
 0x72e   : > { %v4876_v56 = vpop.permute.xlu1 %1885 }
 0x732   : > { %v4885_v20 = vpop.permute.xlu1 %1893 }
 0x736   : > { %v4893_v6 = vpop.permute.xlu1 %1897 }
 0x73a   : > { %v4901_v15 = vpop.permute.xlu1 %1917 }
 0x73e   : > { %v1419_v37 = vpop.permute.xlu1 %1418 }
 0x742   : > { %v1593_v18 = vpop.permute.xlu1 %1592 }
 0x74a   : > { %v1705_v63 = vpop.permute.xlu0 %1704 }
 0x74b   : > { %v1707_v50 = vadd.f32 %v1705_v63, %v1586_v48  ;;  %v1708_v9 = vadd.f32 %v1705_v63, %v1587_v7 }
 0x74d   : > { %1713 = vrot.lane.b32.xlu0 %v1708_v9, %s3474_s10  ;;  %1711 = vrot.lane.b32.xlu1 %v1707_v50, %s3474_s10  ;;  %v5541_v50 = vmov 13   ;;  %v5542_v9 = vmov 14   ;;  %s2784_s10 = sshll.u32 %s4491_s16, 4  ;;  %s5304_s10 = int_to_ptr.vmem [resolvable:$true] %s2784_s10 }
 0x74e   : > { %s3364_s30 = scalar_lea.vmem %s5304_s10, 768  ;;  %p3371_p3 = scmp.lt.s32.totalorder %s5304_s10, %s3369_s29 }
 0x74f   : > { %p3365_p4 = scmp.ne.s32.totalorder %s5304_s10, %s3364_s30  ;;  %p3372_p7 = scmp.lt.s32.totalorder %s3370_s9, %s3364_s30 }
 0x751   : > { %1773 = vperm.xlu0 %3151, %v4752_v58   ;;  %1921 = vperm.xlu1 %3150, %v4764_v62   ;;  %p3366_p6 = pnand %p3365_p4, %p3708_p1  ;;  %p3373_p10 = por %p3372_p7, %p3371_p3 }
 0x753   : > { %p3367_p8 = pneg %p3366_p6 }
 0x755   : > { %1945 = vperm.xlu0 %3151, %v4760_v14   ;;  %3152 = vset.pattern.permute.xlu1 %v5528_v2  ;;  %v5534_v2 = vmov 7   ;;  %p3374_p13 = pnand %p3373_p10, %p3367_p8 }
 0x756   : > { %1941 = vperm.xlu1 %3152, %v4767_v22  }
 0x759   : > { %3153 = vset.pattern.permute.xlu0 %v5533_v52 }
 0x75a   : > { %1969 = vperm.xlu0 %3153, %v4767_v22   ;;  %1949 = vperm.xlu1 %3152, %v4764_v62  }
 0x75b   : > { %v4852_v51 = vpop.permute.xlu0 %1798 }
 0x75e   : > { %1981 = vperm.xlu0 %3153, %v4772_v29   ;;  %1953 = vperm.xlu1 %3152, %v4772_v29  }
 0x75f   : > { %v4856_v3 = vpop.permute.xlu0 %1813 }
 0x762   : > { %3156 = vset.pattern.permute.xlu0 %v5534_v2  ;;  %3154 = vset.pattern.permute.xlu1 %v5533_v52 }
 0x763   : > { %2001 = vperm.xlu0 %3156, %v4760_v14   ;;  %1973 = vperm.xlu1 %3154, %v4760_v14  }
 0x764   : > { %v4864_v46 = vpop.permute.xlu0 %1833 }
 0x767   : > { %3157 = vset.pattern.permute.xlu0 %v5535_v17  ;;  %1977 = vperm.xlu1 %3154, %v4764_v62  }
 0x768   : > { %2025 = vperm.xlu0 %3157, %v4767_v22  }
 0x769   : > { %v4871_v7 = vpop.permute.xlu0 %1857 }
 0x76b   : > { %3155 = vset.pattern.permute.xlu1 %v5534_v2 }
 0x76c   : > { %2037 = vperm.xlu0 %3157, %v4772_v29   ;;  %1997 = vperm.xlu1 %3155, %v4767_v22  }
 0x76d   : > { %v4878_v1 = vpop.permute.xlu0 %1869 }
 0x770   : > { %3160 = vset.pattern.permute.xlu0 %v5536_v28  ;;  %2005 = vperm.xlu1 %3155, %v4764_v62  }
 0x771   : > { %2057 = vperm.xlu0 %3160, %v4760_v14  }
 0x772   : > { %v4883_v49 = vpop.permute.xlu0 %1727 }
 0x774   : > { %2009 = vperm.xlu1 %3155, %v4772_v29  }
 0x775   : > { %3161 = vset.pattern.permute.xlu0 %v5537_v0 }
 0x776   : > { %2081 = vperm.xlu0 %3161, %v4767_v22   ;;  %v4890_v25 = vpop.permute.xlu0 %1889 }
 0x778   : > { %3158 = vset.pattern.permute.xlu1 %v5535_v17 }
 0x779   : > { %2029 = vperm.xlu1 %3158, %v4760_v14  }
 0x77a   : > { %2093 = vperm.xlu0 %3161, %v4772_v29  }
 0x77b   : > { %v4897_v42 = vpop.permute.xlu0 %1745 }
 0x77d   : > { %2033 = vperm.xlu1 %3158, %v4764_v62  }
 0x77e   : > { %3164 = vset.pattern.permute.xlu0 %v5538_v27 }
 0x77f   : > { %2113 = vperm.xlu0 %3164, %v4760_v14   ;;  %v4904_v57 = vpop.permute.xlu0 %1757 }
 0x780   : > { %5539 = vst [vmem:[#allocation27_spill] sm:$0xff] %v4904_v57 }
 0x781   : > { %3159 = vset.pattern.permute.xlu1 %v5536_v28  ;;  %v5543_v28 = vmov 15  }
 0x782   : > { %2053 = vperm.xlu1 %3159, %v4767_v22  }
 0x783   : > { %3165 = vset.pattern.permute.xlu0 %v5540_v43  ;;  %v4909_v23 = vpop.permute.xlu0 %1913 }
 0x784   : > { %2137 = vperm.xlu0 %3165, %v4767_v22  }
 0x786   : > { %2061 = vperm.xlu1 %3159, %v4764_v62  }
 0x787   : > { %v1421_v16 = vpop.permute.xlu0 %1420 }
 0x788   : > { %v1422_v8 = vsel %vm1139_vm1, %v1419_v37, %v1421_v16  ;;  %2149 = vperm.xlu0 %3165, %v4772_v29  }
 0x789   : > { %1424 = vst.msk [vmem:[#allocation3 + $0x8] sm:$0xff] %vm1144_vm2, %v1422_v8 }
 0x78a   : > { %2065 = vperm.xlu1 %3159, %v4772_v29  }
 0x78b   : > { %v1591_v48 = vpop.permute.xlu0 %1590 }
 0x78c   : > { %v1594_v63 = vsel %vm1139_vm1, %v1591_v48, %v1593_v18  ;;  %3168 = vset.pattern.permute.xlu0 %v5541_v50 }
 0x78d   : > { %1596 = vst.msk [vmem:[#allocation3 + $0x10] sm:$0xff] %vm1144_vm2, %v1594_v63  ;;  %2169 = vperm.xlu0 %3168, %v4760_v14  }
 0x78e   : > { %3162 = vset.pattern.permute.xlu1 %v5537_v0  ;;  %v5544_v0 = vmov 19  }
 0x78f   : > { %2085 = vperm.xlu1 %3162, %v4760_v14  }
 0x791   : > { %3169 = vset.pattern.permute.xlu0 %v5542_v9 }
 0x792   : > { %2193 = vperm.xlu0 %3169, %v4767_v22  }
 0x793   : > { %2089 = vperm.xlu1 %3162, %v4764_v62  }
 0x796   : > { %2205 = vperm.xlu0 %3169, %v4772_v29  }
 0x797   : > { %3163 = vset.pattern.permute.xlu1 %v5538_v27  ;;  %v1926_v27 = vpop.permute.xlu0 %1925 }
 0x798   : > { %2109 = vperm.xlu1 %3163, %v4767_v22  }
 0x79a   : > { %3172 = vset.pattern.permute.xlu0 %v5543_v28 }
 0x79b   : > { %2225 = vperm.xlu0 %3172, %v4760_v14  }
 0x79c   : > { %2117 = vperm.xlu1 %3163, %v4764_v62  }
 0x79f   : > { %3173 = vset.pattern.permute.xlu0 %v3475_v45 }
 0x7a0   : > { %2249 = vperm.xlu0 %3173, %v4767_v22   ;;  %2121 = vperm.xlu1 %3163, %v4772_v29  }
 0x7a4   : > { %2261 = vperm.xlu0 %3173, %v4772_v29   ;;  %3166 = vset.pattern.permute.xlu1 %v5540_v43  ;;  %v1718_v43 = vld [vmem:[#allocation3] sm:$0xff] }
 0x7a5   : > { %2141 = vperm.xlu1 %3166, %v4760_v14   ;;  %v1740_v37 = vmul.f32 %v4816_v26, %v1718_v43 }
 0x7a7   : > { %v1760_v48 = vadd.f32 %v4897_v42, %v1740_v37 }
 0x7a8   : > { %3176 = vset.pattern.permute.xlu0 %v5430_v60 }
 0x7a9   : > { %2281 = vperm.xlu0 %3176, %v4760_v14   ;;  %2145 = vperm.xlu1 %3166, %v4764_v62   ;;  %v1784_v26 = vmul.f32 %v4826_v10, %v1760_v48  ;;  %vm1764_vm5 = vcmp.ge.f32.partialorder %v1760_v48, 0.0 }
 0x7ab   : > { %v4966_v63 = vsel %vm1764_vm5, %v1760_v48, %v1784_v26 }
 0x7ac   : > { %v4972_v42 = vrot.slane %v4966_v63, %v3901_v32 }
 0x7ad   : > { %3177 = vset.pattern.permute.xlu0 %v5429_v44  ;;  %3167 = vset.pattern.permute.xlu1 %v5541_v50  ;;  %v5545_v50 = vmov 22   ;;  %v5547_v44 = vmov 24  }
 0x7ae   : > { %2305 = vperm.xlu0 %3177, %v4767_v22   ;;  %2165 = vperm.xlu1 %3167, %v4767_v22   ;;  %v1823_v10 = vmul.f32 %v4972_v42, %v4856_v3  ;;  %v5546_v3 = vmov 23  }
 0x7b2   : > { %2317 = vperm.xlu0 %3177, %v4772_v29   ;;  %2173 = vperm.xlu1 %3167, %v4764_v62  }
 0x7b6   : > { %3180 = vset.pattern.permute.xlu0 %v5544_v0  ;;  %2177 = vperm.xlu1 %3167, %v4772_v29  }
 0x7b7   : > { %2337 = vperm.xlu0 %3180, %v4760_v14  }
 0x7ba   : > { %3170 = vset.pattern.permute.xlu1 %v5542_v9  ;;  %v4976_v9 = vrot.slane %v4966_v63, %v3983_v12 }
 0x7bb   : > { %3181 = vset.pattern.permute.xlu0 %v5428_v19  ;;  %2197 = vperm.xlu1 %3170, %v4760_v14  }
 0x7bc   : > { %2361 = vperm.xlu0 %3181, %v4767_v22  }
 0x7bf   : > { %2201 = vperm.xlu1 %3170, %v4764_v62   ;;  %v1714_v16 = vpop.permute.xlu0 %1713  ;;  %v1712_v8 = vpop.permute.xlu1 %1711 }
 0x7c0   : > { %v1715_v18 = vsel %vm1139_vm1, %v1712_v8, %v1714_v16  ;;  %2373 = vperm.xlu0 %3181, %v4772_v29   ;;  %v1821_v16 = vmul.f32 %v4972_v42, %v4832_v34  ;;  %v1849_v8 = vmul.f32 %v4976_v9, %v4864_v46  ;;  %v5001_v34 = vrot.slane %v4966_v63, %v5523_v13 }
 0x7c1   : > { %1717 = vst.msk [vmem:[#allocation3 + $0x18] sm:$0xff] %vm1144_vm2, %v1715_v18  ;;  %v4994_v18 = vrot.slane %v4966_v63, %v3899_v31 }
 0x7c2   : > { %v1853_v48 = vadd.f32 %v1849_v8, %v1821_v16  ;;  %v5014_v16 = vrot.slane %v4966_v63, %v3920_v41 }
 0x7c3   : > { %3171 = vset.pattern.permute.xlu1 %v5543_v28  ;;  %v1851_v28 = vmul.f32 %v4976_v9, %v4850_v4  ;;  %v1879_v46 = vmul.f32 %v4994_v18, %v4878_v1  ;;  %v1877_v19 = vmul.f32 %v4994_v18, %v4858_v40  ;;  %v5548_v40 = vmov 17  }
 0x7c4   : > { %3184 = vset.pattern.permute.xlu0 %v5427_v24  ;;  %2221 = vperm.xlu1 %3171, %v4767_v22   ;;  %v1719_v24 = vld [vmem:[#allocation3 + $0x8] sm:$0xff] }
 0x7c5   : > { %2393 = vperm.xlu0 %3184, %v4760_v14   ;;  %v1855_v4 = vadd.f32 %v1851_v28, %v1823_v10  ;;  %v1820_v10 = vmul.f32 %v4972_v42, %v4852_v51  ;;  %v1848_v28 = vmul.f32 %v4976_v9, %v4838_v35  ;;  %v1741_v1 = vmul.f32 %v4883_v49, %v1719_v24 }
 0x7c6   : > { %v1881_v60 = vadd.f32 %v1877_v19, %v1853_v48  ;;  %v1907_v51 = vmul.f32 %v5001_v34, %v4893_v6  ;;  %v1935_v35 = vmul.f32 %v5014_v16, %v1926_v27  ;;  %v5029_v19 = vrot.slane %v4966_v63, %v5510_v61 }
 0x7c7   : > { %v1883_v8 = vadd.f32 %v1879_v46, %v1855_v4  ;;  %v1905_v4 = vmul.f32 %v5001_v34, %v4890_v25  ;;  %v1852_v46 = vadd.f32 %v1848_v28, %v1820_v10  ;;  %v1761_v24 = vadd.f32 %v4822_v30, %v1741_v1 }
 0x7c8   : > { %2229 = vperm.xlu1 %3171, %v4764_v62   ;;  %v1876_v27 = vmul.f32 %v4994_v18, %v4871_v7  ;;  %v5037_v25 = vrot.slane %v4966_v63, %v3946_v53  ;;  %v5549_v7 = vmov 25  }
 0x7c9   : > { %3185 = vset.pattern.permute.xlu0 %v5545_v50  ;;  %v1911_v11 = vadd.f32 %v1907_v51, %v1883_v8  ;;  %v1909_v49 = vadd.f32 %v1905_v4, %v1881_v60  ;;  %v1933_v8 = vmul.f32 %v5014_v16, %v4901_v15  ;;  %vm1765_vm11 = vcmp.ge.f32.partialorder %v1761_v24, 0.0 }
 0x7ca   : > { %2417 = vperm.xlu0 %3185, %v4767_v22   ;;  %v1880_v30 = vadd.f32 %v1876_v27, %v1852_v46  ;;  %v5054_v46 = vrot.slane %v4966_v63, %v3974_v21 }
 0x7cc   : > { %2233 = vperm.xlu1 %3171, %v4772_v29  }
 0x7ce   : > { %2429 = vperm.xlu0 %3185, %v4772_v29  }
 0x7d0   : > { %v1774_v43 = vpop.permute.xlu0 %1773  ;;  %3174 = vset.pattern.permute.xlu1 %v3475_v45  ;;  %v4985_v37 = vpop.permute.xlu1 %1921 }
 0x7d1   : > { %2253 = vperm.xlu1 %3174, %v4760_v14   ;;  %v1785_v28 = vmul.f32 %v1774_v43, %v1761_v24 }
 0x7d2   : > { %3188 = vset.pattern.permute.xlu0 %v5546_v3 }
 0x7d3   : > { %2449 = vperm.xlu0 %3188, %v4760_v14  }
 0x7d4   : > { %v1946_v45 = vpop.permute.xlu0 %1945 }
 0x7d5   : > { %2257 = vperm.xlu1 %3174, %v4764_v62   ;;  %v1942_v26 = vpop.permute.xlu1 %1941  ;;  %v1961_v60 = vmul.f32 %v5029_v19, %v1946_v45 }
 0x7d7   : > { %3189 = vset.pattern.permute.xlu0 %v5547_v44 }
 0x7d8   : > { %2473 = vperm.xlu0 %3189, %v4767_v22  }
 0x7d9   : > { %v1970_v59 = vpop.permute.xlu0 %1969  ;;  %3175 = vset.pattern.permute.xlu1 %v5548_v40  ;;  %v5019_v57 = vpop.permute.xlu1 %1949  ;;  %v1939_v40 = vadd.f32 %v1935_v35, %v1911_v11  ;;  %v1937_v11 = vadd.f32 %v1933_v8, %v1909_v49  ;;  %v1904_v35 = vmul.f32 %v5001_v34, %v4876_v56  ;;  %v5550_v56 = vmov 26  }
 0x7da   : > { %2277 = vperm.xlu1 %3175, %v4767_v22   ;;  %v1960_v8 = vmul.f32 %v5029_v19, %v1942_v26 }
 0x7db   : > { %v1965_v45 = vadd.f32 %v1961_v60, %v1937_v11 }
 0x7dc   : > { %2485 = vperm.xlu0 %3189, %v4772_v29  }
 0x7dd   : > { %v1982_v48 = vpop.permute.xlu0 %1981  ;;  %v1954_v6 = vpop.permute.xlu1 %1953 }
 0x7de   : > { %v1963_v10 = vmul.f32 %v5029_v19, %v1954_v6  ;;  %2285 = vperm.xlu1 %3175, %v4764_v62   ;;  %v1991_v1 = vmul.f32 %v5037_v25, %v1982_v48  ;;  %v5050_v6 = vsel %vm1765_vm11, %v1761_v24, %v1785_v28  ;;  %v1908_v48 = vadd.f32 %v1904_v35, %v1880_v30 }
 0x7df   : > { %v5551_v24 = vmov 18   ;;  %v5068_v63 = vrot.slane %v5050_v6, %v3901_v32 }
 0x7e0   : > { %v1967_v51 = vadd.f32 %v1963_v10, %v1939_v40  ;;  %3192 = vset.pattern.permute.xlu0 %v5549_v7  ;;  %v1932_v10 = vmul.f32 %v5014_v16, %v4909_v23 }
 0x7e1   : > { %2505 = vperm.xlu0 %3192, %v4760_v14  }
 0x7e2   : > { %v2002_v4 = vpop.permute.xlu0 %2001  ;;  %2289 = vperm.xlu1 %3175, %v4772_v29   ;;  %v1974_v43 = vpop.permute.xlu1 %1973  ;;  %v1995_v15 = vadd.f32 %v1991_v1, %v1967_v51  ;;  %v1936_v1 = vadd.f32 %v1932_v10, %v1908_v48  ;;  %v1988_v51 = vmul.f32 %v5037_v25, %v1970_v59  ;;  %v5084_v48 = vrot.slane %v5050_v6, %v3983_v12 }
 0x7e3   : > { %v1989_v49 = vmul.f32 %v5037_v25, %v1974_v43  ;;  %v2017_v27 = vmul.f32 %v5054_v46, %v2002_v4  ;;  %v5558_v12 = vmov 31  }
 0x7e4   : > { %v1964_v26 = vadd.f32 %v1960_v8, %v1936_v1  ;;  %v5553_v8 = vmov 28  }
 0x7e5   : > { %v1993_v40 = vadd.f32 %v1989_v49, %v1965_v45  ;;  %3193 = vset.pattern.permute.xlu0 %v5550_v56 }
 0x7e6   : > { %2529 = vperm.xlu0 %3193, %v4767_v22   ;;  %3178 = vset.pattern.permute.xlu1 %v5551_v24  ;;  %v5064_v28 = vpop.permute.xlu1 %1977  ;;  %v1992_v4 = vadd.f32 %v1988_v51, %v1964_v26  ;;  %v5552_v24 = vmov 27  }
 0x7e7   : > { %v2026_v60 = vpop.permute.xlu0 %2025  ;;  %2309 = vperm.xlu1 %3178, %v4760_v14   ;;  %v2021_v30 = vadd.f32 %v2017_v27, %v1993_v40 }
 0x7e8   : > { %v2044_v23 = vmul.f32 %v5068_v63, %v2026_v60 }
 0x7ea   : > { %2541 = vperm.xlu0 %3193, %v4772_v29  }
 0x7eb   : > { %v2038_v11 = vpop.permute.xlu0 %2037  ;;  %2313 = vperm.xlu1 %3178, %v4764_v62   ;;  %v1998_v35 = vpop.permute.xlu1 %1997 }
 0x7ec   : > { %v2047_v43 = vmul.f32 %v5068_v63, %v2038_v11  ;;  %v2016_v45 = vmul.f32 %v5054_v46, %v1998_v35 }
 0x7ee   : > { %v2020_v49 = vadd.f32 %v2016_v45, %v1992_v4  ;;  %3196 = vset.pattern.permute.xlu0 %v5552_v24 }
 0x7ef   : > { %2561 = vperm.xlu0 %3196, %v4760_v14   ;;  %3179 = vset.pattern.permute.xlu1 %v5544_v0  ;;  %v5080_v59 = vpop.permute.xlu1 %2005  ;;  %v5094_v0 = vrot.slane %v5050_v6, %v3899_v31  ;;  %v5555_v31 = vmov 20  }
 0x7f0   : > { %v2058_v27 = vpop.permute.xlu0 %2057  ;;  %2333 = vperm.xlu1 %3179, %v4767_v22   ;;  %v2048_v40 = vadd.f32 %v2044_v23, %v2020_v49 }
 0x7f1   : > { %v2073_v10 = vmul.f32 %v5084_v48, %v2058_v27 }
 0x7f3   : > { %3197 = vset.pattern.permute.xlu0 %v5553_v8  ;;  %v2010_v60 = vpop.permute.xlu1 %2009 }
 0x7f4   : > { %v2019_v1 = vmul.f32 %v5054_v46, %v2010_v60  ;;  %2585 = vperm.xlu0 %3197, %v4767_v22   ;;  %2341 = vperm.xlu1 %3179, %v4764_v62   ;;  %v5554_v60 = vmov 29  }
 0x7f5   : > { %v2082_v51 = vpop.permute.xlu0 %2081 }
 0x7f6   : > { %v2023_v26 = vadd.f32 %v2019_v1, %v1995_v15  ;;  %v2100_v11 = vmul.f32 %v5094_v0, %v2082_v51  ;;  %v5109_v15 = vrot.slane %v5050_v6, %v5523_v13 }
 0x7f8   : > { %2597 = vperm.xlu0 %3197, %v4772_v29   ;;  %2345 = vperm.xlu1 %3179, %v4772_v29   ;;  %v2030_v23 = vpop.permute.xlu1 %2029  ;;  %v2051_v35 = vadd.f32 %v2047_v43, %v2023_v26  ;;  %v5556_v26 = vmov 30  }
 0x7f9   : > { %v2045_v4 = vmul.f32 %v5068_v63, %v2030_v23  ;;  %v2094_v45 = vpop.permute.xlu0 %2093  ;;  %v5118_v23 = vrot.slane %v5050_v6, %v3920_v41 }
 0x7fa   : > { %v2103_v49 = vmul.f32 %v5094_v0, %v2094_v45 }
 0x7fb   : > { %v2049_v27 = vadd.f32 %v2045_v4, %v2021_v30 }
 0x7fc   : > { %3200 = vset.pattern.permute.xlu0 %v5554_v60  ;;  %3182 = vset.pattern.permute.xlu1 %v5555_v31  ;;  %v5103_v8 = vpop.permute.xlu1 %2033 }
 0x7fd   : > { %2617 = vperm.xlu0 %3200, %v4760_v14   ;;  %2365 = vperm.xlu1 %3182, %v4760_v14   ;;  %v2077_v43 = vadd.f32 %v2073_v10, %v2049_v27  ;;  %v5557_v27 = vmov 21  }
 0x7fe   : > { %v2114_v1 = vpop.permute.xlu0 %2113 }
 0x7ff   : > { %v2129_v51 = vmul.f32 %v5109_v15, %v2114_v1 }
 0x801   : > { %3201 = vset.pattern.permute.xlu0 %v5556_v26  ;;  %2369 = vperm.xlu1 %3182, %v4764_v62   ;;  %v2054_v30 = vpop.permute.xlu1 %2053 }
 0x802   : > { %v2072_v31 = vmul.f32 %v5084_v48, %v2054_v30  ;;  %2641 = vperm.xlu0 %3201, %v4767_v22  }
 0x803   : > { %v2138_v4 = vpop.permute.xlu0 %2137 }
 0x804   : > { %v2076_v45 = vadd.f32 %v2072_v31, %v2048_v40  ;;  %v2156_v10 = vmul.f32 %v5118_v23, %v2138_v4  ;;  %v5133_v40 = vrot.slane %v5050_v6, %v5510_v61 }
 0x805   : > { %3183 = vset.pattern.permute.xlu1 %v5557_v27  ;;  %v5122_v1 = vpop.permute.xlu1 %2061 }
 0x806   : > { %2653 = vperm.xlu0 %3201, %v4772_v29   ;;  %2389 = vperm.xlu1 %3183, %v4767_v22   ;;  %v2104_v26 = vadd.f32 %v2100_v11, %v2076_v45 }
 0x807   : > { %v2150_v30 = vpop.permute.xlu0 %2149 }
 0x808   : > { %v2159_v13 = vmul.f32 %v5118_v23, %v2150_v30  ;;  %v5141_v30 = vrot.slane %v5050_v6, %v3946_v53 }
 0x809   : > { %v2066_v60 = vpop.permute.xlu1 %2065 }
 0x80a   : > { %v2075_v41 = vmul.f32 %v5084_v48, %v2066_v60  ;;  %3204 = vset.pattern.permute.xlu0 %v5558_v12  ;;  %2397 = vperm.xlu1 %3183, %v4764_v62   ;;  %v5143_v12 = vld [vmem:[#allocation10] sm:$0xff] }
 0x80b   : > { %2673 = vperm.xlu0 %3204, %v4760_v14  }
 0x80c   : > { %v2079_v31 = vadd.f32 %v2075_v41, %v2051_v35  ;;  %v2170_v4 = vpop.permute.xlu0 %2169 }
 0x80d   : > { %v2185_v11 = vmul.f32 %v5133_v40, %v2170_v4 }
 0x80e   : > { %2401 = vperm.xlu1 %3183, %v4772_v29   ;;  %v2086_v45 = vpop.permute.xlu1 %2085  ;;  %v2107_v27 = vadd.f32 %v2103_v49, %v2079_v31 }
 0x80f   : > { %v2101_v60 = vmul.f32 %v5094_v0, %v2086_v45  ;;  %3205 = vset.pattern.permute.xlu0 %v5533_v52 }
 0x810   : > { %2697 = vperm.xlu0 %3205, %v5143_v12  }
 0x811   : > { %v2105_v41 = vadd.f32 %v2101_v60, %v2077_v43  ;;  %v2194_v35 = vpop.permute.xlu0 %2193 }
 0x812   : > { %v2212_v4 = vmul.f32 %v5141_v30, %v2194_v35  ;;  %3186 = vset.pattern.permute.xlu1 %v5545_v50  ;;  %v5148_v61 = vpop.permute.xlu1 %2089  ;;  %v5160_v50 = vrot.slane %v5050_v6, %v3974_v21  ;;  %v302_v6 = vld [vmem:[#allocation10 + $0x28] sm:$0xff] }
 0x813   : > { %2421 = vperm.xlu1 %3186, %v4760_v14   ;;  %v2133_v49 = vadd.f32 %v2129_v51, %v2105_v41 }
 0x814   : > { %2709 = vperm.xlu0 %3205, %v4748_v36  }
 0x815   : > { %v2206_v31 = vpop.permute.xlu0 %2205 }
 0x816   : > { %v5153_v45 = vmul.f32 %v5141_v30, %v2206_v31 }
 0x817   : > { %2425 = vperm.xlu1 %3186, %v4764_v62   ;;  %v2110_v53 = vpop.permute.xlu1 %2109 }
 0x818   : > { %v2128_v43 = vmul.f32 %v5109_v15, %v2110_v53  ;;  %3208 = vset.pattern.permute.xlu0 %v5534_v2 }
 0x819   : > { %2721 = vperm.xlu0 %3208, %v4752_v58  }
 0x81a   : > { %v2132_v51 = vadd.f32 %v2128_v43, %v2104_v26  ;;  %v2226_v60 = vpop.permute.xlu0 %2225 }
 0x81b   : > { %v5164_v36 = vmul.f32 %v5160_v50, %v2226_v60  ;;  %3187 = vset.pattern.permute.xlu1 %v5546_v3  ;;  %v2118_v41 = vpop.permute.xlu1 %2117 }
 0x81c   : > { %2445 = vperm.xlu1 %3187, %v4767_v22   ;;  %v2160_v35 = vadd.f32 %v2156_v10, %v2132_v51  ;;  %v1822_v10 = vmul.f32 %v4972_v42, %v4834_v33 }
 0x81d   : > { %3209 = vset.pattern.permute.xlu0 %v5535_v17 }
 0x81e   : > { %2741 = vperm.xlu0 %3209, %v4745_v38   ;;  %v1850_v38 = vmul.f32 %v4976_v9, %v4842_v47  ;;  %v1906_v47 = vmul.f32 %v5001_v34, %v4885_v20 }
 0x81f   : > { %v2122_v53 = vpop.permute.xlu1 %2121 }
 0x820   : > { %v2131_v31 = vmul.f32 %v5109_v15, %v2122_v53  ;;  %2453 = vperm.xlu1 %3187, %v4764_v62   ;;  %v1854_v53 = vadd.f32 %v1850_v38, %v1822_v10  ;;  %v2102_v10 = vmul.f32 %v5094_v0, %v5148_v61  ;;  %v2250_v0 = vpop.permute.xlu0 %2249 }
 0x822   : > { %v2135_v58 = vadd.f32 %v2131_v31, %v2107_v27  ;;  %2755 = vperm.xlu0 %3209, %v302_v6   ;;  %v1878_v6 = vmul.f32 %v4994_v18, %v4866_v5  ;;  %v1962_v5 = vmul.f32 %v5029_v19, %v5019_v57  ;;  %v2046_v57 = vmul.f32 %v5068_v63, %v5103_v8 }
 0x824   : > { %2457 = vperm.xlu1 %3187, %v4772_v29   ;;  %v2142_v26 = vpop.permute.xlu1 %2141  ;;  %v2163_v3 = vadd.f32 %v2159_v13, %v2135_v58  ;;  %v1882_v31 = vadd.f32 %v1878_v6, %v1854_v53 }
 0x825   : > { %v2157_v43 = vmul.f32 %v5118_v23, %v2142_v26  ;;  %v1990_v26 = vmul.f32 %v5037_v25, %v5064_v28 }
 0x827   : > { %v2161_v51 = vadd.f32 %v2157_v43, %v2133_v49  ;;  %v1910_v49 = vadd.f32 %v1906_v47, %v1882_v31 }
 0x828   : > { %3190 = vset.pattern.permute.xlu1 %v5547_v44  ;;  %v2146_v60 = vpop.permute.xlu1 %2145  ;;  %v1934_v44 = vmul.f32 %v5014_v16, %v4985_v37  ;;  %v2018_v16 = vmul.f32 %v5054_v46, %v5080_v59 }
 0x829   : > { %2477 = vperm.xlu1 %3190, %v4760_v14   ;;  %v2189_v27 = vadd.f32 %v2185_v11, %v2161_v51  ;;  %v1720_v11 = vld [vmem:[#allocation3 + $0x10] sm:$0xff]  ;;  %v2158_v38 = vmul.f32 %v5118_v23, %v2146_v60 }
 0x82a   : > { %v1938_v58 = vadd.f32 %v1934_v44, %v1910_v49  ;;  %v1742_v20 = vmul.f32 %v4818_v55, %v1720_v11  ;;  %v2074_v55 = vmul.f32 %v5084_v48, %v5122_v1 }
 0x82c   : > { %v1966_v37 = vadd.f32 %v1962_v5, %v1938_v58  ;;  %v5559_v5 = vld [vmem:[#allocation24_spill] sm:$0xff] }
 0x82d   : > { %2481 = vperm.xlu1 %3190, %v4764_v62   ;;  %v2166_v13 = vpop.permute.xlu1 %2165 }
 0x82e   : > { %v2184_v33 = vmul.f32 %v5133_v40, %v2166_v13 }
 0x830   : > { %v2188_v42 = vadd.f32 %v2184_v33, %v2160_v35  ;;  %v1994_v35 = vadd.f32 %v1990_v26, %v1966_v37  ;;  %v2262_v33 = vpop.permute.xlu0 %2261 }
 0x831   : > { %3191 = vset.pattern.permute.xlu1 %v5549_v7  ;;  %v2174_v9 = vpop.permute.xlu1 %2173 }
 0x832   : > { %2501 = vperm.xlu1 %3191, %v4767_v22   ;;  %v2216_v18 = vadd.f32 %v2212_v4, %v2188_v42  ;;  %v1762_v4 = vadd.f32 %v4824_v54, %v1742_v20  ;;  %v2022_v43 = vadd.f32 %v2018_v16, %v1994_v35 }
 0x834   : > { %v2050_v59 = vadd.f32 %v2046_v57, %v2022_v43  ;;  %v1786_v63 = vmul.f32 %v4828_v39, %v1762_v4  ;;  %vm1766_vm1 = vcmp.ge.f32.partialorder %v1762_v4, 0.0  ;;  %v2186_v39 = vmul.f32 %v5133_v40, %v2174_v9  ;;  %v2282_v11 = vpop.permute.xlu0 %2281 }
 0x835   : > { %v2178_v34 = vpop.permute.xlu1 %2177  ;;  %v5561_v43 = vmov 29  }
 0x836   : > { %v2187_v7 = vmul.f32 %v5133_v40, %v2178_v34  ;;  %2509 = vperm.xlu1 %3191, %v4764_v62   ;;  %v2078_v54 = vadd.f32 %v2074_v55, %v2050_v59  ;;  %v5215_v51 = vsel %vm1766_vm1, %v1762_v4, %v1786_v63  ;;  %v5560_v34 = vmov 28  }
 0x838   : > { %v2191_v19 = vadd.f32 %v2187_v7, %v2163_v3  ;;  %v2130_v3 = vmul.f32 %v5109_v15, %v2118_v41  ;;  %v2306_v57 = vpop.permute.xlu0 %2305 }
 0x83a   : > { %2513 = vperm.xlu1 %3191, %v4772_v29   ;;  %v2198_v25 = vpop.permute.xlu1 %2197  ;;  %v2219_v46 = vadd.f32 %v5153_v45, %v2191_v19  ;;  %v2106_v45 = vadd.f32 %v2102_v10, %v2078_v54  ;;  %v5562_v10 = vld [vmem:[#allocation19_spill] sm:$0xff] }
 0x83b   : > { %v2213_v28 = vmul.f32 %v5141_v30, %v2198_v25 }
 0x83c   : > { %v2134_v61 = vadd.f32 %v2130_v3, %v2106_v45  ;;  %v5563_v45 = vld [vmem:[#allocation20_spill] sm:$0xff] }
 0x83d   : > { %v2217_v8 = vadd.f32 %v2213_v28, %v2189_v27 }
 0x83e   : > { %3194 = vset.pattern.permute.xlu1 %v5550_v56  ;;  %v2202_v48 = vpop.permute.xlu1 %2201  ;;  %v2267_v56 = vrot.slane %v5215_v51, %v3901_v32  ;;  %v2162_v15 = vadd.f32 %v2158_v38, %v2134_v61  ;;  %v2351_v38 = vrot.slane %v5215_v51, %v5563_v45 }
 0x83f   : > { %2533 = vperm.xlu1 %3194, %v4760_v14   ;;  %v2245_v1 = vadd.f32 %v5164_v36, %v2217_v8  ;;  %v2214_v41 = vmul.f32 %v5141_v30, %v2202_v48 }
 0x840   : > { %v2268_v53 = vmul.f32 %v2267_v56, %v2250_v0  ;;  %v2190_v6 = vadd.f32 %v2186_v39, %v2162_v15  ;;  %v2271_v30 = vmul.f32 %v2267_v56, %v2262_v33  ;;  %v5564_v0 = vmov 30   ;;  %v3215_v15 = vld [vmem:[#allocation9 + $0x8] sm:$0xff]  ;;  %v3217_v33 = vld [vmem:[#allocation9] sm:$0xff] }
 0x842   : > { %v2218_v13 = vadd.f32 %v2214_v41, %v2190_v6 }
 0x843   : > { %2537 = vperm.xlu1 %3194, %v4764_v62   ;;  %v2222_v27 = vpop.permute.xlu1 %2221 }
 0x844   : > { %v2240_v36 = vmul.f32 %v5160_v50, %v2222_v27 }
 0x846   : > { %v2244_v23 = vadd.f32 %v2240_v36, %v2216_v18  ;;  %v2295_v18 = vrot.slane %v5215_v51, %v5559_v5 }
 0x847   : > { %3195 = vset.pattern.permute.xlu1 %v5552_v24  ;;  %v2230_v60 = vpop.permute.xlu1 %2229 }
 0x848   : > { %v2242_v40 = vmul.f32 %v5160_v50, %v2230_v60  ;;  %2557 = vperm.xlu1 %3195, %v4767_v22   ;;  %v2272_v31 = vadd.f32 %v2268_v53, %v2244_v23  ;;  %v2297_v26 = vmul.f32 %v2295_v18, %v2282_v11  ;;  %v3216_v53 = vld [vmem:[#allocation9 + $0x10] sm:$0xff] }
 0x84a   : > { %v2246_v47 = vadd.f32 %v2242_v40, %v2218_v13  ;;  %v5565_v13 = vmov 31  }
 0x84b   : > { %v2234_v44 = vpop.permute.xlu1 %2233 }
 0x84c   : > { %v2243_v42 = vmul.f32 %v5160_v50, %v2234_v44  ;;  %2565 = vperm.xlu1 %3195, %v4764_v62  }
 0x84e   : > { %v2247_v9 = vadd.f32 %v2243_v42, %v2219_v46  ;;  %v2318_v46 = vpop.permute.xlu0 %2317 }
 0x850   : > { %2569 = vperm.xlu1 %3195, %v4772_v29   ;;  %v2254_v24 = vpop.permute.xlu1 %2253  ;;  %v2275_v49 = vadd.f32 %v2271_v30, %v2247_v9  ;;  %v5566_v9 = vld [vmem:[#allocation22_spill] sm:$0xff] }
 0x851   : > { %v2269_v58 = vmul.f32 %v2267_v56, %v2254_v24  ;;  %v2379_v11 = vrot.slane %v5215_v51, %v5566_v9  ;;  %v3218_v24 = vld [vmem:[#allocation9 + $0x18] sm:$0xff] }
 0x852   : > { %v2338_v3 = vpop.permute.xlu0 %2337 }
 0x853   : > { %v2273_v20 = vadd.f32 %v2269_v58, %v2245_v1  ;;  %v2353_v61 = vmul.f32 %v2351_v38, %v2338_v3 }
 0x854   : > { %3198 = vset.pattern.permute.xlu1 %v5560_v34  ;;  %v2258_v37 = vpop.permute.xlu1 %2257 }
 0x855   : > { %v2270_v16 = vmul.f32 %v2267_v56, %v2258_v37  ;;  %2589 = vperm.xlu1 %3198, %v4760_v14   ;;  %v2301_v50 = vadd.f32 %v2297_v26, %v2273_v20  ;;  %v2323_v14 = vrot.slane %v5215_v51, %v5562_v10  ;;  %v3219_v37 = vld [vmem:[#allocation10 + $0x8] sm:$0xff] }
 0x856   : > { %v2362_v20 = vpop.permute.xlu0 %2361 }
 0x857   : > { %v2274_v7 = vadd.f32 %v2270_v16, %v2246_v47  ;;  %v2327_v8 = vmul.f32 %v2323_v14, %v2318_v46  ;;  %v2324_v36 = vmul.f32 %v2323_v14, %v2306_v57  ;;  %v3220_v57 = vld [vmem:[#allocation10 + $0x10] sm:$0xff] }
 0x859   : > { %2593 = vperm.xlu1 %3198, %v4764_v62   ;;  %v2278_v35 = vpop.permute.xlu1 %2277 }
 0x85a   : > { %v2296_v19 = vmul.f32 %v2295_v18, %v2278_v35 }
 0x85c   : > { %v2300_v4 = vadd.f32 %v2296_v19, %v2272_v31 }
 0x85d   : > { %3199 = vset.pattern.permute.xlu1 %v5561_v43  ;;  %v2286_v55 = vpop.permute.xlu1 %2285 }
 0x85e   : > { %v2298_v25 = vmul.f32 %v2295_v18, %v2286_v55  ;;  %2613 = vperm.xlu1 %3199, %v4767_v22   ;;  %v2328_v6 = vadd.f32 %v2324_v36, %v2300_v4  ;;  %v2374_v55 = vpop.permute.xlu0 %2373  ;;  %v301_v36 = vld [vmem:[#allocation10 + $0x20] sm:$0xff] }
 0x860   : > { %v2302_v28 = vadd.f32 %v2298_v25, %v2274_v7  ;;  %v5567_v7 = vld [vmem:[#allocation21_spill] sm:$0xff] }
 0x861   : > { %v2290_v59 = vpop.permute.xlu1 %2289  ;;  %v2407_v35 = vrot.slane %v5215_v51, %v5567_v7 }
 0x862   : > { %v2299_v63 = vmul.f32 %v2295_v18, %v2290_v59  ;;  %2621 = vperm.xlu1 %3199, %v4764_v62  }
 0x864   : > { %v2303_v54 = vadd.f32 %v2299_v63, %v2275_v49  ;;  %v2394_v63 = vpop.permute.xlu0 %2393 }
 0x866   : > { %2625 = vperm.xlu1 %3199, %v4772_v29   ;;  %v2310_v48 = vpop.permute.xlu1 %2309  ;;  %v2331_v1 = vadd.f32 %v2327_v8, %v2303_v54 }
 0x867   : > { %v2325_v22 = vmul.f32 %v2323_v14, %v2310_v48  ;;  %v2409_v48 = vmul.f32 %v2407_v35, %v2394_v63 }
 0x869   : > { %v2329_v39 = vadd.f32 %v2325_v22, %v2301_v50  ;;  %v2380_v50 = vmul.f32 %v2379_v11, %v2362_v20  ;;  %v3221_v22 = vld [vmem:[#allocation10 + $0x18] sm:$0xff] }
 0x86a   : > { %3202 = vset.pattern.permute.xlu1 %v5564_v0  ;;  %v2314_v27 = vpop.permute.xlu1 %2313  ;;  %v1721_v0 = vld [vmem:[#allocation3 + $0x18] sm:$0xff] }
 0x86b   : > { %v2326_v56 = vmul.f32 %v2323_v14, %v2314_v27  ;;  %2645 = vperm.xlu1 %3202, %v3215_v15   ;;  %v2357_v62 = vadd.f32 %v2353_v61, %v2329_v39 }
 0x86d   : > { %v2330_v41 = vadd.f32 %v2326_v56, %v2302_v28  ;;  %v2383_v28 = vmul.f32 %v2379_v11, %v2374_v55  ;;  %v2418_v56 = vpop.permute.xlu0 %2417 }
 0x86f   : > { %2649 = vperm.xlu1 %3202, %v3216_v53   ;;  %v2334_v29 = vpop.permute.xlu1 %2333 }
 0x870   : > { %v2352_v23 = vmul.f32 %v2351_v38, %v2334_v29 }
 0x872   : > { %v2356_v60 = vadd.f32 %v2352_v23, %v2328_v6  ;;  %v2463_v6 = vrot.slane %v5215_v51, %v3974_v21 }
 0x873   : > { %3203 = vset.pattern.permute.xlu1 %v5565_v13  ;;  %v2342_v40 = vpop.permute.xlu1 %2341 }
 0x874   : > { %v2354_v31 = vmul.f32 %v2351_v38, %v2342_v40  ;;  %2669 = vperm.xlu1 %3203, %v3217_v33   ;;  %v2384_v4 = vadd.f32 %v2380_v50, %v2356_v60  ;;  %v5570_v60 = vld [vmem:[#allocation27_spill] sm:$0xff]  ;;  %v2430_v33 = vpop.permute.xlu0 %2429 }
 0x876   : > { %v2358_v47 = vadd.f32 %v2354_v31, %v2330_v41 }
 0x877   : > { %v2346_v44 = vpop.permute.xlu1 %2345 }
 0x878   : > { %v2355_v42 = vmul.f32 %v2351_v38, %v2346_v44  ;;  %2677 = vperm.xlu1 %3203, %v3216_v53   ;;  %v5571_v44 = vld [vmem:[#allocation26_spill] sm:$0xff] }
 0x87a   : > { %v2359_v30 = vadd.f32 %v2355_v42, %v2331_v1  ;;  %v5568_v1 = vld [vmem:[#allocation23_spill] sm:$0xff] }
 0x87b   : > { %v2435_v38 = vrot.slane %v5215_v51, %v5568_v1 }
 0x87c   : > { %2681 = vperm.xlu1 %3203, %v3218_v24   ;;  %v2366_v49 = vpop.permute.xlu1 %2365  ;;  %v2387_v8 = vadd.f32 %v2383_v28, %v2359_v30 }
 0x87d   : > { %v2381_v18 = vmul.f32 %v2379_v11, %v2366_v49  ;;  %v2436_v29 = vmul.f32 %v2435_v38, %v2418_v56 }
 0x87f   : > { %v2385_v58 = vadd.f32 %v2381_v18, %v2357_v62  ;;  %v5569_v62 = vld [vmem:[#allocation25_spill] sm:$0xff]  ;;  %v2450_v18 = vpop.permute.xlu0 %2449 }
 0x880   : > { %3206 = vset.pattern.permute.xlu1 %v5533_v52  ;;  %v2370_v26 = vpop.permute.xlu1 %2369  ;;  %v1743_v41 = vmul.f32 %v5569_v62, %v1721_v0 }
 0x881   : > { %v2382_v34 = vmul.f32 %v2379_v11, %v2370_v26  ;;  %2701 = vperm.xlu1 %3206, %v3219_v37   ;;  %v2439_v11 = vmul.f32 %v2435_v38, %v2430_v33 }
 0x882   : > { %v1763_v13 = vadd.f32 %v5570_v60, %v1743_v41 }
 0x883   : > { %v2386_v16 = vadd.f32 %v2382_v34, %v2358_v47  ;;  %v2465_v34 = vmul.f32 %v2463_v6, %v2450_v18 }
 0x884   : > { %v1787_v42 = vmul.f32 %v5571_v44, %v1763_v13  ;;  %vm1767_vm3 = vcmp.ge.f32.partialorder %v1763_v13, 0.0 }
 0x885   : > { %2705 = vperm.xlu1 %3206, %v3220_v57   ;;  %v2390_v19 = vpop.permute.xlu1 %2389 }
 0x886   : > { %v2408_v43 = vmul.f32 %v2407_v35, %v2390_v19 }
 0x888   : > { %v2412_v25 = vadd.f32 %v2408_v43, %v2384_v4 }
 0x889   : > { %3207 = vset.pattern.permute.xlu1 %v5534_v2  ;;  %v2398_v52 = vpop.permute.xlu1 %2397  ;;  %v2413_v2 = vadd.f32 %v2409_v48, %v2385_v58  ;;  %v5259_v58 = vsel %vm1767_vm3, %v1763_v13, %v1787_v42 }
 0x88a   : > { %v2410_v46 = vmul.f32 %v2407_v35, %v2398_v52  ;;  %2717 = vperm.xlu1 %3207, %v5143_v12   ;;  %v2440_v40 = vadd.f32 %v2436_v29, %v2412_v25  ;;  %v2491_v37 = vrot.slane %v5259_v58, %v3901_v32  ;;  %v2519_v25 = vrot.slane %v5259_v58, %v5559_v5  ;;  %v2474_v52 = vpop.permute.xlu0 %2473 }
 0x88b   : > { %v2547_v13 = vrot.slane %v5259_v58, %v5562_v10  ;;  %v2631_v18 = vrot.slane %v5259_v58, %v5567_v7 }
 0x88c   : > { %v2414_v59 = vadd.f32 %v2410_v46, %v2386_v16 }
 0x88d   : > { %v2402_v14 = vpop.permute.xlu1 %2401 }
 0x88e   : > { %v2411_v54 = vmul.f32 %v2407_v35, %v2402_v14  ;;  %2725 = vperm.xlu1 %3207, %v3220_v57   ;;  %v2486_v63 = vpop.permute.xlu0 %2485 }
 0x88f   : > { %v2495_v42 = vmul.f32 %v2491_v37, %v2486_v63 }
 0x890   : > { %v2415_v3 = vadd.f32 %v2411_v54, %v2387_v8 }
 0x892   : > { %2729 = vperm.xlu1 %3207, %v3221_v22   ;;  %v2422_v61 = vpop.permute.xlu1 %2421  ;;  %v2443_v51 = vadd.f32 %v2439_v11, %v2415_v3  ;;  %v2506_v32 = vpop.permute.xlu0 %2505 }
 0x893   : > { %v2437_v39 = vmul.f32 %v2435_v38, %v2422_v61 }
 0x895   : > { %v2441_v27 = vadd.f32 %v2437_v39, %v2413_v2 }
 0x896   : > { %3210 = vset.pattern.permute.xlu1 %v5535_v17  ;;  %v2426_v12 = vpop.permute.xlu1 %2425  ;;  %v2530_v3 = vpop.permute.xlu0 %2529 }
 0x897   : > { %v2438_v15 = vmul.f32 %v2435_v38, %v2426_v12  ;;  %2745 = vperm.xlu1 %3210, %v3221_v22   ;;  %v2469_v50 = vadd.f32 %v2465_v34, %v2441_v27 }
 0x899   : > { %v2442_v53 = vadd.f32 %v2438_v15, %v2414_v59 }
 0x89a   : > { %v2542_v22 = vpop.permute.xlu0 %2541 }
 0x89b   : > { %2750 = vperm.xlu1 %3210, %v301_v36   ;;  %v2446_v23 = vpop.permute.xlu1 %2445 }
 0x89c   : > { %v2464_v31 = vmul.f32 %v2463_v6, %v2446_v23 }
 0x89e   : > { %v2468_v17 = vadd.f32 %v2464_v31, %v2440_v40  ;;  %v2562_v2 = vpop.permute.xlu0 %2561  ;;  %v2575_v40 = vrot.slane %v5259_v58, %v5563_v45 }
 0x89f   : > { %v2454_v47 = vpop.permute.xlu1 %2453 }
 0x8a0   : > { %v2466_v30 = vmul.f32 %v2463_v6, %v2454_v47  ;;  %v2548_v47 = vmul.f32 %v2547_v13, %v2530_v3 }
 0x8a2   : > { %v2470_v24 = vadd.f32 %v2466_v30, %v2442_v53  ;;  %v2586_v0 = vpop.permute.xlu0 %2585  ;;  %v2492_v53 = vmul.f32 %v2491_v37, %v2474_v52  ;;  %v2659_v52 = vrot.slane %v5259_v58, %v5568_v1 }
 0x8a3   : > { %v2458_v49 = vpop.permute.xlu1 %2457 }
 0x8a4   : > { %v2467_v26 = vmul.f32 %v2463_v6, %v2458_v49  ;;  %v2496_v23 = vadd.f32 %v2492_v53, %v2468_v17  ;;  %v2603_v17 = vrot.slane %v5259_v58, %v5566_v9  ;;  %v2687_v9 = vrot.slane %v5259_v58, %v3974_v21 }
 0x8a6   : > { %v2471_v20 = vadd.f32 %v2467_v26, %v2443_v51  ;;  %v2598_v12 = vpop.permute.xlu0 %2597  ;;  %v2521_v26 = vmul.f32 %v2519_v25, %v2506_v32  ;;  %v2604_v45 = vmul.f32 %v2603_v17, %v2586_v0 }
 0x8a8   : > { %v2478_v16 = vpop.permute.xlu1 %2477  ;;  %v2499_v10 = vadd.f32 %v2495_v42, %v2471_v20 }
 0x8a9   : > { %v2493_v35 = vmul.f32 %v2491_v37, %v2478_v16 }
 0x8aa   : > { %v2618_v15 = vpop.permute.xlu0 %2617 }
 0x8ab   : > { %v2497_v57 = vadd.f32 %v2493_v35, %v2469_v50 }
 0x8ac   : > { %v2482_v19 = vpop.permute.xlu1 %2481 }
 0x8ad   : > { %v2494_v4 = vmul.f32 %v2491_v37, %v2482_v19  ;;  %v2551_v19 = vmul.f32 %v2547_v13, %v2542_v22 }
 0x8ae   : > { %v2642_v36 = vpop.permute.xlu0 %2641 }
 0x8af   : > { %v2498_v43 = vadd.f32 %v2494_v4, %v2470_v24  ;;  %v2525_v4 = vadd.f32 %v2521_v26, %v2497_v57 }
 0x8b1   : > { %v2502_v55 = vpop.permute.xlu1 %2501 }
 0x8b2   : > { %v2520_v29 = vmul.f32 %v2519_v25, %v2502_v55  ;;  %v2654_v60 = vpop.permute.xlu0 %2653 }
 0x8b4   : > { %v2524_v31 = vadd.f32 %v2520_v29, %v2496_v23  ;;  %v2633_v29 = vmul.f32 %v2631_v18, %v2618_v15 }
 0x8b5   : > { %v2510_v46 = vpop.permute.xlu1 %2509 }
 0x8b6   : > { %v2522_v28 = vmul.f32 %v2519_v25, %v2510_v46  ;;  %v2552_v11 = vadd.f32 %v2548_v47, %v2524_v31  ;;  %v2674_v24 = vpop.permute.xlu0 %2673  ;;  %v2663_v31 = vmul.f32 %v2659_v52, %v2654_v60 }
 0x8b8   : > { %v5265_v59 = vadd.f32 %v2522_v28, %v2498_v43 }
 0x8b9   : > { %v2514_v14 = vpop.permute.xlu1 %2513 }
 0x8ba   : > { %v2523_v30 = vmul.f32 %v2519_v25, %v2514_v14  ;;  %v2698_v35 = vpop.permute.xlu0 %2697  ;;  %v2577_v25 = vmul.f32 %v2575_v40, %v2562_v2  ;;  %v2660_v14 = vmul.f32 %v2659_v52, %v2642_v36 }
 0x8bc   : > { %v2527_v34 = vadd.f32 %v2523_v30, %v2499_v10 }
 0x8be   : > { %v2534_v8 = vpop.permute.xlu1 %2533  ;;  %v2555_v20 = vadd.f32 %v2551_v19, %v2527_v34  ;;  %v2710_v28 = vpop.permute.xlu0 %2709 }
 0x8bf   : > { %v2549_v16 = vmul.f32 %v2547_v13, %v2534_v8 }
 0x8c1   : > { %v2553_v7 = vadd.f32 %v2549_v16, %v2525_v4 }
 0x8c2   : > { %v5267_v54 = vpop.permute.xlu1 %2537  ;;  %v2722_v58 = vpop.permute.xlu0 %2721 }
 0x8c3   : > { %v2581_v57 = vadd.f32 %v2577_v25, %v2553_v7  ;;  %v2550_v21 = vmul.f32 %v2547_v13, %v5267_v54  ;;  %v2689_v13 = vmul.f32 %v2687_v9, %v2674_v24 }
 0x8c7   : > { %v2558_v48 = vpop.permute.xlu1 %2557 }
 0x8c8   : > { %v2576_v44 = vmul.f32 %v2575_v40, %v2558_v48  ;;  %v2607_v48 = vmul.f32 %v2603_v17, %v2598_v12  ;;  %v2554_v12 = vadd.f32 %v2550_v21, %v5265_v59 }
 0x8ca   : > { %v2580_v51 = vadd.f32 %v2576_v44, %v2552_v11  ;;  %v2742_v44 = vpop.permute.xlu0 %2741 }
 0x8cb   : > { %v5269_v38 = vpop.permute.xlu1 %2565 }
 0x8cc   : > { %v2608_v55 = vadd.f32 %v2604_v45, %v2580_v51  ;;  %v2578_v36 = vmul.f32 %v2575_v40, %v5269_v38 }
 0x8ce   : > { %v2582_v15 = vadd.f32 %v2578_v36, %v2554_v12 }
 0x8cf   : > { %v2570_v61 = vpop.permute.xlu1 %2569 }
 0x8d0   : > { %v2579_v43 = vmul.f32 %v2575_v40, %v2570_v61 }
 0x8d2   : > { %v2583_v63 = vadd.f32 %v2579_v43, %v2555_v20 }
 0x8d4   : > { %v2590_v39 = vpop.permute.xlu1 %2589 }
 0x8d5   : > { %v2605_v8 = vmul.f32 %v2603_v17, %v2590_v39 }
 0x8d7   : > { %v2609_v0 = vadd.f32 %v2605_v8, %v2581_v57 }
 0x8d8   : > { %v5271_v5 = vpop.permute.xlu1 %2593 }
 0x8d9   : > { %v2637_v39 = vadd.f32 %v2633_v29, %v2609_v0  ;;  %v2606_v42 = vmul.f32 %v2603_v17, %v5271_v5 }
 0x8db   : > { %v2610_v40 = vadd.f32 %v2606_v42, %v2582_v15 }
 0x8dd   : > { %v2614_v27 = vpop.permute.xlu1 %2613 }
 0x8de   : > { %v2632_v50 = vmul.f32 %v2631_v18, %v2614_v27  ;;  %v2611_v27 = vadd.f32 %v2607_v48, %v2583_v63 }
 0x8e0   : > { %v2636_v46 = vadd.f32 %v2632_v50, %v2608_v55 }
 0x8e1   : > { %v5273_v56 = vpop.permute.xlu1 %2621 }
 0x8e2   : > { %v2664_v61 = vadd.f32 %v2660_v14, %v2636_v46 }
 0x8e5   : > { %v2626_v62 = vpop.permute.xlu1 %2625 }
 0x8e6   : > { %v2635_v22 = vmul.f32 %v2631_v18, %v2626_v62 }
 0x8e8   : > { %v2639_v23 = vadd.f32 %v2635_v22, %v2611_v27 }
 0x8ea   : > { %v2646_v41 = vpop.permute.xlu1 %2645  ;;  %v2667_v11 = vadd.f32 %v2663_v31, %v2639_v23 }
 0x8eb   : > { %v2661_v2 = vmul.f32 %v2659_v52, %v2646_v41  ;;  %v2634_v41 = vmul.f32 %v2631_v18, %v5273_v56  ;;  %v2756_v56 = vpop.permute.xlu0 %2755 }
 0x8ed   : > { %v2665_v30 = vadd.f32 %v2661_v2, %v2637_v39  ;;  %v2638_v5 = vadd.f32 %v2634_v41, %v2610_v40 }
 0x8ee   : > { %v5275_v6 = vpop.permute.xlu1 %2649 }
 0x8ef   : > { %v2662_v51 = vmul.f32 %v2659_v52, %v5275_v6  ;;  %v2693_v59 = vadd.f32 %v2689_v13, %v2665_v30 }
 0x8f1   : > { %v2666_v18 = vadd.f32 %v2662_v51, %v2638_v5 }
 0x8f3   : > { %v2670_v33 = vpop.permute.xlu1 %2669 }
 0x8f4   : > { %v2688_v32 = vmul.f32 %v2687_v9, %v2670_v33 }
 0x8f6   : > { %v2692_v1 = vadd.f32 %v2688_v32, %v2664_v61 }
 0x8f7   : > { %v5281_v49 = vpop.permute.xlu1 %2677 }
 0x8f8   : > { %v2712_v33 = vmul.f32 %v2698_v35, %v2692_v1  ;;  %v2690_v17 = vmul.f32 %v2687_v9, %v5281_v49 }
 0x8fa   : > { %v2694_v35 = vadd.f32 %v2690_v17, %v2666_v18 }
 0x8fb   : > { %v2682_v37 = vpop.permute.xlu1 %2681 }
 0x8fc   : > { %v2691_v47 = vmul.f32 %v2687_v9, %v2682_v37 }
 0x8fe   : > { %v2695_v10 = vadd.f32 %v2691_v47, %v2667_v11 }
 0x900   : > { %v2702_v3 = vpop.permute.xlu1 %2701  ;;  %v2715_v24 = vmul.f32 %v2710_v28, %v2695_v10 }
 0x901   : > { %v2713_v45 = vmul.f32 %v2702_v3, %v2693_v59 }
 0x903   : > { %v2733_v50 = vadd.f32 %v2722_v58, %v2713_v45 }
 0x904   : > { %v2706_v53 = vpop.permute.xlu1 %2705 }
 0x905   : > { %v2714_v37 = vmul.f32 %v2706_v53, %v2694_v35  ;;  %vm2737_vm10 = vcmp.ge.f32.partialorder %v2733_v50, 0.0 }
 0x909   : > { %v2718_v62 = vpop.permute.xlu1 %2717 }
 0x90a   : > { %v2732_v54 = vadd.f32 %v2718_v62, %v2712_v33 }
 0x90c   : > { %vm2736_vm4 = vcmp.ge.f32.partialorder %v2732_v54, 0.0  ;;  %v2758_v38 = vmul.f32 %v2742_v44, %v2732_v54 }
 0x90d   : > { %v2726_v60 = vpop.permute.xlu1 %2725 }
 0x90e   : > { %v2762_v26 = vsel %vm2736_vm4, %v2732_v54, %v2758_v38  ;;  %v2734_v43 = vadd.f32 %v2726_v60, %v2714_v37 }
 0x90f   : > { %2766 = vst.msk [vmem:[%s4491_s16 + $0x10] sm:$0xff] %vm1144_vm2, %v2762_v26 }
 0x910   : > { %vm2738_vm12 = vcmp.ge.f32.partialorder %v2734_v43, 0.0 }
 0x911   : > { %v2730_v34 = vpop.permute.xlu1 %2729 }
 0x912   : > { %v2735_v16 = vadd.f32 %v2730_v34, %v2715_v24 }
 0x914   : > { %vm2739_vm7 = vcmp.ge.f32.partialorder %v2735_v16, 0.0  ;;  %v2761_v6 = vmul.f32 %v2756_v56, %v2735_v16 }
 0x916   : > { %v2765_v19 = vsel %vm2739_vm7, %v2735_v16, %v2761_v6  ;;  %v2746_v4 = vpop.permute.xlu1 %2745 }
 0x917   : > { %2769 = vst.msk [vmem:[%s4491_s16 + $0x28] sm:$0xff] %vm1144_vm2, %v2765_v19  ;;  %v2759_v49 = vmul.f32 %v2746_v4, %v2733_v50 }
 0x919   : > { %v2763_v55 = vsel %vm2737_vm10, %v2733_v50, %v2759_v49 }
 0x91a   : > { %2767 = vst.msk [vmem:[%s4491_s16 + $0x18] sm:$0xff] %vm1144_vm2, %v2763_v55  ;;  %v2751_v52 = vpop.permute.xlu1 %2750 }
 0x91b   : > { %v2760_v9 = vmul.f32 %v2751_v52, %v2734_v43 }
 0x91d   : > { %v2764_v7 = vsel %vm2738_vm12, %v2734_v43, %v2760_v9 }
 0x91e   : > { %2768 = vst.msk [vmem:[%s4491_s16 + $0x20] sm:$0xff] %vm1144_vm2, %v2764_v7 }
 0x91f   : > { %3377 = shalt.err (!%p3374_p13)
}
 0x920   : > { %s3378_s16 = scalar_lea.hbm %s5311_s27, 768  ;;  %s3382_s24 = scalar_lea.hbm %s5362_s5, 1536 }
 0x921   : > { %p3379_p0 = scmp.ne.s32.totalorder %s5311_s27, %s3378_s16  ;;  %p3383_p9 = scmp.lt.u32.totalorder %s5311_s27, %s5362_s5 }
 0x922   : > { %p3384_p12 = scmp.lt.u32.totalorder %s3382_s24, %s3378_s16  ;;  %p3386_p4 = scmp.lt.u32.totalorder %s3378_s16, %s5311_s27 }
 0x923   : > { %p3380_p5 = pnand %p3379_p0, %p3708_p1 }
 0x924   : > { %p3385_p2 = por %p3384_p12, %p3383_p9 }
 0x925   : > { %p3381_p11 = pneg %p3380_p5 }
 0x926   : > { %p3387_p6 = por %p3386_p4, %p3385_p2 }
 0x928   : > { %p3388_p8 = pnand %p3387_p6, %p3381_p11 }
 0x92a   : > { %3391 = shalt.err (!%p3388_p8)
}
 0x92b   : > { %s3524_s11 = smov 128   ;;  %s3525_s8 = smov 8  }
 0x92c   : > { %2934 = dma.vmem_to_hbm [thread:$0]  (%p3708_p1), %s5304_s10, 768, %s5311_s27, %s2771_s22, %s3524_s11, %s3524_s11, %s3525_s8  }
 0x92d PF: > { %s2799_s15 = sand.u32 1, %s3426_s18   ;;  %p5572_p3 = scmp.ne.s32.totalorder %s5442_s25, 0 }
 0x92e   : > { %p5573_p7 = scmp.ge.s32.totalorder %s3438_s21, 2  ;;  %s2800_s30 = scalar_lea.sflag [#allocation6], %s2799_s15 }
 0x930   : > { %p2954_p10 = pnand %p5573_p7, %p5572_p3 }
 0x932   : > { %3421 = dma.done.wait (!%p2954_p10), %s2800_s30, 768  }
 0x933   : > { %3423 = vsyncadd (!%p2954_p10), %s2800_s30, 4294966528  ;;  %p20_p13 = scmp.ge.s32.totalorder %s3698_s14, 4   ;;  %s5574_s18 = smov %s3430_s19 }
 0x934   : > { %s5575_s19 = smov %s3434_s20  ;;  %s5576_s20 = smov %s3714_s17 }
 0x935   : > { %s5577_s21 = smov %s3698_s14  ;;  %22 = sbr.rel (!%p20_p13) target bundleno = 7 (0x7), region = 101 }
 0x93c   :  { %2805 = vsyncpa [#allocation5], 1 }
 0x93d   :  { %2807 = vsyncpa [#allocation5 + $0x1], 1 }
 0x93e   :  { %2808 = vsyncpa [#allocation8], 1 }
 0x93f   :  { %2809 = vsyncpa [#allocation11], 1 }
 0x940   :  { %2810 = vsyncpa [#allocation6], 1 }
 0x941   :  { %2812 = vsyncpa [#allocation6 + $0x1], 1 }

</bundles_post_ra>
